<compile_context>
chip_gen: v6e
topology: v6e:2x2x1
jax: 0.10.0
libtpu: 0.0.40
codegen_flags: <defaults>
</compile_context>

<pallas_src>
import functools

import jax
import jax.numpy as jnp
from jax import lax
from jax.experimental import pallas as pl
from jax.experimental.pallas import tpu as pltpu


LANE = 128          # lane width: Cout / Cin / K are padded to multiples of this
BLOCK_M = 256       # M-tile rows (sweet spot per tile-size sweep; keeps 2x buffers small)
VMEM_LIMIT = 48 * 1024 * 1024   # explicit scoped-VMEM limit (> defaults, < v7x physical)


def _round_up(x, m):
    return (x + m - 1) // m * m


def _pad_axis(x, axis, multiple):
    size = x.shape[axis]
    pad = _round_up(size, multiple) - size
    if pad == 0:
        return x
    widths = [(0, 0)] * x.ndim
    widths[axis] = (0, pad)
    return jnp.pad(x, widths)


# ----------------------------- Pallas kernels ------------------------------ #

def _gemm_kernel(x_ref, w_ref, b_ref, o_ref, *, relu_input):
    x = x_ref[...]                       # bf16 tile (TM, K)
    if relu_input:                       # p7 = conv(relu(p6)); ReLU is exact in bf16
        x = jnp.maximum(x, 0)
    acc = jnp.dot(x, w_ref[...], preferred_element_type=jnp.float32)   # MXU, f32 acc
    o_ref[...] = acc + b_ref[...]        # bias add in f32


def _gemm_residual_kernel(x_ref, w_ref, b_ref, r_ref, o_ref):
    acc = jnp.dot(x_ref[...], w_ref[...], preferred_element_type=jnp.float32)
    o_ref[...] = acc + b_ref[...] + r_ref[...]      # bias + residual in f32


def pallas_gemm(x, w, b, residual=None, relu_input=False, block_m=BLOCK_M):
    """y = [relu](x) @ w + b (+ residual); M-tiled, pipelined, bf16 MXU, f32 accum."""
    M, K = x.shape
    K2, N = w.shape
    assert K == K2
    assert K % LANE == 0 and N % LANE == 0, "K and N must be lane-padded"

    # Choose an M tile: multiple of 8, capped so 2x-buffered tiles stay small even
    # for the largest K here (9*512 = 4608).
    tm = min(block_m, _round_up(M, 8))
    Mp = _round_up(M, tm)
    if Mp != M:
        x = jnp.pad(x, ((0, Mp - M), (0, 0)))
        if residual is not None:
            residual = jnp.pad(residual, ((0, Mp - M), (0, 0)))

    xb = x.astype(jnp.bfloat16)                      # halves x-tile DMA bytes
    wb = w.astype(jnp.bfloat16)
    b2 = b.reshape(1, N).astype(jnp.float32)

    in_specs = [
        pl.BlockSpec((tm, K), lambda i: (i, 0)),     # streamed / double-buffered
        pl.BlockSpec((K, N), lambda i: (0, 0)),      # weight resident across the grid
        pl.BlockSpec((1, N), lambda i: (0, 0)),      # bias resident
    ]
    args = [xb, wb, b2]

    if residual is None:
        kernel = functools.partial(_gemm_kernel, relu_input=relu_input)
    else:
        assert not relu_input
        in_specs.append(pl.BlockSpec((tm, N), lambda i: (i, 0)))
        args.append(residual.astype(jnp.float32))
        kernel = _gemm_residual_kernel

    out = pl.pallas_call(
        kernel,
        out_shape=jax.ShapeDtypeStruct((Mp, N), jnp.float32),
        grid=(Mp // tm,),
        in_specs=in_specs,
        out_specs=pl.BlockSpec((tm, N), lambda i: (i, 0)),
        compiler_params=pltpu.CompilerParams(
            dimension_semantics=("parallel",),       # v7x: split M across both TCs
            vmem_limit_bytes=VMEM_LIMIT,
        ),
    )(*args)
    return out[:M] if Mp != M else out


# ------------------------------ conv plumbing ------------------------------ #

def _im2col(x_nhwc, ksize, stride, pad):
    """Rectangular patch extraction (XLA glue; the GEMM is the hot path)."""
    B, H, W, C = x_nhwc.shape
    if ksize == 1 and stride == 1 and pad == 0:      # 1x1 conv: pure reshape, no blowup
        return x_nhwc.reshape(B * H * W, C), (B, H, W)
    xp = jnp.pad(x_nhwc, ((0, 0), (pad, pad), (pad, pad), (0, 0)))
    Ho = (H + 2 * pad - ksize) // stride + 1
    Wo = (W + 2 * pad - ksize) // stride + 1
    cols = []
    for kh in range(ksize):
        for kw in range(ksize):
            cols.append(
                xp[:, kh:kh + stride * Ho:stride, kw:kw + stride * Wo:stride, :])
    patches = jnp.concatenate(cols, axis=-1)         # (B, Ho, Wo, k*k*C)
    return patches.reshape(B * Ho * Wo, ksize * ksize * C), (B, Ho, Wo)


def conv2d(x_nhwc, w_oihw, b, stride=1, pad=0, residual=None, relu_input=False):
    """Conv2d (PyTorch semantics) on a channel-padded NHWC tensor via Pallas GEMM.

    Channels are zero-padded to a multiple of 128 (dense lanes, dense K); padded
    output channels are exactly zero so they compose through the whole pyramid.
    """
    Cout, Cin, kh, kw = w_oihw.shape
    Cin_p = _round_up(Cin, LANE)
    Cout_p = _round_up(Cout, LANE)

    x_nhwc = _pad_axis(x_nhwc, 3, LANE)
    assert x_nhwc.shape[3] == Cin_p, (x_nhwc.shape, Cin_p)

    patches, (B, Ho, Wo) = _im2col(x_nhwc, kh, stride, pad)
    # match im2col ordering: (kh, kw, cin) fastest-to-slowest on the K axis
    w_p = _pad_axis(_pad_axis(w_oihw, 1, LANE), 0, LANE)          # (Cout_p, Cin_p, kh, kw)
    w_mat = jnp.transpose(w_p, (2, 3, 1, 0)).reshape(kh * kw * Cin_p, Cout_p)
    b_p = _pad_axis(b, 0, LANE)

    res = None if residual is None else residual.reshape(B * Ho * Wo, Cout_p)
    y = pallas_gemm(patches, w_mat, b_p, residual=res, relu_input=relu_input)
    return y.reshape(B, Ho, Wo, Cout_p)


def upsample2x(x_nhwc):
    # F.interpolate(scale_factor=2) default mode is 'nearest': out[i] = in[i // 2]
    return jnp.repeat(jnp.repeat(x_nhwc, 2, axis=1), 2, axis=2)


# ------------------------------- FPN forward ------------------------------- #

def fpn_forward(params, c3, c4, c5):
    """c3/c4/c5 are NCHW; returns (p3, p4, p5, p6, p7) in NCHW, matching PyTorch."""
    nf = params['p6_b'].shape[0]
    c3h = jnp.transpose(c3, (0, 2, 3, 1))
    c4h = jnp.transpose(c4, (0, 2, 3, 1))
    c5h = jnp.transpose(c5, (0, 2, 3, 1))

    p6 = conv2d(c5h, params['p6_w'], params['p6_b'], stride=2, pad=1)
    p7 = conv2d(p6, params['p7_w'], params['p7_b'], stride=2, pad=1,
                relu_input=True)                      # ReLU(p6) fused into the kernel

    p5_lat = conv2d(c5h, params['p5_1_w'], params['p5_1_b'])
    p5_up = upsample2x(p5_lat)
    p5 = conv2d(p5_lat, params['p5_2_w'], params['p5_2_b'], stride=1, pad=1)

    p4_lat = conv2d(c4h, params['p4_1_w'], params['p4_1_b'], residual=p5_up)
    p4_up = upsample2x(p4_lat)
    p4 = conv2d(p4_lat, params['p4_2_w'], params['p4_2_b'], stride=1, pad=1)

    p3_lat = conv2d(c3h, params['p3_1_w'], params['p3_1_b'], residual=p4_up)
    p3 = conv2d(p3_lat, params['p3_2_w'], params['p3_2_b'], stride=1, pad=1)

    # drop the zero-padded channels and return NCHW
    to_nchw = lambda t: jnp.transpose(t[..., :nf], (0, 3, 1, 2))
    return tuple(to_nchw(t) for t in (p3, p4, p5, p6, p7))


# ----------------------------- params / reference -------------------------- #

def init_params(key, num_features):
    def conv_init(k, cout, cin, ksz):
        kw_, kb_ = jax.random.split(k)
        fan_in = cin * ksz * ksz
        w = jax.random.normal(kw_, (cout, cin, ksz, ksz), jnp.float32) / jnp.sqrt(fan_in)
        b = 0.01 * jax.random.normal(kb_, (cout,), jnp.float32)
        return w, b

    keys = jax.random.split(key, 8)
    p = {}
    p['p6_w'],   p['p6_b']   = conv_init(keys[0], num_features, 512, 3)
    p['p7_w'],   p['p7_b']   = conv_init(keys[1], num_features, num_features, 3)
    p['p5_1_w'], p['p5_1_b'] = conv_init(keys[2], num_features, 512, 1)
    p['p5_2_w'], p['p5_2_b'] = conv_init(keys[3], num_features, num_features, 3)
    p['p4_1_w'], p['p4_1_b'] = conv_init(keys[4], num_features, 256, 1)
    p['p4_2_w'], p['p4_2_b'] = conv_init(keys[5], num_features, num_features, 3)
    p['p3_1_w'], p['p3_1_b'] = conv_init(keys[6], num_features, 128, 1)
    p['p3_2_w'], p['p3_2_b'] = conv_init(keys[7], num_features, num_features, 3)
    return p


def _ref_conv(x, w, b, stride=1, pad=0):
    y = lax.conv_general_dilated(
        x, w, window_strides=(stride, stride),
        padding=((pad, pad), (pad, pad)),
        dimension_numbers=('NCHW', 'OIHW', 'NCHW'),
        precision=lax.Precision.HIGHEST)
    return y + b[None, :, None, None]


def ref_forward(params, c3, c4, c5):
    p6 = _ref_conv(c5, params['p6_w'], params['p6_b'], 2, 1)
    p7 = _ref_conv(jnp.maximum(p6, 0.0), params['p7_w'], params['p7_b'], 2, 1)
    p5 = _ref_conv(c5, params['p5_1_w'], params['p5_1_b'])
    p5_up = jnp.repeat(jnp.repeat(p5, 2, axis=2), 2, axis=3)
    p5 = _ref_conv(p5, params['p5_2_w'], params['p5_2_b'], 1, 1)
    p4 = _ref_conv(c4, params['p4_1_w'], params['p4_1_b']) + p5_up
    p4_up = jnp.repeat(jnp.repeat(p4, 2, axis=2), 2, axis=3)
    p4 = _ref_conv(p4, params['p4_2_w'], params['p4_2_b'], 1, 1)
    p3 = _ref_conv(c3, params['p3_1_w'], params['p3_1_b']) + p4_up
    p3 = _ref_conv(p3, params['p3_2_w'], params['p3_2_b'], 1, 1)
    return p3, p4, p5, p6, p7


# ---------------------------------- main ----------------------------------- #

if __name__ == "__main__":
    key = jax.random.PRNGKey(0)
    kp, k3, k4, k5 = jax.random.split(key, 4)

    num_features = 64   # constructor arg (kept small; c3/c4/c5 channel counts are fixed by the module)
    B = 2
    c3 = jax.random.normal(k3, (B, 128, 16, 16), jnp.float32)
    c4 = jax.random.normal(k4, (B, 256, 8, 8), jnp.float32)
    c5 = jax.random.normal(k5, (B, 512, 4, 4), jnp.float32)

    params = init_params(kp, num_features)

    fwd = jax.jit(fpn_forward)
    outs = jax.block_until_ready(fwd(params, c3, c4, c5))

    # sanity check against a pure-JAX (lax.conv, highest precision) reference
    refs = jax.block_until_ready(ref_forward(params, c3, c4, c5))
    expected_shapes = [
        (B, num_features, 16, 16),  # p3
        (B, num_features, 8, 8),    # p4
        (B, num_features, 4, 4),    # p5
        (B, num_features, 2, 2),    # p6
        (B, num_features, 1, 1),    # p7
    ]
    for name, o, r, es in zip(("p3", "p4", "p5", "p6", "p7"), outs, refs, expected_shapes):
        assert o.shape == es, (name, o.shape, es)
        assert o.dtype == jnp.float32
        assert jnp.allclose(o, r, rtol=2e-2, atol=2e-2), name

    print("KERNEL_OK")
</pallas_src>

<mosaic_0001>
module attributes {stable_mosaic.version = 11 : i64} {
  func.func @_gemm_residual_kernel(%arg0: i32, %arg1: memref<256x128xbf16, #tpu.memory_space<vmem>>, %arg2: memref<128x128xbf16, #tpu.memory_space<vmem>>, %arg3: memref<1x128xf32, #tpu.memory_space<vmem>>, %arg4: memref<256x128xf32, #tpu.memory_space<vmem>>, %arg5: memref<256x128xf32, #tpu.memory_space<vmem>>) attributes {dimension_semantics = [#tpu.dimension_semantics<parallel>], iteration_bounds = array<i64: 2>, scalar_prefetch = 0 : i64, scratch_operands = 0 : i64, tpu.core_type = #tpu.core_type<tc>, window_params = [{transform_indices = @transform_0, window_bounds = array<i64: 256, 128>}, {pipeline_mode = #tpu.pipeline_mode<synchronous>, transform_indices = @transform_1, window_bounds = array<i64: 128, 128>}, {pipeline_mode = #tpu.pipeline_mode<synchronous>, transform_indices = @transform_2, window_bounds = array<i64: 1, 128>}, {transform_indices = @transform_3, window_bounds = array<i64: 256, 128>}, {transform_indices = @transform_4, window_bounds = array<i64: 256, 128>}]} {
    %c0 = arith.constant 0 : index
    %c0_0 = arith.constant 0 : index
    %0 = vector.load %arg1[%c0, %c0_0] : memref<256x128xbf16, #tpu.memory_space<vmem>>, vector<256x128xbf16>
    %c0_1 = arith.constant 0 : index
    %c0_2 = arith.constant 0 : index
    %1 = vector.load %arg2[%c0_1, %c0_2] : memref<128x128xbf16, #tpu.memory_space<vmem>>, vector<128x128xbf16>
    %cst = arith.constant dense<0.000000e+00> : vector<256x128xf32>
    %2 = tpu.matmul %0, %1, %cst {dimension_numbers = #tpu.dot_dimension_numbers<[1], [0], [0], [1], [0, 0, 1, 1], [], []>} : vector<256x128xbf16>, vector<128x128xbf16>, vector<256x128xf32> -> vector<256x128xf32>
    %c0_3 = arith.constant 0 : index
    %c0_4 = arith.constant 0 : index
    %3 = vector.load %arg3[%c0_3, %c0_4] : memref<1x128xf32, #tpu.memory_space<vmem>>, vector<1x128xf32>
    %4 = vector.broadcast %3 : vector<1x128xf32> to vector<256x128xf32>
    %5 = arith.addf %2, %4 : vector<256x128xf32>
    %c0_5 = arith.constant 0 : index
    %c0_6 = arith.constant 0 : index
    %6 = vector.load %arg4[%c0_5, %c0_6] : memref<256x128xf32, #tpu.memory_space<vmem>>, vector<256x128xf32>
    %7 = arith.addf %5, %6 : vector<256x128xf32>
    %c0_7 = arith.constant 0 : index
    %c0_8 = arith.constant 0 : index
    %8 = vector.load %arg5[%c0_7, %c0_8] : memref<256x128xf32, #tpu.memory_space<vmem>>, vector<256x128xf32>
    tpu.vector_store %arg5[%c0_7, %c0_8], %7 {strides = array<i32>} : memref<256x128xf32, #tpu.memory_space<vmem>>, vector<256x128xf32>,
    return
  }
  func.func @transform_0(%arg0: i32) -> (i32, i32) {
    %c0_i32 = arith.constant 0 : i32
    %c0_i32_0 = arith.constant 0 : i32
    return %arg0, %c0_i32 : i32, i32
  }
  func.func @transform_1(%arg0: i32) -> (i32, i32) {
    %c0_i32 = arith.constant 0 : i32
    %c0_i32_0 = arith.constant 0 : i32
    %c0_i32_1 = arith.constant 0 : i32
    return %c0_i32, %c0_i32_0 : i32, i32
  }
  func.func @transform_2(%arg0: i32) -> (i32, i32) {
    %c0_i32 = arith.constant 0 : i32
    %c0_i32_0 = arith.constant 0 : i32
    %c0_i32_1 = arith.constant 0 : i32
    return %c0_i32, %c0_i32_0 : i32, i32
  }
  func.func @transform_3(%arg0: i32) -> (i32, i32) {
    %c0_i32 = arith.constant 0 : i32
    %c0_i32_0 = arith.constant 0 : i32
    return %arg0, %c0_i32 : i32, i32
  }
  func.func @transform_4(%arg0: i32) -> (i32, i32) {
    %c0_i32 = arith.constant 0 : i32
    %c0_i32_0 = arith.constant 0 : i32
    return %arg0, %c0_i32 : i32, i32
  }
}

module attributes {stable_mosaic.version = 11 : i64} {
  func.func @_gemm_residual_kernel(%arg0: i32, %arg1: memref<128x256xbf16, #tpu.memory_space<vmem>>, %arg2: memref<256x128xbf16, #tpu.memory_space<vmem>>, %arg3: memref<1x128xf32, #tpu.memory_space<vmem>>, %arg4: memref<128x128xf32, #tpu.memory_space<vmem>>, %arg5: memref<128x128xf32, #tpu.memory_space<vmem>>) attributes {dimension_semantics = [#tpu.dimension_semantics<parallel>], iteration_bounds = array<i64: 1>, scalar_prefetch = 0 : i64, scratch_operands = 0 : i64, tpu.core_type = #tpu.core_type<tc>, window_params = [{transform_indices = @transform_0, window_bounds = array<i64: 128, 256>}, {pipeline_mode = #tpu.pipeline_mode<synchronous>, transform_indices = @transform_1, window_bounds = array<i64: 256, 128>}, {pipeline_mode = #tpu.pipeline_mode<synchronous>, transform_indices = @transform_2, window_bounds = array<i64: 1, 128>}, {transform_indices = @transform_3, window_bounds = array<i64: 128, 128>}, {transform_indices = @transform_4, window_bounds = array<i64: 128, 128>}]} {
    %c0 = arith.constant 0 : index
    %c0_0 = arith.constant 0 : index
    %0 = vector.load %arg1[%c0, %c0_0] : memref<128x256xbf16, #tpu.memory_space<vmem>>, vector<128x256xbf16>
    %c0_1 = arith.constant 0 : index
    %c0_2 = arith.constant 0 : index
    %1 = vector.load %arg2[%c0_1, %c0_2] : memref<256x128xbf16, #tpu.memory_space<vmem>>, vector<256x128xbf16>
    %cst = arith.constant dense<0.000000e+00> : vector<128x128xf32>
    %2 = tpu.matmul %0, %1, %cst {dimension_numbers = #tpu.dot_dimension_numbers<[1], [0], [0], [1], [0, 0, 1, 1], [], []>} : vector<128x256xbf16>, vector<256x128xbf16>, vector<128x128xf32> -> vector<128x128xf32>
    %c0_3 = arith.constant 0 : index
    %c0_4 = arith.constant 0 : index
    %3 = vector.load %arg3[%c0_3, %c0_4] : memref<1x128xf32, #tpu.memory_space<vmem>>, vector<1x128xf32>
    %4 = vector.broadcast %3 : vector<1x128xf32> to vector<128x128xf32>
    %5 = arith.addf %2, %4 : vector<128x128xf32>
    %c0_5 = arith.constant 0 : index
    %c0_6 = arith.constant 0 : index
    %6 = vector.load %arg4[%c0_5, %c0_6] : memref<128x128xf32, #tpu.memory_space<vmem>>, vector<128x128xf32>
    %7 = arith.addf %5, %6 : vector<128x128xf32>
    %c0_7 = arith.constant 0 : index
    %c0_8 = arith.constant 0 : index
    %8 = vector.load %arg5[%c0_7, %c0_8] : memref<128x128xf32, #tpu.memory_space<vmem>>, vector<128x128xf32>
    tpu.vector_store %arg5[%c0_7, %c0_8], %7 {strides = array<i32>} : memref<128x128xf32, #tpu.memory_space<vmem>>, vector<128x128xf32>,
    return
  }
  func.func @transform_0(%arg0: i32) -> (i32, i32) {
    %c0_i32 = arith.constant 0 : i32
    %c0_i32_0 = arith.constant 0 : i32
    return %arg0, %c0_i32 : i32, i32
  }
  func.func @transform_1(%arg0: i32) -> (i32, i32) {
    %c0_i32 = arith.constant 0 : i32
    %c0_i32_0 = arith.constant 0 : i32
    %c0_i32_1 = arith.constant 0 : i32
    return %c0_i32, %c0_i32_0 : i32, i32
  }
  func.func @transform_2(%arg0: i32) -> (i32, i32) {
    %c0_i32 = arith.constant 0 : i32
    %c0_i32_0 = arith.constant 0 : i32
    %c0_i32_1 = arith.constant 0 : i32
    return %c0_i32, %c0_i32_0 : i32, i32
  }
  func.func @transform_3(%arg0: i32) -> (i32, i32) {
    %c0_i32 = arith.constant 0 : i32
    %c0_i32_0 = arith.constant 0 : i32
    return %arg0, %c0_i32 : i32, i32
  }
  func.func @transform_4(%arg0: i32) -> (i32, i32) {
    %c0_i32 = arith.constant 0 : i32
    %c0_i32_0 = arith.constant 0 : i32
    return %arg0, %c0_i32 : i32, i32
  }
}

module attributes {stable_mosaic.version = 11 : i64} {
  func.func @_gemm_kernel(%arg0: i32, %arg1: memref<32x512xbf16, #tpu.memory_space<vmem>>, %arg2: memref<512x128xbf16, #tpu.memory_space<vmem>>, %arg3: memref<1x128xf32, #tpu.memory_space<vmem>>, %arg4: memref<32x128xf32, #tpu.memory_space<vmem>>) attributes {dimension_semantics = [#tpu.dimension_semantics<parallel>], iteration_bounds = array<i64: 1>, scalar_prefetch = 0 : i64, scratch_operands = 0 : i64, tpu.core_type = #tpu.core_type<tc>, window_params = [{transform_indices = @transform_0, window_bounds = array<i64: 32, 512>}, {pipeline_mode = #tpu.pipeline_mode<synchronous>, transform_indices = @transform_1, window_bounds = array<i64: 512, 128>}, {pipeline_mode = #tpu.pipeline_mode<synchronous>, transform_indices = @transform_2, window_bounds = array<i64: 1, 128>}, {transform_indices = @transform_3, window_bounds = array<i64: 32, 128>}]} {
    %c0 = arith.constant 0 : index
    %c0_0 = arith.constant 0 : index
    %0 = vector.load %arg1[%c0, %c0_0] : memref<32x512xbf16, #tpu.memory_space<vmem>>, vector<32x512xbf16>
    %c0_1 = arith.constant 0 : index
    %c0_2 = arith.constant 0 : index
    %1 = vector.load %arg2[%c0_1, %c0_2] : memref<512x128xbf16, #tpu.memory_space<vmem>>, vector<512x128xbf16>
    %cst = arith.constant dense<0.000000e+00> : vector<32x128xf32>
    %2 = tpu.matmul %0, %1, %cst {dimension_numbers = #tpu.dot_dimension_numbers<[1], [0], [0], [1], [0, 0, 1, 1], [], []>} : vector<32x512xbf16>, vector<512x128xbf16>, vector<32x128xf32> -> vector<32x128xf32>
    %c0_3 = arith.constant 0 : index
    %c0_4 = arith.constant 0 : index
    %3 = vector.load %arg3[%c0_3, %c0_4] : memref<1x128xf32, #tpu.memory_space<vmem>>, vector<1x128xf32>
    %4 = vector.broadcast %3 : vector<1x128xf32> to vector<32x128xf32>
    %5 = arith.addf %2, %4 : vector<32x128xf32>
    %c0_5 = arith.constant 0 : index
    %c0_6 = arith.constant 0 : index
    %6 = vector.load %arg4[%c0_5, %c0_6] : memref<32x128xf32, #tpu.memory_space<vmem>>, vector<32x128xf32>
    tpu.vector_store %arg4[%c0_5, %c0_6], %5 {strides = array<i32>} : memref<32x128xf32, #tpu.memory_space<vmem>>, vector<32x128xf32>,
    return
  }
  func.func @transform_0(%arg0: i32) -> (i32, i32) {
    %c0_i32 = arith.constant 0 : i32
    %c0_i32_0 = arith.constant 0 : i32
    return %arg0, %c0_i32 : i32, i32
  }
  func.func @transform_1(%arg0: i32) -> (i32, i32) {
    %c0_i32 = arith.constant 0 : i32
    %c0_i32_0 = arith.constant 0 : i32
    %c0_i32_1 = arith.constant 0 : i32
    return %c0_i32, %c0_i32_0 : i32, i32
  }
  func.func @transform_2(%arg0: i32) -> (i32, i32) {
    %c0_i32 = arith.constant 0 : i32
    %c0_i32_0 = arith.constant 0 : i32
    %c0_i32_1 = arith.constant 0 : i32
    return %c0_i32, %c0_i32_0 : i32, i32
  }
  func.func @transform_3(%arg0: i32) -> (i32, i32) {
    %c0_i32 = arith.constant 0 : i32
    %c0_i32_0 = arith.constant 0 : i32
    return %arg0, %c0_i32 : i32, i32
  }
}

module attributes {stable_mosaic.version = 11 : i64} {
  func.func @_gemm_kernel(%arg0: i32, %arg1: memref<256x1152xbf16, #tpu.memory_space<vmem>>, %arg2: memref<1152x128xbf16, #tpu.memory_space<vmem>>, %arg3: memref<1x128xf32, #tpu.memory_space<vmem>>, %arg4: memref<256x128xf32, #tpu.memory_space<vmem>>) attributes {dimension_semantics = [#tpu.dimension_semantics<parallel>], iteration_bounds = array<i64: 2>, scalar_prefetch = 0 : i64, scratch_operands = 0 : i64, tpu.core_type = #tpu.core_type<tc>, window_params = [{transform_indices = @transform_0, window_bounds = array<i64: 256, 1152>}, {pipeline_mode = #tpu.pipeline_mode<synchronous>, transform_indices = @transform_1, window_bounds = array<i64: 1152, 128>}, {pipeline_mode = #tpu.pipeline_mode<synchronous>, transform_indices = @transform_2, window_bounds = array<i64: 1, 128>}, {transform_indices = @transform_3, window_bounds = array<i64: 256, 128>}]} {
    %c0 = arith.constant 0 : index
    %c0_0 = arith.constant 0 : index
    %0 = vector.load %arg1[%c0, %c0_0] : memref<256x1152xbf16, #tpu.memory_space<vmem>>, vector<256x1152xbf16>
    %c0_1 = arith.constant 0 : index
    %c0_2 = arith.constant 0 : index
    %1 = vector.load %arg2[%c0_1, %c0_2] : memref<1152x128xbf16, #tpu.memory_space<vmem>>, vector<1152x128xbf16>
    %cst = arith.constant dense<0.000000e+00> : vector<256x128xf32>
    %2 = tpu.matmul %0, %1, %cst {dimension_numbers = #tpu.dot_dimension_numbers<[1], [0], [0], [1], [0, 0, 1, 1], [], []>} : vector<256x1152xbf16>, vector<1152x128xbf16>, vector<256x128xf32> -> vector<256x128xf32>
    %c0_3 = arith.constant 0 : index
    %c0_4 = arith.constant 0 : index
    %3 = vector.load %arg3[%c0_3, %c0_4] : memref<1x128xf32, #tpu.memory_space<vmem>>, vector<1x128xf32>
    %4 = vector.broadcast %3 : vector<1x128xf32> to vector<256x128xf32>
    %5 = arith.addf %2, %4 : vector<256x128xf32>
    %c0_5 = arith.constant 0 : index
    %c0_6 = arith.constant 0 : index
    %6 = vector.load %arg4[%c0_5, %c0_6] : memref<256x128xf32, #tpu.memory_space<vmem>>, vector<256x128xf32>
    tpu.vector_store %arg4[%c0_5, %c0_6], %5 {strides = array<i32>} : memref<256x128xf32, #tpu.memory_space<vmem>>, vector<256x128xf32>,
    return
  }
  func.func @transform_0(%arg0: i32) -> (i32, i32) {
    %c0_i32 = arith.constant 0 : i32
    %c0_i32_0 = arith.constant 0 : i32
    return %arg0, %c0_i32 : i32, i32
  }
  func.func @transform_1(%arg0: i32) -> (i32, i32) {
    %c0_i32 = arith.constant 0 : i32
    %c0_i32_0 = arith.constant 0 : i32
    %c0_i32_1 = arith.constant 0 : i32
    return %c0_i32, %c0_i32_0 : i32, i32
  }
  func.func @transform_2(%arg0: i32) -> (i32, i32) {
    %c0_i32 = arith.constant 0 : i32
    %c0_i32_0 = arith.constant 0 : i32
    %c0_i32_1 = arith.constant 0 : i32
    return %c0_i32, %c0_i32_0 : i32, i32
  }
  func.func @transform_3(%arg0: i32) -> (i32, i32) {
    %c0_i32 = arith.constant 0 : i32
    %c0_i32_0 = arith.constant 0 : i32
    return %arg0, %c0_i32 : i32, i32
  }
}

module attributes {stable_mosaic.version = 11 : i64} {
  func.func @_gemm_kernel(%arg0: i32, %arg1: memref<128x1152xbf16, #tpu.memory_space<vmem>>, %arg2: memref<1152x128xbf16, #tpu.memory_space<vmem>>, %arg3: memref<1x128xf32, #tpu.memory_space<vmem>>, %arg4: memref<128x128xf32, #tpu.memory_space<vmem>>) attributes {dimension_semantics = [#tpu.dimension_semantics<parallel>], iteration_bounds = array<i64: 1>, scalar_prefetch = 0 : i64, scratch_operands = 0 : i64, tpu.core_type = #tpu.core_type<tc>, window_params = [{transform_indices = @transform_0, window_bounds = array<i64: 128, 1152>}, {pipeline_mode = #tpu.pipeline_mode<synchronous>, transform_indices = @transform_1, window_bounds = array<i64: 1152, 128>}, {pipeline_mode = #tpu.pipeline_mode<synchronous>, transform_indices = @transform_2, window_bounds = array<i64: 1, 128>}, {transform_indices = @transform_3, window_bounds = array<i64: 128, 128>}]} {
    %c0 = arith.constant 0 : index
    %c0_0 = arith.constant 0 : index
    %0 = vector.load %arg1[%c0, %c0_0] : memref<128x1152xbf16, #tpu.memory_space<vmem>>, vector<128x1152xbf16>
    %c0_1 = arith.constant 0 : index
    %c0_2 = arith.constant 0 : index
    %1 = vector.load %arg2[%c0_1, %c0_2] : memref<1152x128xbf16, #tpu.memory_space<vmem>>, vector<1152x128xbf16>
    %cst = arith.constant dense<0.000000e+00> : vector<128x128xf32>
    %2 = tpu.matmul %0, %1, %cst {dimension_numbers = #tpu.dot_dimension_numbers<[1], [0], [0], [1], [0, 0, 1, 1], [], []>} : vector<128x1152xbf16>, vector<1152x128xbf16>, vector<128x128xf32> -> vector<128x128xf32>
    %c0_3 = arith.constant 0 : index
    %c0_4 = arith.constant 0 : index
    %3 = vector.load %arg3[%c0_3, %c0_4] : memref<1x128xf32, #tpu.memory_space<vmem>>, vector<1x128xf32>
    %4 = vector.broadcast %3 : vector<1x128xf32> to vector<128x128xf32>
    %5 = arith.addf %2, %4 : vector<128x128xf32>
    %c0_5 = arith.constant 0 : index
    %c0_6 = arith.constant 0 : index
    %6 = vector.load %arg4[%c0_5, %c0_6] : memref<128x128xf32, #tpu.memory_space<vmem>>, vector<128x128xf32>
    tpu.vector_store %arg4[%c0_5, %c0_6], %5 {strides = array<i32>} : memref<128x128xf32, #tpu.memory_space<vmem>>, vector<128x128xf32>,
    return
  }
  func.func @transform_0(%arg0: i32) -> (i32, i32) {
    %c0_i32 = arith.constant 0 : i32
    %c0_i32_0 = arith.constant 0 : i32
    return %arg0, %c0_i32 : i32, i32
  }
  func.func @transform_1(%arg0: i32) -> (i32, i32) {
    %c0_i32 = arith.constant 0 : i32
    %c0_i32_0 = arith.constant 0 : i32
    %c0_i32_1 = arith.constant 0 : i32
    return %c0_i32, %c0_i32_0 : i32, i32
  }
  func.func @transform_2(%arg0: i32) -> (i32, i32) {
    %c0_i32 = arith.constant 0 : i32
    %c0_i32_0 = arith.constant 0 : i32
    %c0_i32_1 = arith.constant 0 : i32
    return %c0_i32, %c0_i32_0 : i32, i32
  }
  func.func @transform_3(%arg0: i32) -> (i32, i32) {
    %c0_i32 = arith.constant 0 : i32
    %c0_i32_0 = arith.constant 0 : i32
    return %arg0, %c0_i32 : i32, i32
  }
}

module attributes {stable_mosaic.version = 11 : i64} {
  func.func @_gemm_kernel(%arg0: i32, %arg1: memref<32x1152xbf16, #tpu.memory_space<vmem>>, %arg2: memref<1152x128xbf16, #tpu.memory_space<vmem>>, %arg3: memref<1x128xf32, #tpu.memory_space<vmem>>, %arg4: memref<32x128xf32, #tpu.memory_space<vmem>>) attributes {dimension_semantics = [#tpu.dimension_semantics<parallel>], iteration_bounds = array<i64: 1>, scalar_prefetch = 0 : i64, scratch_operands = 0 : i64, tpu.core_type = #tpu.core_type<tc>, window_params = [{transform_indices = @transform_0, window_bounds = array<i64: 32, 1152>}, {pipeline_mode = #tpu.pipeline_mode<synchronous>, transform_indices = @transform_1, window_bounds = array<i64: 1152, 128>}, {pipeline_mode = #tpu.pipeline_mode<synchronous>, transform_indices = @transform_2, window_bounds = array<i64: 1, 128>}, {transform_indices = @transform_3, window_bounds = array<i64: 32, 128>}]} {
    %c0 = arith.constant 0 : index
    %c0_0 = arith.constant 0 : index
    %0 = vector.load %arg1[%c0, %c0_0] : memref<32x1152xbf16, #tpu.memory_space<vmem>>, vector<32x1152xbf16>
    %c0_1 = arith.constant 0 : index
    %c0_2 = arith.constant 0 : index
    %1 = vector.load %arg2[%c0_1, %c0_2] : memref<1152x128xbf16, #tpu.memory_space<vmem>>, vector<1152x128xbf16>
    %cst = arith.constant dense<0.000000e+00> : vector<32x128xf32>
    %2 = tpu.matmul %0, %1, %cst {dimension_numbers = #tpu.dot_dimension_numbers<[1], [0], [0], [1], [0, 0, 1, 1], [], []>} : vector<32x1152xbf16>, vector<1152x128xbf16>, vector<32x128xf32> -> vector<32x128xf32>
    %c0_3 = arith.constant 0 : index
    %c0_4 = arith.constant 0 : index
    %3 = vector.load %arg3[%c0_3, %c0_4] : memref<1x128xf32, #tpu.memory_space<vmem>>, vector<1x128xf32>
    %4 = vector.broadcast %3 : vector<1x128xf32> to vector<32x128xf32>
    %5 = arith.addf %2, %4 : vector<32x128xf32>
    %c0_5 = arith.constant 0 : index
    %c0_6 = arith.constant 0 : index
    %6 = vector.load %arg4[%c0_5, %c0_6] : memref<32x128xf32, #tpu.memory_space<vmem>>, vector<32x128xf32>
    tpu.vector_store %arg4[%c0_5, %c0_6], %5 {strides = array<i32>} : memref<32x128xf32, #tpu.memory_space<vmem>>, vector<32x128xf32>,
    return
  }
  func.func @transform_0(%arg0: i32) -> (i32, i32) {
    %c0_i32 = arith.constant 0 : i32
    %c0_i32_0 = arith.constant 0 : i32
    return %arg0, %c0_i32 : i32, i32
  }
  func.func @transform_1(%arg0: i32) -> (i32, i32) {
    %c0_i32 = arith.constant 0 : i32
    %c0_i32_0 = arith.constant 0 : i32
    %c0_i32_1 = arith.constant 0 : i32
    return %c0_i32, %c0_i32_0 : i32, i32
  }
  func.func @transform_2(%arg0: i32) -> (i32, i32) {
    %c0_i32 = arith.constant 0 : i32
    %c0_i32_0 = arith.constant 0 : i32
    %c0_i32_1 = arith.constant 0 : i32
    return %c0_i32, %c0_i32_0 : i32, i32
  }
  func.func @transform_3(%arg0: i32) -> (i32, i32) {
    %c0_i32 = arith.constant 0 : i32
    %c0_i32_0 = arith.constant 0 : i32
    return %arg0, %c0_i32 : i32, i32
  }
}

module attributes {stable_mosaic.version = 11 : i64} {
  func.func @_gemm_kernel(%arg0: i32, %arg1: memref<8x4608xbf16, #tpu.memory_space<vmem>>, %arg2: memref<4608x128xbf16, #tpu.memory_space<vmem>>, %arg3: memref<1x128xf32, #tpu.memory_space<vmem>>, %arg4: memref<8x128xf32, #tpu.memory_space<vmem>>) attributes {dimension_semantics = [#tpu.dimension_semantics<parallel>], iteration_bounds = array<i64: 1>, scalar_prefetch = 0 : i64, scratch_operands = 0 : i64, tpu.core_type = #tpu.core_type<tc>, window_params = [{transform_indices = @transform_0, window_bounds = array<i64: 8, 4608>}, {pipeline_mode = #tpu.pipeline_mode<synchronous>, transform_indices = @transform_1, window_bounds = array<i64: 4608, 128>}, {pipeline_mode = #tpu.pipeline_mode<synchronous>, transform_indices = @transform_2, window_bounds = array<i64: 1, 128>}, {transform_indices = @transform_3, window_bounds = array<i64: 8, 128>}]} {
    %c0 = arith.constant 0 : index
    %c0_0 = arith.constant 0 : index
    %0 = vector.load %arg1[%c0, %c0_0] : memref<8x4608xbf16, #tpu.memory_space<vmem>>, vector<8x4608xbf16>
    %c0_1 = arith.constant 0 : index
    %c0_2 = arith.constant 0 : index
    %1 = vector.load %arg2[%c0_1, %c0_2] : memref<4608x128xbf16, #tpu.memory_space<vmem>>, vector<4608x128xbf16>
    %cst = arith.constant dense<0.000000e+00> : vector<8x128xf32>
    %2 = tpu.matmul %0, %1, %cst {dimension_numbers = #tpu.dot_dimension_numbers<[1], [0], [0], [1], [0, 0, 1, 1], [], []>} : vector<8x4608xbf16>, vector<4608x128xbf16>, vector<8x128xf32> -> vector<8x128xf32>
    %c0_3 = arith.constant 0 : index
    %c0_4 = arith.constant 0 : index
    %3 = vector.load %arg3[%c0_3, %c0_4] : memref<1x128xf32, #tpu.memory_space<vmem>>, vector<1x128xf32>
    %4 = vector.broadcast %3 : vector<1x128xf32> to vector<8x128xf32>
    %5 = arith.addf %2, %4 : vector<8x128xf32>
    %c0_5 = arith.constant 0 : index
    %c0_6 = arith.constant 0 : index
    %6 = vector.load %arg4[%c0_5, %c0_6] : memref<8x128xf32, #tpu.memory_space<vmem>>, vector<8x128xf32>
    tpu.vector_store %arg4[%c0_5, %c0_6], %5 {strides = array<i32>} : memref<8x128xf32, #tpu.memory_space<vmem>>, vector<8x128xf32>,
    return
  }
  func.func @transform_0(%arg0: i32) -> (i32, i32) {
    %c0_i32 = arith.constant 0 : i32
    %c0_i32_0 = arith.constant 0 : i32
    return %arg0, %c0_i32 : i32, i32
  }
  func.func @transform_1(%arg0: i32) -> (i32, i32) {
    %c0_i32 = arith.constant 0 : i32
    %c0_i32_0 = arith.constant 0 : i32
    %c0_i32_1 = arith.constant 0 : i32
    return %c0_i32, %c0_i32_0 : i32, i32
  }
  func.func @transform_2(%arg0: i32) -> (i32, i32) {
    %c0_i32 = arith.constant 0 : i32
    %c0_i32_0 = arith.constant 0 : i32
    %c0_i32_1 = arith.constant 0 : i32
    return %c0_i32, %c0_i32_0 : i32, i32
  }
  func.func @transform_3(%arg0: i32) -> (i32, i32) {
    %c0_i32 = arith.constant 0 : i32
    %c0_i32_0 = arith.constant 0 : i32
    return %arg0, %c0_i32 : i32, i32
  }
}

module attributes {stable_mosaic.version = 11 : i64} {
  func.func @_gemm_kernel(%arg0: i32, %arg1: memref<8x1152xbf16, #tpu.memory_space<vmem>>, %arg2: memref<1152x128xbf16, #tpu.memory_space<vmem>>, %arg3: memref<1x128xf32, #tpu.memory_space<vmem>>, %arg4: memref<8x128xf32, #tpu.memory_space<vmem>>) attributes {dimension_semantics = [#tpu.dimension_semantics<parallel>], iteration_bounds = array<i64: 1>, scalar_prefetch = 0 : i64, scratch_operands = 0 : i64, tpu.core_type = #tpu.core_type<tc>, window_params = [{transform_indices = @transform_0, window_bounds = array<i64: 8, 1152>}, {pipeline_mode = #tpu.pipeline_mode<synchronous>, transform_indices = @transform_1, window_bounds = array<i64: 1152, 128>}, {pipeline_mode = #tpu.pipeline_mode<synchronous>, transform_indices = @transform_2, window_bounds = array<i64: 1, 128>}, {transform_indices = @transform_3, window_bounds = array<i64: 8, 128>}]} {
    %c0 = arith.constant 0 : index
    %c0_0 = arith.constant 0 : index
    %0 = vector.load %arg1[%c0, %c0_0] : memref<8x1152xbf16, #tpu.memory_space<vmem>>, vector<8x1152xbf16>
    %cst = arith.constant 0.000000e+00 : bf16
    %1 = vector.broadcast %cst : bf16 to vector<8x1152xbf16>
    %2 = arith.maximumf %0, %1 : vector<8x1152xbf16>
    %c0_1 = arith.constant 0 : index
    %c0_2 = arith.constant 0 : index
    %3 = vector.load %arg2[%c0_1, %c0_2] : memref<1152x128xbf16, #tpu.memory_space<vmem>>, vector<1152x128xbf16>
    %cst_3 = arith.constant dense<0.000000e+00> : vector<8x128xf32>
    %4 = tpu.matmul %2, %3, %cst_3 {dimension_numbers = #tpu.dot_dimension_numbers<[1], [0], [0], [1], [0, 0, 1, 1], [], []>} : vector<8x1152xbf16>, vector<1152x128xbf16>, vector<8x128xf32> -> vector<8x128xf32>
    %c0_4 = arith.constant 0 : index
    %c0_5 = arith.constant 0 : index
    %5 = vector.load %arg3[%c0_4, %c0_5] : memref<1x128xf32, #tpu.memory_space<vmem>>, vector<1x128xf32>
    %6 = vector.broadcast %5 : vector<1x128xf32> to vector<8x128xf32>
    %7 = arith.addf %4, %6 : vector<8x128xf32>
    %c0_6 = arith.constant 0 : index
    %c0_7 = arith.constant 0 : index
    %8 = vector.load %arg4[%c0_6, %c0_7] : memref<8x128xf32, #tpu.memory_space<vmem>>, vector<8x128xf32>
    tpu.vector_store %arg4[%c0_6, %c0_7], %7 {strides = array<i32>} : memref<8x128xf32, #tpu.memory_space<vmem>>, vector<8x128xf32>,
    return
  }
  func.func @transform_0(%arg0: i32) -> (i32, i32) {
    %c0_i32 = arith.constant 0 : i32
    %c0_i32_0 = arith.constant 0 : i32
    return %arg0, %c0_i32 : i32, i32
  }
  func.func @transform_1(%arg0: i32) -> (i32, i32) {
    %c0_i32 = arith.constant 0 : i32
    %c0_i32_0 = arith.constant 0 : i32
    %c0_i32_1 = arith.constant 0 : i32
    return %c0_i32, %c0_i32_0 : i32, i32
  }
  func.func @transform_2(%arg0: i32) -> (i32, i32) {
    %c0_i32 = arith.constant 0 : i32
    %c0_i32_0 = arith.constant 0 : i32
    %c0_i32_1 = arith.constant 0 : i32
    return %c0_i32, %c0_i32_0 : i32, i32
  }
  func.func @transform_3(%arg0: i32) -> (i32, i32) {
    %c0_i32 = arith.constant 0 : i32
    %c0_i32_0 = arith.constant 0 : i32
    return %arg0, %c0_i32 : i32, i32
  }
}

</mosaic_0001>

<bundles_post_ra>
// kernel: fpn_forward.14
= control target key start
LH: loop header
LB: loop body
LE: loop exit
PB: predicated region body
PF: predicated region fallthrough
CT: control target
= control target key end

     0   :  { %s939_s15 = smov 0   ;;  %s1110_s0 = inlined_call_operand.vmem [shape: bf16[512,128], index: 0, kind: input, shape index: {}]   ;;  %s1111_s1 = inlined_call_operand.vmem [shape: bf16[128,128], index: 1, kind: input, shape index: {}]   ;;  %s1112_s2 = inlined_call_operand.vmem [shape: f32[1,128], index: 2, kind: input, shape index: {}]   ;;  %s1113_s3 = inlined_call_operand.vmem [shape: f32[512,128], index: 3, kind: input, shape index: {}]   ;;  %s1114_s4 = inlined_call_operand.vmem [shape: f32[512,128], index: 4, kind: output, shape index: {}]  }
   0x1 LB: > { %s748_s16 = sadd.s32 4294967295, %s912_s15   ;;  %p752_p0 = scmp.ge.s32.totalorder %s912_s15, 1  ;;  %s912_s15 = sphi %s939_s15, %s14_s15  }
   0x2   : > { %p174_p1 = scmp.lt.s32.totalorder %s912_s15, 3 }
   0x4   : > { %p175_p2 = pnand %p752_p0, %p174_p1 }
   0x5   : > { %s753_s19 = sshll.u32 (!%p175_p2), %s748_s16, 5 }
   0x6   : > { %178 = sbr.rel (%p175_p2) target bundleno = 272 (0x110), region = 36  ;;  %p206_p3 = scmp.lt.s32.totalorder (!%p175_p2), %s753_s19, 63 }
   0xb   : > { %v882_v0 = vld [vmem:[%s1111_s1 + $0x38] sm:$0xff]   ;;  %v883_v1 = vld [vmem:[%s1111_s1 + $0x30] sm:$0xff]   ;;  %s1116_s19 = smov (!%p206_p3, %s753_s19), 63  ;;  %v884_v2 = vld [vmem:[%s1111_s1 + $0x28] sm:$0xff]  }
   0xc   : > { %810 = vmatprep.subr.bf16.mxu0 %v882_v0  ;;  %858 = vmatprep.subr.bf16.mxu1 %v882_v0  ;;  %s754_s24 = sshll.u32 %s1116_s19, 2  ;;  %v885_v3 = vld [vmem:[%s1111_s1 + $0x20] sm:$0xff]   ;;  %v886_v6 = vld [vmem:[%s1111_s1 + $0x18] sm:$0xff]   ;;  %v887_v7 = vld [vmem:[%s1111_s1 + $0x10] sm:$0xff]   ;;  %s756_s12 = sshll.u32 %s1116_s19, 3 }
   0xd   : > { %811 = vmatpush3.bf16.msra.mxu0 %v882_v0  ;;  %866 = vmatpush3.bf16.msra.mxu1 %v882_v0  ;;  %s962_s27 = scalar_lea.vmem %s1110_s0, %s754_s24  ;;  %v888_v8 = vld [vmem:[%s1111_s1 + $0x8] sm:$0xff]   ;;  %v889_v9 = vld [vmem:[%s1111_s1] sm:$0xff]   ;;  %s999_s16 = scalar_lea.vmem %s1113_s3, %s756_s12 }
   0xe   : > { %812 = vmatprep.subr.bf16.mxu0 %v883_v1  ;;  %859 = vmatprep.subr.bf16.mxu1 %v883_v1  ;;  %v890_v4 = vld [vmem:[%s962_s27] sm:$0xff]   ;;  %v892_v10 = vld [vmem:[%s962_s27 + $0x8] sm:$0xff]   ;;  %v894_v12 = vld [vmem:[%s962_s27 + $0x10] sm:$0xff]   ;;  %s1013_s21 = scalar_lea.vmem %s1114_s4, %s756_s12 }
   0xf   : > { %v891_v5 = vld [vmem:[%s962_s27 + $0x40] sm:$0xff]   ;;  %826 = vmatprep.mubr.bf16.mxu0 %v890_v4  ;;  %v893_v11 = vld [vmem:[%s962_s27 + $0x48] sm:$0xff]   ;;  %v895_v13 = vld [vmem:[%s962_s27 + $0x50] sm:$0xff]  }
  0x10   : > { %842 = vmatprep.mubr.bf16.mxu1 %v891_v5  ;;  %v896_v14 = vld [vmem:[%s962_s27 + $0x18] sm:$0xff]   ;;  %v898_v16 = vld [vmem:[%s962_s27 + $0x20] sm:$0xff]   ;;  %v900_v18 = vld [vmem:[%s962_s27 + $0x28] sm:$0xff]  }
  0x11   : > { %813 = vmatpush3.bf16.msra.mxu0 %v883_v1  ;;  %867 = vmatpush3.bf16.msra.mxu1 %v883_v1  ;;  %v897_v15 = vld [vmem:[%s962_s27 + $0x58] sm:$0xff]   ;;  %v899_v17 = vld [vmem:[%s962_s27 + $0x60] sm:$0xff]   ;;  %v901_v19 = vld [vmem:[%s962_s27 + $0x68] sm:$0xff]  }
  0x12   : > { %814 = vmatprep.subr.bf16.mxu0 %v884_v2  ;;  %860 = vmatprep.subr.bf16.mxu1 %v884_v2  ;;  %v902_v20 = vld [vmem:[%s962_s27 + $0x30] sm:$0xff]   ;;  %v904_v22 = vld [vmem:[%s962_s27 + $0x38] sm:$0xff]   ;;  %v1004_v24 = vld [vmem:[%s1112_s2] ss:$0 sm:$0xff] }
  0x13   : > { %v903_v21 = vld [vmem:[%s962_s27 + $0x70] sm:$0xff]   ;;  %v905_v23 = vld [vmem:[%s962_s27 + $0x78] sm:$0xff]   ;;  %v584_v32 = vld [vmem:[%s999_s16] sm:$0xff] }
  0x14   : > { %v586_v26 = vld [vmem:[%s999_s16 + $0x10] sm:$0xff]  ;;  %v600_v34 = vld [vmem:[%s999_s16 + $0x80] sm:$0xff]  ;;  %v587_v40 = vld [vmem:[%s999_s16 + $0x18] sm:$0xff] }
  0x15   : > { %815 = vmatpush3.bf16.msra.mxu0 %v884_v2  ;;  %868 = vmatpush3.bf16.msra.mxu1 %v884_v2  ;;  %v602_v28 = vld [vmem:[%s999_s16 + $0x90] sm:$0xff]  ;;  %v603_v42 = vld [vmem:[%s999_s16 + $0x98] sm:$0xff]  ;;  %v585_v48 = vld [vmem:[%s999_s16 + $0x8] sm:$0xff] }
  0x16   : > { %816 = vmatprep.subr.bf16.mxu0 %v885_v3  ;;  %861 = vmatprep.subr.bf16.mxu1 %v885_v3  ;;  %v601_v50 = vld [vmem:[%s999_s16 + $0x88] sm:$0xff]  ;;  %v590_v56 = vld [vmem:[%s999_s16 + $0x30] sm:$0xff]  ;;  %v588_v0 = vld [vmem:[%s999_s16 + $0x20] sm:$0xff] }
  0x17   : > { %v606_v58 = vld [vmem:[%s999_s16 + $0xb0] sm:$0xff]  ;;  %v604_v2 = vld [vmem:[%s999_s16 + $0xa0] sm:$0xff] }
  0x19   : > { %817 = vmatpush3.bf16.msra.mxu0 %v885_v3  ;;  %869 = vmatpush3.bf16.msra.mxu1 %v885_v3 }
  0x1a   : > { %818 = vmatprep.subr.bf16.mxu0 %v886_v6  ;;  %862 = vmatprep.subr.bf16.mxu1 %v886_v6 }
  0x1d   : > { %819 = vmatpush3.bf16.msra.mxu0 %v886_v6  ;;  %870 = vmatpush3.bf16.msra.mxu1 %v886_v6 }
  0x1e   : > { %820 = vmatprep.subr.bf16.mxu0 %v887_v7  ;;  %863 = vmatprep.subr.bf16.mxu1 %v887_v7 }
  0x21   : > { %821 = vmatpush3.bf16.msra.mxu0 %v887_v7  ;;  %871 = vmatpush3.bf16.msra.mxu1 %v887_v7 }
  0x22   : > { %822 = vmatprep.subr.bf16.mxu0 %v888_v8  ;;  %864 = vmatprep.subr.bf16.mxu1 %v888_v8 }
  0x25   : > { %823 = vmatpush3.bf16.msra.mxu0 %v888_v8  ;;  %872 = vmatpush3.bf16.msra.mxu1 %v888_v8  ;;  %v591_v8 = vld [vmem:[%s999_s16 + $0x38] sm:$0xff] }
  0x26   : > { %824 = vmatprep.subr.bf16.mxu0 %v889_v9  ;;  %865 = vmatprep.subr.bf16.mxu1 %v889_v9 }
  0x29   : > { %825 = vmatpush3.bf16.msra.mxu0 %v889_v9  ;;  %873 = vmatpush3.bf16.msra.mxu1 %v889_v9 }
  0x2c   : > { %827 = vmatmul.mubr.bf16.vlgmr.msra.gmra.mxu0 %v892_v10  ;;  %843 = vmatmul.mubr.bf16.vlgmr.msra.gmra.mxu1 %v893_v11  ;;  %v607_v10 = vld [vmem:[%s999_s16 + $0xb8] sm:$0xff] }
  0x2d   : > { %830 = vmatprep.mubr.bf16.mxu0 %v894_v12  ;;  %846 = vmatprep.mubr.bf16.mxu1 %v895_v13 }
  0x34   : > { %831 = vmatmul.mubr.bf16.gmra.mxu0 %v896_v14  ;;  %847 = vmatmul.mubr.bf16.gmra.mxu1 %v897_v15 }
  0x35   : > { %834 = vmatprep.mubr.bf16.mxu0 %v898_v16  ;;  %850 = vmatprep.mubr.bf16.mxu1 %v899_v17  ;;  %v589_v16 = vld [vmem:[%s999_s16 + $0x28] sm:$0xff] }
  0x3c   : > { %835 = vmatmul.mubr.bf16.gmra.mxu0 %v900_v18  ;;  %851 = vmatmul.mubr.bf16.gmra.mxu1 %v901_v19  ;;  %v605_v18 = vld [vmem:[%s999_s16 + $0xa8] sm:$0xff] }
  0x3d   : > { %838 = vmatprep.mubr.bf16.mxu0 %v902_v20  ;;  %854 = vmatprep.mubr.bf16.mxu1 %v903_v21 }
  0x44   : > { %839 = vmatmul.mubr.bf16.gmra.mxu0 %v904_v22  ;;  %855 = vmatmul.mubr.bf16.gmra.mxu1 %v905_v23 }
  0xec   : > { %v828_v25 = vpop.f32.mrf.mxu0  ;;  %v844_v27 = vpop.f32.mrf.mxu1 }
  0xed   : > { %v466_v29 = vadd.f32 %v828_v25, %v1004_v24  ;;  %v530_v30 = vadd.f32 %v844_v27, %v1004_v24  ;;  %v594_v25 = vld [vmem:[%s999_s16 + $0x50] sm:$0xff] }
  0xee   : > { %v457_v31 = vpop.f32.mrf.mxu0  ;;  %v521_v33 = vpop.f32.mrf.mxu1  ;;  %v610_v27 = vld [vmem:[%s999_s16 + $0xd0] sm:$0xff] }
  0xef   : > { %v618_v35 = vadd.f32 %v586_v26, %v466_v29  ;;  %v634_v36 = vadd.f32 %v602_v28, %v530_v30  ;;  %v458_v37 = vadd.f32 %v1004_v24, %v457_v31  ;;  %v522_v38 = vadd.f32 %v1004_v24, %v521_v33  ;;  %v592_v33 = vld [vmem:[%s999_s16 + $0x40] sm:$0xff] }
  0xf0   : > { %v829_v39 = vpop.f32.mrf.mxu0  ;;  %v845_v41 = vpop.f32.mrf.mxu1 }
  0xf1   : > { %650 = vst [vmem:[%s1013_s21 + $0x10] sm:$0xff] %v618_v35  ;;  %666 = vst [vmem:[%s1013_s21 + $0x90] sm:$0xff] %v634_v36  ;;  %v616_v43 = vadd.f32 %v584_v32, %v458_v37  ;;  %v632_v44 = vadd.f32 %v600_v34, %v522_v38  ;;  %v469_v45 = vadd.f32 %v829_v39, %v1004_v24  ;;  %v608_v35 = vld [vmem:[%s999_s16 + $0xc0] sm:$0xff] }
  0xf2   : > { %v533_v46 = vadd.f32 %v845_v41, %v1004_v24  ;;  %v460_v47 = vpop.f32.mrf.mxu0  ;;  %v524_v49 = vpop.f32.mrf.mxu1  ;;  %v595_v41 = vld [vmem:[%s999_s16 + $0x58] sm:$0xff] }
  0xf3   : > { %648 = vst [vmem:[%s1013_s21] sm:$0xff] %v616_v43  ;;  %664 = vst [vmem:[%s1013_s21 + $0x80] sm:$0xff] %v632_v44  ;;  %v619_v51 = vadd.f32 %v587_v40, %v469_v45  ;;  %v461_v53 = vadd.f32 %v1004_v24, %v460_v47  ;;  %v525_v54 = vadd.f32 %v1004_v24, %v524_v49  ;;  %v611_v43 = vld [vmem:[%s999_s16 + $0xd8] sm:$0xff]  ;;  %v593_v49 = vld [vmem:[%s999_s16 + $0x48] sm:$0xff] }
  0xf4   : > { %v635_v52 = vadd.f32 %v603_v42, %v533_v46  ;;  %v832_v55 = vpop.f32.mrf.mxu0  ;;  %v848_v57 = vpop.f32.mrf.mxu1 }
  0xf5   : > { %651 = vst [vmem:[%s1013_s21 + $0x18] sm:$0xff] %v619_v51  ;;  %v617_v59 = vadd.f32 %v585_v48, %v461_v53  ;;  %v633_v60 = vadd.f32 %v601_v50, %v525_v54  ;;  %v482_v61 = vadd.f32 %v832_v55, %v1004_v24  ;;  %v546_v62 = vadd.f32 %v848_v57, %v1004_v24  ;;  %v609_v51 = vld [vmem:[%s999_s16 + $0xc8] sm:$0xff]  ;;  %v598_v57 = vld [vmem:[%s999_s16 + $0x70] sm:$0xff] }
  0xf6   : > { %667 = vst [vmem:[%s1013_s21 + $0x98] sm:$0xff] %v635_v52  ;;  %v473_v63 = vpop.f32.mrf.mxu0  ;;  %v537_v1 = vpop.f32.mrf.mxu1 }
  0xf7   : > { %649 = vst [vmem:[%s1013_s21 + $0x8] sm:$0xff] %v617_v59  ;;  %665 = vst [vmem:[%s1013_s21 + $0x88] sm:$0xff] %v633_v60  ;;  %v622_v3 = vadd.f32 %v590_v56, %v482_v61  ;;  %v638_v4 = vadd.f32 %v606_v58, %v546_v62  ;;  %v474_v5 = vadd.f32 %v1004_v24, %v473_v63  ;;  %v614_v59 = vld [vmem:[%s999_s16 + $0xf0] sm:$0xff] }
  0xf8   : > { %v538_v6 = vadd.f32 %v1004_v24, %v537_v1  ;;  %v833_v7 = vpop.f32.mrf.mxu0  ;;  %v849_v9 = vpop.f32.mrf.mxu1  ;;  %v596_v1 = vld [vmem:[%s999_s16 + $0x60] sm:$0xff] }
  0xf9   : > { %654 = vst [vmem:[%s1013_s21 + $0x30] sm:$0xff] %v622_v3  ;;  %670 = vst [vmem:[%s1013_s21 + $0xb0] sm:$0xff] %v638_v4  ;;  %v620_v11 = vadd.f32 %v588_v0, %v474_v5  ;;  %v485_v13 = vadd.f32 %v833_v7, %v1004_v24  ;;  %v549_v14 = vadd.f32 %v849_v9, %v1004_v24  ;;  %v612_v3 = vld [vmem:[%s999_s16 + $0xe0] sm:$0xff]  ;;  %v599_v9 = vld [vmem:[%s999_s16 + $0x78] sm:$0xff] }
  0xfa   : > { %v636_v12 = vadd.f32 %v604_v2, %v538_v6  ;;  %v476_v15 = vpop.f32.mrf.mxu0  ;;  %v540_v17 = vpop.f32.mrf.mxu1 }
  0xfb   : > { %652 = vst [vmem:[%s1013_s21 + $0x20] sm:$0xff] %v620_v11  ;;  %v623_v19 = vadd.f32 %v591_v8, %v485_v13  ;;  %v639_v20 = vadd.f32 %v607_v10, %v549_v14  ;;  %v477_v21 = vadd.f32 %v1004_v24, %v476_v15  ;;  %v541_v22 = vadd.f32 %v1004_v24, %v540_v17  ;;  %v615_v11 = vld [vmem:[%s999_s16 + $0xf8] sm:$0xff]  ;;  %v597_v17 = vld [vmem:[%s999_s16 + $0x68] sm:$0xff] }
  0xfc   : > { %668 = vst [vmem:[%s1013_s21 + $0xa0] sm:$0xff] %v636_v12  ;;  %v836_v23 = vpop.f32.mrf.mxu0  ;;  %v852_v26 = vpop.f32.mrf.mxu1 }
  0xfd   : > { %655 = vst [vmem:[%s1013_s21 + $0x38] sm:$0xff] %v623_v19  ;;  %671 = vst [vmem:[%s1013_s21 + $0xb8] sm:$0xff] %v639_v20  ;;  %v621_v28 = vadd.f32 %v589_v16, %v477_v21  ;;  %v637_v29 = vadd.f32 %v605_v18, %v541_v22  ;;  %v498_v30 = vadd.f32 %v836_v23, %v1004_v24  ;;  %v613_v19 = vld [vmem:[%s999_s16 + $0xe8] sm:$0xff] }
  0xfe   : > { %v562_v31 = vadd.f32 %v852_v26, %v1004_v24  ;;  %v489_v32 = vpop.f32.mrf.mxu0  ;;  %v553_v34 = vpop.f32.mrf.mxu1 }
  0xff   : > { %653 = vst [vmem:[%s1013_s21 + $0x28] sm:$0xff] %v621_v28  ;;  %669 = vst [vmem:[%s1013_s21 + $0xa8] sm:$0xff] %v637_v29  ;;  %v626_v36 = vadd.f32 %v594_v25, %v498_v30  ;;  %v490_v38 = vadd.f32 %v1004_v24, %v489_v32  ;;  %v554_v39 = vadd.f32 %v1004_v24, %v553_v34 }
 0x100   : > { %v642_v37 = vadd.f32 %v610_v27, %v562_v31  ;;  %v837_v40 = vpop.f32.mrf.mxu0  ;;  %v853_v42 = vpop.f32.mrf.mxu1 }
 0x101   : > { %658 = vst [vmem:[%s1013_s21 + $0x50] sm:$0xff] %v626_v36  ;;  %v624_v44 = vadd.f32 %v592_v33, %v490_v38  ;;  %v640_v45 = vadd.f32 %v608_v35, %v554_v39  ;;  %v501_v46 = vadd.f32 %v837_v40, %v1004_v24  ;;  %v565_v47 = vadd.f32 %v853_v42, %v1004_v24 }
 0x102   : > { %674 = vst [vmem:[%s1013_s21 + $0xd0] sm:$0xff] %v642_v37  ;;  %v492_v48 = vpop.f32.mrf.mxu0  ;;  %v556_v50 = vpop.f32.mrf.mxu1 }
 0x103   : > { %656 = vst [vmem:[%s1013_s21 + $0x40] sm:$0xff] %v624_v44  ;;  %672 = vst [vmem:[%s1013_s21 + $0xc0] sm:$0xff] %v640_v45  ;;  %v627_v52 = vadd.f32 %v595_v41, %v501_v46  ;;  %v643_v53 = vadd.f32 %v611_v43, %v565_v47  ;;  %v493_v54 = vadd.f32 %v1004_v24, %v492_v48 }
 0x104   : > { %v557_v55 = vadd.f32 %v1004_v24, %v556_v50  ;;  %v840_v56 = vpop.f32.mrf.mxu0  ;;  %v856_v58 = vpop.f32.mrf.mxu1 }
 0x105   : > { %659 = vst [vmem:[%s1013_s21 + $0x58] sm:$0xff] %v627_v52  ;;  %675 = vst [vmem:[%s1013_s21 + $0xd8] sm:$0xff] %v643_v53  ;;  %v625_v60 = vadd.f32 %v593_v49, %v493_v54  ;;  %v514_v62 = vadd.f32 %v840_v56, %v1004_v24  ;;  %v578_v63 = vadd.f32 %v856_v58, %v1004_v24 }
 0x106   : > { %v641_v61 = vadd.f32 %v609_v51, %v557_v55  ;;  %v505_v0 = vpop.f32.mrf.mxu0  ;;  %v569_v2 = vpop.f32.mrf.mxu1 }
 0x107   : > { %657 = vst [vmem:[%s1013_s21 + $0x48] sm:$0xff] %v625_v60  ;;  %v630_v4 = vadd.f32 %v598_v57, %v514_v62  ;;  %v646_v5 = vadd.f32 %v614_v59, %v578_v63  ;;  %v506_v6 = vadd.f32 %v1004_v24, %v505_v0  ;;  %v570_v7 = vadd.f32 %v1004_v24, %v569_v2 }
 0x108   : > { %673 = vst [vmem:[%s1013_s21 + $0xc8] sm:$0xff] %v641_v61  ;;  %v841_v8 = vpop.f32.mrf.mxu0  ;;  %v857_v10 = vpop.f32.mrf.mxu1 }
 0x109   : > { %662 = vst [vmem:[%s1013_s21 + $0x70] sm:$0xff] %v630_v4  ;;  %678 = vst [vmem:[%s1013_s21 + $0xf0] sm:$0xff] %v646_v5  ;;  %v628_v12 = vadd.f32 %v596_v1, %v506_v6  ;;  %v644_v13 = vadd.f32 %v612_v3, %v570_v7  ;;  %v517_v14 = vadd.f32 %v841_v8, %v1004_v24 }
 0x10a   : > { %v581_v15 = vadd.f32 %v857_v10, %v1004_v24  ;;  %v508_v16 = vpop.f32.mrf.mxu0  ;;  %v572_v18 = vpop.f32.mrf.mxu1 }
 0x10b   : > { %660 = vst [vmem:[%s1013_s21 + $0x60] sm:$0xff] %v628_v12  ;;  %676 = vst [vmem:[%s1013_s21 + $0xe0] sm:$0xff] %v644_v13  ;;  %v631_v20 = vadd.f32 %v599_v9, %v517_v14  ;;  %v509_v22 = vadd.f32 %v1004_v24, %v508_v16  ;;  %v573_v23 = vadd.f32 %v1004_v24, %v572_v18 }
 0x10c   : > { %v647_v21 = vadd.f32 %v615_v11, %v581_v15 }
 0x10d   : > { %663 = vst [vmem:[%s1013_s21 + $0x78] sm:$0xff] %v631_v20  ;;  %v629_v25 = vadd.f32 %v597_v17, %v509_v22  ;;  %v645_v26 = vadd.f32 %v613_v19, %v573_v23 }
 0x10e   : > { %679 = vst [vmem:[%s1013_s21 + $0xf8] sm:$0xff] %v647_v21 }
 0x10f   : > { %661 = vst [vmem:[%s1013_s21 + $0x68] sm:$0xff] %v629_v25  ;;  %677 = vst [vmem:[%s1013_s21 + $0xe8] sm:$0xff] %v645_v26 }
 0x110 PF: > { %s14_s15 = sadd.s32 1, %s912_s15  }
 0x111   : > { %p11_p4 = scmp.ge.s32.totalorder %s14_s15, 4  }
 0x113   :  { %13 = sbr.rel (!%p11_p4) target bundleno = 1 (0x1), region = 69 }

// kernel: fpn_forward.12
= control target key start
LH: loop header
LB: loop body
LE: loop exit
PB: predicated region body
PF: predicated region fallthrough
CT: control target
= control target key end

     0   :  { %s789_s1 = inlined_call_operand.vmem [shape: bf16[256,128], index: 1, kind: input, shape index: {}]   ;;  %s790_s0 = inlined_call_operand.vmem [shape: bf16[128,256], index: 0, kind: input, shape index: {}]   ;;  %s791_s2 = inlined_call_operand.vmem [shape: f32[1,128], index: 2, kind: input, shape index: {}]   ;;  %s792_s3 = inlined_call_operand.vmem [shape: f32[128,128], index: 3, kind: input, shape index: {}]   ;;  %s793_s4 = inlined_call_operand.vmem [shape: f32[128,128], index: 4, kind: output, shape index: {}]  }
   0x1   :  { %v511_v0 = vld [vmem:[%s789_s1 + $0x78] sm:$0xff]   ;;  %v513_v2 = vld [vmem:[%s789_s1 + $0x70] sm:$0xff]   ;;  %v515_v4 = vld [vmem:[%s789_s1 + $0x68] sm:$0xff]  }
   0x2   :  { %v512_v1 = vld [vmem:[%s789_s1 + $0x38] sm:$0xff]   ;;  %431 = vmatprep.subr.bf16.mxu0 %v511_v0  ;;  %495 = vmatprep.subr.bf16.mxu1 %v511_v0  ;;  %v514_v3 = vld [vmem:[%s789_s1 + $0x30] sm:$0xff]   ;;  %v516_v5 = vld [vmem:[%s789_s1 + $0x28] sm:$0xff]  }
   0x3   :  { %432 = vmatpush3.bf16.msra.mxu0 %v512_v1  ;;  %503 = vmatpush3.bf16.msra.mxu1 %v512_v1  ;;  %v517_v6 = vld [vmem:[%s789_s1 + $0x60] sm:$0xff]   ;;  %v519_v8 = vld [vmem:[%s789_s1 + $0x58] sm:$0xff]   ;;  %v521_v10 = vld [vmem:[%s789_s1 + $0x50] sm:$0xff]  }
   0x4   :  { %433 = vmatprep.subr.bf16.mxu0 %v513_v2  ;;  %496 = vmatprep.subr.bf16.mxu1 %v513_v2  ;;  %v518_v7 = vld [vmem:[%s789_s1 + $0x20] sm:$0xff]   ;;  %v520_v9 = vld [vmem:[%s789_s1 + $0x18] sm:$0xff]   ;;  %v522_v13 = vld [vmem:[%s789_s1 + $0x10] sm:$0xff]  }
   0x5   :  { %v529_v11 = vld [vmem:[%s790_s0 + $0x4] ss:$8 sps:$4 sm:$0xff]   ;;  %v527_v18 = vld [vmem:[%s790_s0] ss:$8 sps:$4 sm:$0xff]   ;;  %v533_v20 = vld [vmem:[%s790_s0 + $0x14] ss:$8 sps:$4 sm:$0xff]  }
   0x6   :  { %v532_v12 = vld [vmem:[%s790_s0 + $0x44] ss:$8 sps:$4 sm:$0xff]   ;;  %281 = vmatprep.mubr.bf16.mxu0 %v529_v11  ;;  %v530_v19 = vld [vmem:[%s790_s0 + $0x40] ss:$8 sps:$4 sm:$0xff]   ;;  %v535_v21 = vld [vmem:[%s790_s0 + $0x54] ss:$8 sps:$4 sm:$0xff]  }
   0x7   :  { %434 = vmatpush3.bf16.msra.mxu0 %v514_v3  ;;  %504 = vmatpush3.bf16.msra.mxu1 %v514_v3  ;;  %v523_v14 = vld [vmem:[%s789_s1 + $0x48] sm:$0xff]   ;;  %v525_v16 = vld [vmem:[%s789_s1 + $0x40] sm:$0xff]   ;;  %v537_v22 = vld [vmem:[%s790_s0 + $0x10] ss:$8 sps:$4 sm:$0xff]  }
   0x8   :  { %435 = vmatprep.subr.bf16.mxu0 %v515_v4  ;;  %497 = vmatprep.subr.bf16.mxu1 %v515_v4  ;;  %v524_v15 = vld [vmem:[%s789_s1 + $0x8] sm:$0xff]   ;;  %v526_v17 = vld [vmem:[%s789_s1] sm:$0xff]   ;;  %v538_v23 = vld [vmem:[%s790_s0 + $0x50] ss:$8 sps:$4 sm:$0xff]  }
   0x9   :  { %313 = vmatprep.mubr.bf16.mxu1 %v532_v12  ;;  %v539_v24 = vld [vmem:[%s790_s0 + $0x24] ss:$8 sps:$4 sm:$0xff]   ;;  %v543_v26 = vld [vmem:[%s790_s0 + $0x20] ss:$8 sps:$4 sm:$0xff]   ;;  %v545_v28 = vld [vmem:[%s790_s0 + $0x34] ss:$8 sps:$4 sm:$0xff]  }
   0xa   :  { %v541_v25 = vld [vmem:[%s790_s0 + $0x64] ss:$8 sps:$4 sm:$0xff]   ;;  %v544_v27 = vld [vmem:[%s790_s0 + $0x60] ss:$8 sps:$4 sm:$0xff]   ;;  %v547_v29 = vld [vmem:[%s790_s0 + $0x74] ss:$8 sps:$4 sm:$0xff]  }
   0xb   :  { %436 = vmatpush3.bf16.msra.mxu0 %v516_v5  ;;  %505 = vmatpush3.bf16.msra.mxu1 %v516_v5  ;;  %v549_v30 = vld [vmem:[%s790_s0 + $0x30] ss:$8 sps:$4 sm:$0xff]   ;;  %v675_v34 = vld [vmem:[%s791_s2] ss:$0 sm:$0xff]  ;;  %v347_v51 = vld [vmem:[%s792_s3 + $0x8] sm:$0xff] }
   0xc   :  { %437 = vmatprep.subr.bf16.mxu0 %v517_v6  ;;  %498 = vmatprep.subr.bf16.mxu1 %v517_v6  ;;  %v550_v31 = vld [vmem:[%s790_s0 + $0x70] ss:$8 sps:$4 sm:$0xff]   ;;  %v346_v39 = vld [vmem:[%s792_s3] sm:$0xff]  ;;  %v355_v52 = vld [vmem:[%s792_s3 + $0x48] sm:$0xff] }
   0xd   :  { %v354_v40 = vld [vmem:[%s792_s3 + $0x40] sm:$0xff]  ;;  %v348_v63 = vld [vmem:[%s792_s3 + $0x10] sm:$0xff]  ;;  %v349_v11 = vld [vmem:[%s792_s3 + $0x18] sm:$0xff] }
   0xe   :  { %v356_v0 = vld [vmem:[%s792_s3 + $0x50] sm:$0xff]  ;;  %v357_v12 = vld [vmem:[%s792_s3 + $0x58] sm:$0xff] }
   0xf   :  { %438 = vmatpush3.bf16.msra.mxu0 %v518_v7  ;;  %506 = vmatpush3.bf16.msra.mxu1 %v518_v7 }
  0x10   :  { %439 = vmatprep.subr.bf16.mxu0 %v519_v8  ;;  %499 = vmatprep.subr.bf16.mxu1 %v519_v8 }
  0x13   :  { %440 = vmatpush3.bf16.msra.mxu0 %v520_v9  ;;  %507 = vmatpush3.bf16.msra.mxu1 %v520_v9 }
  0x14   :  { %441 = vmatprep.subr.bf16.mxu0 %v521_v10  ;;  %500 = vmatprep.subr.bf16.mxu1 %v521_v10 }
  0x17   :  { %442 = vmatpush3.bf16.msra.mxu0 %v522_v13  ;;  %508 = vmatpush3.bf16.msra.mxu1 %v522_v13 }
  0x18   :  { %443 = vmatprep.subr.bf16.mxu0 %v523_v14  ;;  %501 = vmatprep.subr.bf16.mxu1 %v523_v14 }
  0x1b   :  { %444 = vmatpush3.bf16.msra.mxu0 %v524_v15  ;;  %509 = vmatpush3.bf16.msra.mxu1 %v524_v15 }
  0x1c   :  { %445 = vmatprep.subr.bf16.mxu0 %v525_v16  ;;  %502 = vmatprep.subr.bf16.mxu1 %v525_v16 }
  0x1f   :  { %446 = vmatpush3.bf16.msra.mxu0 %v526_v17  ;;  %510 = vmatpush3.bf16.msra.mxu1 %v526_v17 }
  0x22   :  { %282 = vmatmul.mubr.bf16.vlgmr.msra.gmra.mxu0 %v527_v18  ;;  %314 = vmatmul.mubr.bf16.vlgmr.msra.gmra.mxu1 %v530_v19 }
  0x23   :  { %289 = vmatprep.mubr.bf16.mxu0 %v533_v20  ;;  %321 = vmatprep.mubr.bf16.mxu1 %v535_v21 }
  0x2a   :  { %290 = vmatmul.mubr.bf16.gmra.mxu0 %v537_v22  ;;  %322 = vmatmul.mubr.bf16.gmra.mxu1 %v538_v23  ;;  %v350_v23 = vld [vmem:[%s792_s3 + $0x20] sm:$0xff] }
  0x2b   :  { %297 = vmatprep.mubr.bf16.mxu0 %v539_v24  ;;  %329 = vmatprep.mubr.bf16.mxu1 %v541_v25  ;;  %v358_v24 = vld [vmem:[%s792_s3 + $0x60] sm:$0xff] }
  0x32   :  { %298 = vmatmul.mubr.bf16.gmra.mxu0 %v543_v26  ;;  %330 = vmatmul.mubr.bf16.gmra.mxu1 %v544_v27 }
  0x33   :  { %305 = vmatprep.mubr.bf16.mxu0 %v545_v28  ;;  %337 = vmatprep.mubr.bf16.mxu1 %v547_v29 }
  0x3a   :  { %306 = vmatmul.mubr.bf16.gmra.mxu0 %v549_v30  ;;  %338 = vmatmul.mubr.bf16.gmra.mxu1 %v550_v31 }
  0xe2   :  { %v447_v32 = vpop.f32.mrf.mxu0  ;;  %v471_v33 = vpop.f32.mrf.mxu1 }
  0xe4   :  { %v448_v35 = vpop.f32.mrf.mxu0  ;;  %v472_v36 = vpop.f32.mrf.mxu1 }
  0xe5   :  { %v449_v37 = vadd.f32 %v448_v35, %v447_v32  ;;  %v473_v38 = vadd.f32 %v472_v36, %v471_v33  ;;  %v351_v36 = vld [vmem:[%s792_s3 + $0x28] sm:$0xff] }
  0xe6   :  { %v450_v41 = vpop.f32.mrf.mxu0  ;;  %v474_v42 = vpop.f32.mrf.mxu1 }
  0xe7   :  { %v284_v43 = vadd.f32 %v449_v37, %v675_v34  ;;  %v316_v44 = vadd.f32 %v473_v38, %v675_v34  ;;  %v359_v37 = vld [vmem:[%s792_s3 + $0x68] sm:$0xff] }
  0xe8   :  { %v451_v45 = vpop.f32.mrf.mxu0  ;;  %v475_v46 = vpop.f32.mrf.mxu1 }
  0xe9   :  { %v362_v47 = vadd.f32 %v346_v39, %v284_v43  ;;  %v370_v48 = vadd.f32 %v354_v40, %v316_v44  ;;  %v452_v49 = vadd.f32 %v451_v45, %v450_v41  ;;  %v476_v50 = vadd.f32 %v475_v46, %v474_v42 }
  0xea   :  { %v453_v53 = vpop.f32.mrf.mxu0  ;;  %v477_v54 = vpop.f32.mrf.mxu1 }
  0xeb   :  { %378 = vst [vmem:[%s793_s4] sm:$0xff] %v362_v47  ;;  %386 = vst [vmem:[%s793_s4 + $0x40] sm:$0xff] %v370_v48  ;;  %v287_v55 = vadd.f32 %v452_v49, %v675_v34  ;;  %v319_v56 = vadd.f32 %v476_v50, %v675_v34  ;;  %v352_v48 = vld [vmem:[%s792_s3 + $0x30] sm:$0xff] }
  0xec   :  { %v454_v57 = vpop.f32.mrf.mxu0  ;;  %v478_v58 = vpop.f32.mrf.mxu1  ;;  %v360_v49 = vld [vmem:[%s792_s3 + $0x70] sm:$0xff] }
  0xed   :  { %v363_v59 = vadd.f32 %v347_v51, %v287_v55  ;;  %v371_v60 = vadd.f32 %v355_v52, %v319_v56  ;;  %v455_v61 = vadd.f32 %v454_v57, %v453_v53  ;;  %v479_v62 = vadd.f32 %v478_v58, %v477_v54 }
  0xee   :  { %v456_v1 = vpop.f32.mrf.mxu0  ;;  %v480_v2 = vpop.f32.mrf.mxu1 }
  0xef   :  { %379 = vst [vmem:[%s793_s4 + $0x8] sm:$0xff] %v363_v59  ;;  %387 = vst [vmem:[%s793_s4 + $0x48] sm:$0xff] %v371_v60  ;;  %v292_v3 = vadd.f32 %v455_v61, %v675_v34  ;;  %v324_v4 = vadd.f32 %v479_v62, %v675_v34  ;;  %v353_v60 = vld [vmem:[%s792_s3 + $0x38] sm:$0xff] }
  0xf0   :  { %v457_v5 = vpop.f32.mrf.mxu0  ;;  %v481_v6 = vpop.f32.mrf.mxu1  ;;  %v361_v61 = vld [vmem:[%s792_s3 + $0x78] sm:$0xff] }
  0xf1   :  { %v364_v7 = vadd.f32 %v348_v63, %v292_v3  ;;  %v372_v8 = vadd.f32 %v356_v0, %v324_v4  ;;  %v458_v9 = vadd.f32 %v457_v5, %v456_v1  ;;  %v482_v10 = vadd.f32 %v481_v6, %v480_v2 }
  0xf2   :  { %v459_v13 = vpop.f32.mrf.mxu0  ;;  %v483_v14 = vpop.f32.mrf.mxu1 }
  0xf3   :  { %380 = vst [vmem:[%s793_s4 + $0x10] sm:$0xff] %v364_v7  ;;  %388 = vst [vmem:[%s793_s4 + $0x50] sm:$0xff] %v372_v8  ;;  %v295_v15 = vadd.f32 %v458_v9, %v675_v34  ;;  %v327_v16 = vadd.f32 %v482_v10, %v675_v34 }
  0xf4   :  { %v460_v17 = vpop.f32.mrf.mxu0  ;;  %v484_v18 = vpop.f32.mrf.mxu1 }
  0xf5   :  { %v365_v19 = vadd.f32 %v349_v11, %v295_v15  ;;  %v373_v20 = vadd.f32 %v357_v12, %v327_v16  ;;  %v461_v21 = vadd.f32 %v460_v17, %v459_v13  ;;  %v485_v22 = vadd.f32 %v484_v18, %v483_v14 }
  0xf6   :  { %v462_v25 = vpop.f32.mrf.mxu0  ;;  %v486_v26 = vpop.f32.mrf.mxu1 }
  0xf7   :  { %381 = vst [vmem:[%s793_s4 + $0x18] sm:$0xff] %v365_v19  ;;  %389 = vst [vmem:[%s793_s4 + $0x58] sm:$0xff] %v373_v20  ;;  %v300_v27 = vadd.f32 %v461_v21, %v675_v34  ;;  %v332_v28 = vadd.f32 %v485_v22, %v675_v34 }
  0xf8   :  { %v463_v29 = vpop.f32.mrf.mxu0  ;;  %v487_v30 = vpop.f32.mrf.mxu1 }
  0xf9   :  { %v366_v31 = vadd.f32 %v350_v23, %v300_v27  ;;  %v374_v32 = vadd.f32 %v358_v24, %v332_v28  ;;  %v464_v33 = vadd.f32 %v463_v29, %v462_v25  ;;  %v488_v35 = vadd.f32 %v487_v30, %v486_v26 }
  0xfa   :  { %v465_v38 = vpop.f32.mrf.mxu0  ;;  %v489_v39 = vpop.f32.mrf.mxu1 }
  0xfb   :  { %382 = vst [vmem:[%s793_s4 + $0x20] sm:$0xff] %v366_v31  ;;  %390 = vst [vmem:[%s793_s4 + $0x60] sm:$0xff] %v374_v32  ;;  %v303_v40 = vadd.f32 %v464_v33, %v675_v34  ;;  %v335_v41 = vadd.f32 %v488_v35, %v675_v34 }
  0xfc   :  { %v466_v42 = vpop.f32.mrf.mxu0  ;;  %v490_v43 = vpop.f32.mrf.mxu1 }
  0xfd   :  { %v367_v44 = vadd.f32 %v351_v36, %v303_v40  ;;  %v375_v45 = vadd.f32 %v359_v37, %v335_v41  ;;  %v467_v46 = vadd.f32 %v466_v42, %v465_v38  ;;  %v491_v47 = vadd.f32 %v490_v43, %v489_v39 }
  0xfe   :  { %v468_v50 = vpop.f32.mrf.mxu0  ;;  %v492_v51 = vpop.f32.mrf.mxu1 }
  0xff   :  { %383 = vst [vmem:[%s793_s4 + $0x28] sm:$0xff] %v367_v44  ;;  %391 = vst [vmem:[%s793_s4 + $0x68] sm:$0xff] %v375_v45  ;;  %v308_v52 = vadd.f32 %v467_v46, %v675_v34  ;;  %v340_v53 = vadd.f32 %v491_v47, %v675_v34 }
 0x100   :  { %v469_v54 = vpop.f32.mrf.mxu0  ;;  %v493_v55 = vpop.f32.mrf.mxu1 }
 0x101   :  { %v368_v56 = vadd.f32 %v352_v48, %v308_v52  ;;  %v376_v57 = vadd.f32 %v360_v49, %v340_v53  ;;  %v470_v58 = vadd.f32 %v469_v54, %v468_v50  ;;  %v494_v59 = vadd.f32 %v493_v55, %v492_v51 }
 0x103   :  { %384 = vst [vmem:[%s793_s4 + $0x30] sm:$0xff] %v368_v56  ;;  %392 = vst [vmem:[%s793_s4 + $0x70] sm:$0xff] %v376_v57  ;;  %v311_v62 = vadd.f32 %v470_v58, %v675_v34  ;;  %v343_v63 = vadd.f32 %v494_v59, %v675_v34 }
 0x105   :  { %v369_v0 = vadd.f32 %v353_v60, %v311_v62  ;;  %v377_v1 = vadd.f32 %v361_v61, %v343_v63 }
 0x107   :  { %385 = vst [vmem:[%s793_s4 + $0x38] sm:$0xff] %v369_v0  ;;  %393 = vst [vmem:[%s793_s4 + $0x78] sm:$0xff] %v377_v1 }

// kernel: fpn_forward.10
= control target key start
LH: loop header
LB: loop body
LE: loop exit
PB: predicated region body
PF: predicated region fallthrough
CT: control target
= control target key end

     0   :  { %s728_s1 = inlined_call_operand.vmem [shape: bf16[512,128], index: 1, kind: input, shape index: {}]   ;;  %s729_s0 = inlined_call_operand.vmem [shape: bf16[32,512], index: 0, kind: input, shape index: {}]   ;;  %s730_s2 = inlined_call_operand.vmem [shape: f32[1,128], index: 2, kind: input, shape index: {}]   ;;  %s731_s3 = inlined_call_operand.vmem [shape: f32[32,128], index: 3, kind: output, shape index: {}]  }
   0x1   :  { %v529_v0 = vld [vmem:[%s728_s1 + $0x78] sm:$0xff]   ;;  %v533_v4 = vld [vmem:[%s728_s1 + $0x70] sm:$0xff]   ;;  %v537_v8 = vld [vmem:[%s728_s1 + $0x68] sm:$0xff]  }
   0x2   :  { %v530_v1 = vld [vmem:[%s728_s1 + $0xf8] sm:$0xff]   ;;  %473 = vmatprep.subr.bf16.mxu0 %v529_v0  ;;  %v534_v5 = vld [vmem:[%s728_s1 + $0xf0] sm:$0xff]   ;;  %v538_v9 = vld [vmem:[%s728_s1 + $0xe8] sm:$0xff]  }
   0x3   :  { %v531_v2 = vld [vmem:[%s728_s1 + $0x38] sm:$0xff]   ;;  %501 = vmatprep.subr.bf16.mxu1 %v530_v1  ;;  %v535_v6 = vld [vmem:[%s728_s1 + $0x30] sm:$0xff]   ;;  %v539_v10 = vld [vmem:[%s728_s1 + $0x28] sm:$0xff]  }
   0x4   :  { %v532_v3 = vld [vmem:[%s728_s1 + $0xb8] sm:$0xff]   ;;  %474 = vmatpush3.bf16.msra.mxu0 %v531_v2  ;;  %v536_v7 = vld [vmem:[%s728_s1 + $0xb0] sm:$0xff]   ;;  %v540_v11 = vld [vmem:[%s728_s1 + $0xa8] sm:$0xff]  }
   0x5   :  { %502 = vmatpush3.bf16.msra.mxu1 %v532_v3  ;;  %475 = vmatprep.subr.bf16.mxu0 %v533_v4  ;;  %v541_v12 = vld [vmem:[%s728_s1 + $0x60] sm:$0xff]   ;;  %v545_v16 = vld [vmem:[%s728_s1 + $0x58] sm:$0xff]   ;;  %v549_v20 = vld [vmem:[%s728_s1 + $0x50] sm:$0xff]  }
   0x6   :  { %503 = vmatprep.subr.bf16.mxu1 %v534_v5  ;;  %v542_v13 = vld [vmem:[%s728_s1 + $0xe0] sm:$0xff]   ;;  %v546_v17 = vld [vmem:[%s728_s1 + $0xd8] sm:$0xff]   ;;  %v550_v21 = vld [vmem:[%s728_s1 + $0xd0] sm:$0xff]  }
   0x7   :  { %v543_v14 = vld [vmem:[%s728_s1 + $0x20] sm:$0xff]   ;;  %v547_v18 = vld [vmem:[%s728_s1 + $0x18] sm:$0xff]   ;;  %v551_v22 = vld [vmem:[%s728_s1 + $0x10] sm:$0xff]  }
   0x8   :  { %476 = vmatpush3.bf16.msra.mxu0 %v535_v6  ;;  %v544_v15 = vld [vmem:[%s728_s1 + $0xa0] sm:$0xff]   ;;  %v548_v19 = vld [vmem:[%s728_s1 + $0x98] sm:$0xff]   ;;  %v552_v23 = vld [vmem:[%s728_s1 + $0x90] sm:$0xff]  }
   0x9   :  { %504 = vmatpush3.bf16.msra.mxu1 %v536_v7  ;;  %477 = vmatprep.subr.bf16.mxu0 %v537_v8  ;;  %v553_v24 = vld [vmem:[%s728_s1 + $0x48] sm:$0xff]   ;;  %v557_v28 = vld [vmem:[%s728_s1 + $0x40] sm:$0xff]  }
   0xa   :  { %505 = vmatprep.subr.bf16.mxu1 %v538_v9  ;;  %v554_v25 = vld [vmem:[%s728_s1 + $0xc8] sm:$0xff]   ;;  %v558_v29 = vld [vmem:[%s728_s1 + $0xc0] sm:$0xff]  }
   0xb   :  { %v555_v26 = vld [vmem:[%s728_s1 + $0x8] sm:$0xff]   ;;  %v559_v30 = vld [vmem:[%s728_s1] sm:$0xff]  }
   0xc   :  { %478 = vmatpush3.bf16.msra.mxu0 %v539_v10  ;;  %v556_v27 = vld [vmem:[%s728_s1 + $0x88] sm:$0xff]   ;;  %v560_v31 = vld [vmem:[%s728_s1 + $0x80] sm:$0xff]  }
   0xd   :  { %506 = vmatpush3.bf16.msra.mxu1 %v540_v11  ;;  %479 = vmatprep.subr.bf16.mxu0 %v541_v12  ;;  %v561_v32 = vld [vmem:[%s729_s0] ss:$16 sps:$4 sm:$0xff]   ;;  %v563_v33 = vld [vmem:[%s729_s0 + $0x4] ss:$16 sps:$4 sm:$0xff]   ;;  %v564_v34 = vld [vmem:[%s729_s0 + $0x8] ss:$16 sps:$4 sm:$0xff]  }
   0xe   :  { %507 = vmatprep.subr.bf16.mxu1 %v542_v13  ;;  %v566_v35 = vld [vmem:[%s729_s0 + $0xc] ss:$16 sps:$4 sm:$0xff]   ;;  %358 = vmatprep.mubr.bf16.mxu0 %v563_v33  ;;  %v567_v36 = vld [vmem:[%s729_s0 + $0x24] ss:$16 sps:$4 sm:$0xff]   ;;  %v571_v38 = vld [vmem:[%s729_s0 + $0x20] ss:$16 sps:$4 sm:$0xff]  }
   0xf   :  { %407 = vmatprep.mubr.bf16.mxu1 %v566_v35  ;;  %v569_v37 = vld [vmem:[%s729_s0 + $0x2c] ss:$16 sps:$4 sm:$0xff]   ;;  %v572_v39 = vld [vmem:[%s729_s0 + $0x28] ss:$16 sps:$4 sm:$0xff]   ;;  %v432_v42 = vld [vmem:[%s730_s2] ss:$0 sm:$0xff] }
  0x10   :  { %480 = vmatpush3.bf16.msra.mxu0 %v543_v14 }
  0x11   :  { %508 = vmatpush3.bf16.msra.mxu1 %v544_v15  ;;  %481 = vmatprep.subr.bf16.mxu0 %v545_v16 }
  0x12   :  { %509 = vmatprep.subr.bf16.mxu1 %v546_v17 }
  0x14   :  { %482 = vmatpush3.bf16.msra.mxu0 %v547_v18 }
  0x15   :  { %510 = vmatpush3.bf16.msra.mxu1 %v548_v19  ;;  %483 = vmatprep.subr.bf16.mxu0 %v549_v20 }
  0x16   :  { %511 = vmatprep.subr.bf16.mxu1 %v550_v21 }
  0x18   :  { %484 = vmatpush3.bf16.msra.mxu0 %v551_v22 }
  0x19   :  { %512 = vmatpush3.bf16.msra.mxu1 %v552_v23  ;;  %485 = vmatprep.subr.bf16.mxu0 %v553_v24 }
  0x1a   :  { %513 = vmatprep.subr.bf16.mxu1 %v554_v25 }
  0x1c   :  { %486 = vmatpush3.bf16.msra.mxu0 %v555_v26 }
  0x1d   :  { %514 = vmatpush3.bf16.msra.mxu1 %v556_v27  ;;  %487 = vmatprep.subr.bf16.mxu0 %v557_v28 }
  0x1e   :  { %515 = vmatprep.subr.bf16.mxu1 %v558_v29 }
  0x20   :  { %488 = vmatpush3.bf16.msra.mxu0 %v559_v30 }
  0x21   :  { %516 = vmatpush3.bf16.msra.mxu1 %v560_v31 }
  0x23   :  { %359 = vmatmul.mubr.bf16.vlgmr.msra.gmra.mxu0 %v561_v32 }
  0x24   :  { %408 = vmatmul.mubr.bf16.vlgmr.msra.gmra.mxu1 %v564_v34  ;;  %366 = vmatprep.mubr.bf16.mxu0 %v567_v36 }
  0x25   :  { %415 = vmatprep.mubr.bf16.mxu1 %v569_v37 }
  0x2b   :  { %367 = vmatmul.mubr.bf16.gmra.mxu0 %v571_v38 }
  0x2c   :  { %416 = vmatmul.mubr.bf16.gmra.mxu1 %v572_v39 }
  0xe3   :  { %v489_v40 = vpop.f32.mrf.mxu0 }
  0xe4   :  { %v517_v41 = vpop.f32.mrf.mxu1 }
  0xe5   :  { %v490_v43 = vpop.f32.mrf.mxu0 }
  0xe6   :  { %v491_v44 = vadd.f32 %v490_v43, %v489_v40  ;;  %v518_v45 = vpop.f32.mrf.mxu1 }
  0xe7   :  { %v492_v46 = vpop.f32.mrf.mxu0  ;;  %v519_v48 = vadd.f32 %v518_v45, %v517_v41 }
  0xe8   :  { %v361_v47 = vadd.f32 %v491_v44, %v432_v42  ;;  %v520_v49 = vpop.f32.mrf.mxu1 }
  0xe9   :  { %v493_v50 = vpop.f32.mrf.mxu0 }
  0xea   :  { %v410_v51 = vadd.f32 %v519_v48, %v361_v47  ;;  %v494_v52 = vadd.f32 %v493_v50, %v492_v46  ;;  %v521_v53 = vpop.f32.mrf.mxu1 }
  0xeb   :  { %v495_v54 = vpop.f32.mrf.mxu0  ;;  %v522_v56 = vadd.f32 %v521_v53, %v520_v49 }
  0xec   :  { %424 = vst [vmem:[%s731_s3] sm:$0xff] %v410_v51  ;;  %v364_v55 = vadd.f32 %v494_v52, %v432_v42  ;;  %v523_v57 = vpop.f32.mrf.mxu1 }
  0xed   :  { %v496_v58 = vpop.f32.mrf.mxu0 }
  0xee   :  { %v413_v59 = vadd.f32 %v522_v56, %v364_v55  ;;  %v497_v60 = vadd.f32 %v496_v58, %v495_v54  ;;  %v524_v61 = vpop.f32.mrf.mxu1 }
  0xef   :  { %v498_v62 = vpop.f32.mrf.mxu0  ;;  %v525_v0 = vadd.f32 %v524_v61, %v523_v57 }
  0xf0   :  { %425 = vst [vmem:[%s731_s3 + $0x8] sm:$0xff] %v413_v59  ;;  %v369_v63 = vadd.f32 %v497_v60, %v432_v42  ;;  %v526_v1 = vpop.f32.mrf.mxu1 }
  0xf1   :  { %v499_v2 = vpop.f32.mrf.mxu0 }
  0xf2   :  { %v418_v3 = vadd.f32 %v525_v0, %v369_v63  ;;  %v500_v4 = vadd.f32 %v499_v2, %v498_v62  ;;  %v527_v5 = vpop.f32.mrf.mxu1 }
  0xf3   :  { %v528_v7 = vadd.f32 %v527_v5, %v526_v1 }
  0xf4   :  { %426 = vst [vmem:[%s731_s3 + $0x10] sm:$0xff] %v418_v3  ;;  %v372_v6 = vadd.f32 %v500_v4, %v432_v42 }
  0xf6   :  { %v421_v8 = vadd.f32 %v528_v7, %v372_v6 }
  0xf8   :  { %427 = vst [vmem:[%s731_s3 + $0x18] sm:$0xff] %v421_v8 }

// kernel: fpn_forward.15
= control target key start
LH: loop header
LB: loop body
LE: loop exit
PB: predicated region body
PF: predicated region fallthrough
CT: control target
= control target key end

     0   :  { %s3631_s12 = smov 0   ;;  %s4481_s0 = inlined_call_operand.vmem [shape: bf16[512,1152], index: 0, kind: input, shape index: {}]   ;;  %s4482_s1 = inlined_call_operand.vmem [shape: bf16[1152,128], index: 1, kind: input, shape index: {}]   ;;  %s4483_s2 = inlined_call_operand.vmem [shape: f32[1,128], index: 2, kind: input, shape index: {}]   ;;  %s4484_s3 = inlined_call_operand.vmem [shape: f32[512,128], index: 3, kind: output, shape index: {}]  }
   0x1 LB: > { %s2550_s13 = sadd.s32 4294967295, %s3609_s12   ;;  %p2554_p0 = scmp.ge.s32.totalorder %s3609_s12, 1  ;;  %s3609_s12 = sphi %s3631_s12, %s13_s12  }
   0x2   : > { %p139_p1 = scmp.lt.s32.totalorder %s3609_s12, 3 }
   0x4   : > { %p140_p2 = pnand %p2554_p0, %p139_p1 }
   0x6   : > { %143 = sbr.rel (%p140_p2) target bundleno = 530 (0x212), region = 32 }
   0xb   : > { %v3323_v0 = vld [vmem:[%s4482_s1 + $0x78] sm:$0xff]   ;;  %s2555_s16 = sshll.u32 %s2550_s13, 5  ;;  %v3325_v2 = vld [vmem:[%s4482_s1 + $0x70] sm:$0xff]   ;;  %v3327_v4 = vld [vmem:[%s4482_s1 + $0x68] sm:$0xff]  }
   0xc   : > { %v3324_v1 = vld [vmem:[%s4482_s1 + $0x38] sm:$0xff]   ;;  %2778 = vmatprep.subr.bf16.mxu0 %v3323_v0  ;;  %3298 = vmatprep.subr.bf16.mxu1 %v3323_v0  ;;  %p165_p3 = scmp.lt.s32.totalorder %s2555_s16, 63  ;;  %v3326_v3 = vld [vmem:[%s4482_s1 + $0x30] sm:$0xff]   ;;  %v3328_v5 = vld [vmem:[%s4482_s1 + $0x28] sm:$0xff]  }
   0xd   : > { %2779 = vmatpush3.bf16.msra.mxu0 %v3324_v1  ;;  %3306 = vmatpush3.bf16.msra.mxu1 %v3324_v1  ;;  %v3329_v6 = vld [vmem:[%s4482_s1 + $0x60] sm:$0xff]   ;;  %v3331_v8 = vld [vmem:[%s4482_s1 + $0x58] sm:$0xff]   ;;  %v3333_v10 = vld [vmem:[%s4482_s1 + $0x50] sm:$0xff]  }
   0xe   : > { %2780 = vmatprep.subr.bf16.mxu0 %v3325_v2  ;;  %3299 = vmatprep.subr.bf16.mxu1 %v3325_v2  ;;  %s4506_s16 = smov (!%p165_p3, %s2555_s16), 63  ;;  %v3330_v7 = vld [vmem:[%s4482_s1 + $0x20] sm:$0xff]   ;;  %v3332_v9 = vld [vmem:[%s4482_s1 + $0x18] sm:$0xff]   ;;  %v3334_v13 = vld [vmem:[%s4482_s1 + $0x10] sm:$0xff]  }
   0xf   : > { %s3314_s29 = smul.u32 36, %s4506_s16  ;;  %v3335_v14 = vld [vmem:[%s4482_s1 + $0x48] sm:$0xff]   ;;  %v3337_v16 = vld [vmem:[%s4482_s1 + $0x40] sm:$0xff]   ;;  %v3345_v18 = vld [vmem:[%s4482_s1 + $0xf8] sm:$0xff]  }
  0x10   : > { %v3336_v15 = vld [vmem:[%s4482_s1 + $0x8] sm:$0xff]   ;;  %v3338_v17 = vld [vmem:[%s4482_s1] sm:$0xff]   ;;  %v3348_v21 = vld [vmem:[%s4482_s1 + $0x178] sm:$0xff]  }
  0x11   : > { %2781 = vmatpush3.bf16.msra.mxu0 %v3326_v3  ;;  %3307 = vmatpush3.bf16.msra.mxu1 %v3326_v3  ;;  %s3672_s9 = scalar_lea.vmem %s4481_s0, %s3314_s29  ;;  %v3346_v22 = vld [vmem:[%s4482_s1 + $0xb8] sm:$0xff]   ;;  %v3347_v23 = vld [vmem:[%s4482_s1 + $0xf0] sm:$0xff]   ;;  %v3357_v31 = vld [vmem:[%s4482_s1 + $0xe8] sm:$0xff]  }
  0x12   : > { %2782 = vmatprep.subr.bf16.mxu0 %v3327_v4  ;;  %3300 = vmatprep.subr.bf16.mxu1 %v3327_v4  ;;  %v3341_v11 = vld [vmem:[%s3672_s9 + $0x4] ss:$36 sps:$4 sm:$0xff]   ;;  %v3350_v24 = vld [vmem:[%s4482_s1 + $0x138] sm:$0xff]   ;;  %v3351_v25 = vld [vmem:[%s3672_s9 + $0x4c] ss:$36 sps:$4 sm:$0xff]  }
  0x13   : > { %v3344_v12 = vld [vmem:[%s3672_s9 + $0x364] ss:$36 sps:$4 sm:$0xff]   ;;  %1689 = vmatprep.mubr.bf16.mxu0 %v3341_v11  ;;  %v3353_v26 = vld [vmem:[%s3672_s9 + $0x3ac] ss:$36 sps:$4 sm:$0xff]   ;;  %v3361_v35 = vld [vmem:[%s3672_s9 + $0x94] ss:$36 sps:$4 sm:$0xff]  }
  0x14   : > { %1785 = vmatprep.mubr.bf16.mxu1 %v3344_v12  ;;  %v3339_v19 = vld [vmem:[%s3672_s9] ss:$36 sps:$4 sm:$0xff]   ;;  %v3349_v27 = vld [vmem:[%s4482_s1 + $0xb0] sm:$0xff]   ;;  %v3355_v29 = vld [vmem:[%s3672_s9 + $0x48] ss:$36 sps:$4 sm:$0xff]  }
  0x15   : > { %2783 = vmatpush3.bf16.msra.mxu0 %v3328_v5  ;;  %3308 = vmatpush3.bf16.msra.mxu1 %v3328_v5  ;;  %v3342_v20 = vld [vmem:[%s3672_s9 + $0x360] ss:$36 sps:$4 sm:$0xff]   ;;  %v3368_v28 = vld [vmem:[%s4482_s1 + $0x170] sm:$0xff]   ;;  %v3356_v30 = vld [vmem:[%s3672_s9 + $0x3a8] ss:$36 sps:$4 sm:$0xff]  }
  0x16   : > { %2784 = vmatprep.subr.bf16.mxu0 %v3329_v6  ;;  %3301 = vmatprep.subr.bf16.mxu1 %v3329_v6  ;;  %v3358_v32 = vld [vmem:[%s4482_s1 + $0xa8] sm:$0xff]   ;;  %v3370_v33 = vld [vmem:[%s4482_s1 + $0x130] sm:$0xff]   ;;  %v3359_v34 = vld [vmem:[%s4482_s1 + $0xe0] sm:$0xff]  }
  0x17   : > { %v3363_v36 = vld [vmem:[%s3672_s9 + $0x3f4] ss:$36 sps:$4 sm:$0xff]   ;;  %v3360_v37 = vld [vmem:[%s4482_s1 + $0xa0] sm:$0xff]   ;;  %v3382_v43 = vld [vmem:[%s4482_s1 + $0x168] sm:$0xff]  }
  0x18   : > { %v3365_v38 = vld [vmem:[%s3672_s9 + $0x90] ss:$36 sps:$4 sm:$0xff]   ;;  %v3367_v40 = vld [vmem:[%s4482_s1 + $0xd8] sm:$0xff]   ;;  %v3384_v46 = vld [vmem:[%s4482_s1 + $0x128] sm:$0xff]  }
  0x19   : > { %2785 = vmatpush3.bf16.msra.mxu0 %v3330_v7  ;;  %3309 = vmatpush3.bf16.msra.mxu1 %v3330_v7  ;;  %v3366_v39 = vld [vmem:[%s3672_s9 + $0x3f0] ss:$36 sps:$4 sm:$0xff]   ;;  %v3369_v41 = vld [vmem:[%s4482_s1 + $0x98] sm:$0xff]   ;;  %v3379_v48 = vld [vmem:[%s4482_s1 + $0xc8] sm:$0xff]  }
  0x1a   : > { %2786 = vmatprep.subr.bf16.mxu0 %v3331_v8  ;;  %3302 = vmatprep.subr.bf16.mxu1 %v3331_v8  ;;  %v3371_v42 = vld [vmem:[%s4482_s1 + $0xd0] sm:$0xff]   ;;  %v3373_v44 = vld [vmem:[%s3672_s9 + $0xdc] ss:$36 sps:$4 sm:$0xff]   ;;  %v3380_v51 = vld [vmem:[%s4482_s1 + $0x88] sm:$0xff]  }
  0x1b   : > { %v3375_v45 = vld [vmem:[%s3672_s9 + $0x43c] ss:$36 sps:$4 sm:$0xff]   ;;  %v3372_v47 = vld [vmem:[%s4482_s1 + $0x90] sm:$0xff]   ;;  %v3385_v53 = vld [vmem:[%s3672_s9 + $0x124] ss:$36 sps:$4 sm:$0xff]  }
  0x1c   : > { %v3377_v49 = vld [vmem:[%s3672_s9 + $0xd8] ss:$36 sps:$4 sm:$0xff]   ;;  %v3381_v52 = vld [vmem:[%s4482_s1 + $0xc0] sm:$0xff]   ;;  %v3389_v54 = vld [vmem:[%s3672_s9 + $0xc] ss:$36 sps:$4 sm:$0xff]  }
  0x1d   : > { %2787 = vmatpush3.bf16.msra.mxu0 %v3332_v9  ;;  %3310 = vmatpush3.bf16.msra.mxu1 %v3332_v9  ;;  %v3378_v50 = vld [vmem:[%s3672_s9 + $0x438] ss:$36 sps:$4 sm:$0xff]   ;;  %v3399_v55 = vld [vmem:[%s4482_s1 + $0x160] sm:$0xff]   ;;  %v3387_v58 = vld [vmem:[%s3672_s9 + $0x8] ss:$36 sps:$4 sm:$0xff]  }
  0x1e   : > { %2788 = vmatprep.subr.bf16.mxu0 %v3333_v10  ;;  %3303 = vmatprep.subr.bf16.mxu1 %v3333_v10  ;;  %v3400_v56 = vld [vmem:[%s4482_s1 + $0x120] sm:$0xff]   ;;  %v3391_v60 = vld [vmem:[%s4482_s1 + $0x1f8] sm:$0xff]   ;;  %v3393_v62 = vld [vmem:[%s3672_s9 + $0x16c] ss:$36 sps:$4 sm:$0xff]  }
  0x1f   : > { %v3383_v57 = vld [vmem:[%s4482_s1 + $0x80] sm:$0xff]   ;;  %v3392_v61 = vld [vmem:[%s4482_s1 + $0x1b8] sm:$0xff]   ;;  %v3407_v1 = vld [vmem:[%s4482_s1 + $0x1f0] sm:$0xff]  }
  0x20   : > { %v3390_v59 = vld [vmem:[%s3672_s9 + $0x120] ss:$36 sps:$4 sm:$0xff]   ;;  %v3395_v63 = vld [vmem:[%s3672_s9 + $0x54] ss:$36 sps:$4 sm:$0xff]   ;;  %v3397_v4 = vld [vmem:[%s3672_s9 + $0x168] ss:$36 sps:$4 sm:$0xff]  }
  0x21   : > { %2789 = vmatpush3.bf16.msra.mxu0 %v3334_v13  ;;  %3311 = vmatpush3.bf16.msra.mxu1 %v3334_v13  ;;  %v3409_v0 = vld [vmem:[%s4482_s1 + $0x158] sm:$0xff]   ;;  %v3408_v3 = vld [vmem:[%s4482_s1 + $0x1b0] sm:$0xff]   ;;  %v3424_v9 = vld [vmem:[%s4482_s1 + $0x1e8] sm:$0xff]  }
  0x22   : > { %2790 = vmatprep.subr.bf16.mxu0 %v3335_v14  ;;  %3304 = vmatprep.subr.bf16.mxu1 %v3335_v14  ;;  %v3410_v2 = vld [vmem:[%s4482_s1 + $0x118] sm:$0xff]   ;;  %v3398_v5 = vld [vmem:[%s3672_s9 + $0x50] ss:$36 sps:$4 sm:$0xff]   ;;  %v3426_v11 = vld [vmem:[%s4482_s1 + $0x1a8] sm:$0xff]  }
  0x23   : > { %v3401_v6 = vld [vmem:[%s3672_s9 + $0x1b4] ss:$36 sps:$4 sm:$0xff]   ;;  %v3403_v7 = vld [vmem:[%s3672_s9 + $0x9c] ss:$36 sps:$4 sm:$0xff]  }
  0x24   : > { %v3423_v8 = vld [vmem:[%s4482_s1 + $0x150] sm:$0xff]   ;;  %v3406_v13 = vld [vmem:[%s3672_s9 + $0x98] ss:$36 sps:$4 sm:$0xff]  }
  0x25   : > { %2791 = vmatpush3.bf16.msra.mxu0 %v3336_v15  ;;  %3312 = vmatpush3.bf16.msra.mxu1 %v3336_v15  ;;  %v3425_v10 = vld [vmem:[%s4482_s1 + $0x110] sm:$0xff]   ;;  %v3411_v14 = vld [vmem:[%s3672_s9 + $0x1fc] ss:$36 sps:$4 sm:$0xff]   ;;  %v3433_v15 = vld [vmem:[%s4482_s1 + $0x148] sm:$0xff]  }
  0x26   : > { %2792 = vmatprep.subr.bf16.mxu0 %v3337_v16  ;;  %3305 = vmatprep.subr.bf16.mxu1 %v3337_v16  ;;  %v3405_v12 = vld [vmem:[%s3672_s9 + $0x1b0] ss:$36 sps:$4 sm:$0xff]   ;;  %v3434_v16 = vld [vmem:[%s4482_s1 + $0x108] sm:$0xff]  }
  0x29   : > { %2793 = vmatpush3.bf16.msra.mxu0 %v3338_v17  ;;  %3313 = vmatpush3.bf16.msra.mxu1 %v3338_v17  ;;  %v3413_v17 = vld [vmem:[%s3672_s9 + $0xe4] ss:$36 sps:$4 sm:$0xff]  }
  0x2a   : > { %2890 = vmatprep.subr.bf16.mxu1 %v3345_v18  ;;  %3002 = vmatprep.subr.bf16.mxu0 %v3348_v21  ;;  %v3441_v18 = vld [vmem:[%s4482_s1 + $0x1e0] sm:$0xff]  }
  0x2b   : > { %v3416_v21 = vld [vmem:[%s3672_s9 + $0xe0] ss:$36 sps:$4 sm:$0xff]  }
  0x2c   : > { %1690 = vmatmul.mubr.bf16.vlgmr.msra.gmra.mxu0 %v3339_v19  ;;  %1786 = vmatmul.mubr.bf16.vlgmr.msra.gmra.mxu1 %v3342_v20  ;;  %v3442_v19 = vld [vmem:[%s4482_s1 + $0x1a0] sm:$0xff]   ;;  %v3415_v20 = vld [vmem:[%s3672_s9 + $0x1f8] ss:$36 sps:$4 sm:$0xff]  }
  0x2d   : > { %2891 = vmatpush3.bf16.msra.mxu1 %v3346_v22  ;;  %3003 = vmatpush3.bf16.msra.mxu0 %v3350_v24  ;;  %v3417_v22 = vld [vmem:[%s3672_s9 + $0x244] ss:$36 sps:$4 sm:$0xff]  }
  0x2e   : > { %2892 = vmatprep.subr.bf16.mxu1 %v3347_v23  ;;  %1697 = vmatprep.mubr.bf16.mxu0 %v3351_v25  ;;  %v3419_v23 = vld [vmem:[%s3672_s9 + $0x12c] ss:$36 sps:$4 sm:$0xff]   ;;  %v3449_v24 = vld [vmem:[%s4482_s1 + $0x140] sm:$0xff]  }
  0x2f   : > { %1793 = vmatprep.mubr.bf16.mxu1 %v3353_v26  ;;  %3004 = vmatprep.subr.bf16.mxu0 %v3368_v28  ;;  %v3450_v25 = vld [vmem:[%s4482_s1 + $0x100] sm:$0xff]   ;;  %v3457_v26 = vld [vmem:[%s4482_s1 + $0x1d8] sm:$0xff]  }
  0x30   : > { %v3458_v28 = vld [vmem:[%s4482_s1 + $0x198] sm:$0xff]  }
  0x31   : > { %2893 = vmatpush3.bf16.msra.mxu1 %v3349_v27  ;;  %3005 = vmatpush3.bf16.msra.mxu0 %v3370_v33  ;;  %v3421_v27 = vld [vmem:[%s3672_s9 + $0x240] ss:$36 sps:$4 sm:$0xff]   ;;  %v3472_v33 = vld [vmem:[%s4482_s1 + $0x1d0] sm:$0xff]  }
  0x32   : > { %2894 = vmatprep.subr.bf16.mxu1 %v3357_v31  ;;  %3006 = vmatprep.subr.bf16.mxu0 %v3382_v43  ;;  %v3427_v31 = vld [vmem:[%s3672_s9 + $0x28c] ss:$36 sps:$4 sm:$0xff]   ;;  %v3443_v43 = vld [vmem:[%s3672_s9 + $0x31c] ss:$36 sps:$4 sm:$0xff]  }
  0x34   : > { %1698 = vmatmul.mubr.bf16.gmra.mxu0 %v3355_v29  ;;  %1794 = vmatmul.mubr.bf16.gmra.mxu1 %v3356_v30  ;;  %v3459_v29 = vld [vmem:[%s4482_s1 + $0x238] sm:$0xff]   ;;  %v3422_v30 = vld [vmem:[%s3672_s9 + $0x128] ss:$36 sps:$4 sm:$0xff]  }
  0x35   : > { %2895 = vmatpush3.bf16.msra.mxu1 %v3358_v32  ;;  %1705 = vmatprep.mubr.bf16.mxu0 %v3361_v35  ;;  %v3429_v32 = vld [vmem:[%s3672_s9 + $0x174] ss:$36 sps:$4 sm:$0xff]  }
  0x36   : > { %2896 = vmatprep.subr.bf16.mxu1 %v3359_v34  ;;  %1801 = vmatprep.mubr.bf16.mxu1 %v3363_v36  ;;  %v3431_v34 = vld [vmem:[%s3672_s9 + $0x288] ss:$36 sps:$4 sm:$0xff]   ;;  %v3473_v35 = vld [vmem:[%s4482_s1 + $0x190] sm:$0xff]  }
  0x37   : > { %3007 = vmatpush3.bf16.msra.mxu0 %v3384_v46  ;;  %v3432_v36 = vld [vmem:[%s3672_s9 + $0x170] ss:$36 sps:$4 sm:$0xff]   ;;  %v3448_v46 = vld [vmem:[%s3672_s9 + $0x200] ss:$36 sps:$4 sm:$0xff]  }
  0x38   : > { %3008 = vmatprep.subr.bf16.mxu0 %v3399_v55  ;;  %v3474_v55 = vld [vmem:[%s4482_s1 + $0x230] sm:$0xff]  }
  0x39   : > { %2897 = vmatpush3.bf16.msra.mxu1 %v3360_v37  ;;  %v3435_v37 = vld [vmem:[%s3672_s9 + $0x2d4] ss:$36 sps:$4 sm:$0xff]  }
  0x3a   : > { %2898 = vmatprep.subr.bf16.mxu1 %v3367_v40  ;;  %v3440_v40 = vld [vmem:[%s3672_s9 + $0x1b8] ss:$36 sps:$4 sm:$0xff]  }
  0x3b   : > { %3009 = vmatpush3.bf16.msra.mxu0 %v3400_v56  ;;  %v3489_v56 = vld [vmem:[%s4482_s1 + $0x228] sm:$0xff]  }
  0x3c   : > { %1706 = vmatmul.mubr.bf16.gmra.mxu0 %v3365_v38  ;;  %1802 = vmatmul.mubr.bf16.gmra.mxu1 %v3366_v39  ;;  %v3437_v38 = vld [vmem:[%s3672_s9 + $0x1bc] ss:$36 sps:$4 sm:$0xff]   ;;  %v3439_v39 = vld [vmem:[%s3672_s9 + $0x2d0] ss:$36 sps:$4 sm:$0xff]  }
  0x3d   : > { %2899 = vmatpush3.bf16.msra.mxu1 %v3369_v41  ;;  %1713 = vmatprep.mubr.bf16.mxu0 %v3373_v44  ;;  %v3487_v41 = vld [vmem:[%s4482_s1 + $0x1c8] sm:$0xff]  }
  0x3e   : > { %2900 = vmatprep.subr.bf16.mxu1 %v3371_v42  ;;  %1809 = vmatprep.mubr.bf16.mxu1 %v3375_v45  ;;  %v3488_v42 = vld [vmem:[%s4482_s1 + $0x188] sm:$0xff]   ;;  %v3447_v45 = vld [vmem:[%s3672_s9 + $0x318] ss:$36 sps:$4 sm:$0xff]  }
  0x3f   : > { %3010 = vmatprep.subr.bf16.mxu0 %v3409_v0  ;;  %v3445_v44 = vld [vmem:[%s3672_s9 + $0x204] ss:$36 sps:$4 sm:$0xff]  }
  0x40   : > { %3011 = vmatpush3.bf16.msra.mxu0 %v3410_v2  ;;  %v3471_v0 = vld [vmem:[%s3672_s9 + $0xa0] ss:$36 sps:$4 sm:$0xff]   ;;  %v3477_v2 = vld [vmem:[%s3672_s9 + $0xec] ss:$36 sps:$4 sm:$0xff]  }
  0x41   : > { %2901 = vmatpush3.bf16.msra.mxu1 %v3372_v47  ;;  %3012 = vmatprep.subr.bf16.mxu0 %v3423_v8  ;;  %v3502_v47 = vld [vmem:[%s4482_s1 + $0x1c0] sm:$0xff]   ;;  %v3483_v8 = vld [vmem:[%s3672_s9 + $0x134] ss:$36 sps:$4 sm:$0xff]  }
  0x42   : > { %2902 = vmatprep.subr.bf16.mxu1 %v3379_v48  ;;  %v3503_v48 = vld [vmem:[%s4482_s1 + $0x180] sm:$0xff]  }
  0x44   : > { %1714 = vmatmul.mubr.bf16.gmra.mxu0 %v3377_v49  ;;  %1810 = vmatmul.mubr.bf16.gmra.mxu1 %v3378_v50  ;;  %v3451_v49 = vld [vmem:[%s3672_s9 + $0x24c] ss:$36 sps:$4 sm:$0xff]   ;;  %v3455_v50 = vld [vmem:[%s3672_s9 + $0x14] ss:$36 sps:$4 sm:$0xff]  }
  0x45   : > { %2903 = vmatpush3.bf16.msra.mxu1 %v3380_v51  ;;  %1721 = vmatprep.mubr.bf16.mxu0 %v3385_v53  ;;  %v3453_v51 = vld [vmem:[%s3672_s9 + $0x10] ss:$36 sps:$4 sm:$0xff]  }
  0x46   : > { %2904 = vmatprep.subr.bf16.mxu1 %v3381_v52  ;;  %1850 = vmatprep.mubr.bf16.mxu1 %v3389_v54  ;;  %v3456_v52 = vld [vmem:[%s3672_s9 + $0x248] ss:$36 sps:$4 sm:$0xff]   ;;  %v3460_v53 = vld [vmem:[%s3672_s9 + $0x294] ss:$36 sps:$4 sm:$0xff]   ;;  %v3462_v54 = vld [vmem:[%s3672_s9 + $0x5c] ss:$36 sps:$4 sm:$0xff]  }
  0x47   : > { %3013 = vmatpush3.bf16.msra.mxu0 %v3425_v10  ;;  %v3485_v10 = vld [vmem:[%s3672_s9 + $0x368] ss:$36 sps:$4 sm:$0xff]  }
  0x48   : > { %3014 = vmatprep.subr.bf16.mxu0 %v3433_v15  ;;  %v3495_v15 = vld [vmem:[%s3672_s9 + $0x178] ss:$36 sps:$4 sm:$0xff]  }
  0x49   : > { %2905 = vmatpush3.bf16.msra.mxu1 %v3383_v57  ;;  %v3464_v57 = vld [vmem:[%s3672_s9 + $0x290] ss:$36 sps:$4 sm:$0xff]  }
  0x4a   : > { %3114 = vmatprep.subr.bf16.mxu1 %v3391_v60  ;;  %v3468_v60 = vld [vmem:[%s3672_s9 + $0xa4] ss:$36 sps:$4 sm:$0xff]  }
  0x4b   : > { %3015 = vmatpush3.bf16.msra.mxu0 %v3434_v16  ;;  %v3496_v16 = vld [vmem:[%s3672_s9 + $0x3fc] ss:$36 sps:$4 sm:$0xff]  }
  0x4c   : > { %1722 = vmatmul.mubr.bf16.gmra.mxu0 %v3390_v59  ;;  %1851 = vmatmul.mubr.bf16.vlgmr.msra.gmra.mxu1 %v3387_v58  ;;  %v3465_v58 = vld [vmem:[%s3672_s9 + $0x58] ss:$36 sps:$4 sm:$0xff]  }
  0x4d   : > { %3115 = vmatpush3.bf16.msra.mxu1 %v3392_v61  ;;  %1729 = vmatprep.mubr.bf16.mxu0 %v3393_v62  ;;  %v3466_v59 = vld [vmem:[%s3672_s9 + $0x2dc] ss:$36 sps:$4 sm:$0xff]  }
  0x4e   : > { %1858 = vmatprep.mubr.bf16.mxu1 %v3395_v63  ;;  %3116 = vmatprep.subr.bf16.mxu1 %v3407_v1  ;;  %v3504_v61 = vld [vmem:[%s4482_s1 + $0x220] sm:$0xff]   ;;  %v3470_v62 = vld [vmem:[%s3672_s9 + $0x2d8] ss:$36 sps:$4 sm:$0xff]  }
  0x4f   : > { %3016 = vmatprep.subr.bf16.mxu0 %v3449_v24  ;;  %v3517_v63 = vld [vmem:[%s4482_s1 + $0x218] sm:$0xff]   ;;  %v3475_v1 = vld [vmem:[%s3672_s9 + $0x324] ss:$36 sps:$4 sm:$0xff]  }
  0x50   : > { %3017 = vmatpush3.bf16.msra.mxu0 %v3450_v25  ;;  %v3511_v24 = vld [vmem:[%s3672_s9 + $0x254] ss:$36 sps:$4 sm:$0xff]   ;;  %v3515_v25 = vld [vmem:[%s3672_s9 + $0x1c] ss:$36 sps:$4 sm:$0xff]  }
  0x51   : > { %3117 = vmatpush3.bf16.msra.mxu1 %v3408_v3  ;;  %3250 = vmatprep.subr.bf16.mxu0 %v3459_v29  ;;  %v3530_v3 = vld [vmem:[%s4482_s1 + $0x210] sm:$0xff]  }
  0x52   : > { %3118 = vmatprep.subr.bf16.mxu1 %v3424_v9  ;;  %v3556_v9 = vld [vmem:[%s4482_s1 + $0x200] sm:$0xff]  }
  0x54   : > { %1730 = vmatmul.mubr.bf16.gmra.mxu0 %v3397_v4  ;;  %1859 = vmatmul.mubr.bf16.gmra.mxu1 %v3398_v5  ;;  %v3479_v4 = vld [vmem:[%s3672_s9 + $0x320] ss:$36 sps:$4 sm:$0xff]   ;;  %v3543_v5 = vld [vmem:[%s4482_s1 + $0x208] sm:$0xff]  }
  0x55   : > { %1737 = vmatprep.mubr.bf16.mxu0 %v3401_v6  ;;  %1866 = vmatprep.mubr.bf16.mxu1 %v3403_v7  ;;  %v3480_v6 = vld [vmem:[%s3672_s9 + $0xe8] ss:$36 sps:$4 sm:$0xff]  }
  0x56   : > { %3119 = vmatpush3.bf16.msra.mxu1 %v3426_v11  ;;  %v3481_v7 = vld [vmem:[%s3672_s9 + $0x36c] ss:$36 sps:$4 sm:$0xff]  }
  0x57   : > { %3120 = vmatprep.subr.bf16.mxu1 %v3441_v18  ;;  %v3486_v11 = vld [vmem:[%s3672_s9 + $0x130] ss:$36 sps:$4 sm:$0xff]   ;;  %v3500_v18 = vld [vmem:[%s3672_s9 + $0x3f8] ss:$36 sps:$4 sm:$0xff]  }
  0x5a   : > { %3121 = vmatpush3.bf16.msra.mxu1 %v3442_v19  ;;  %v3501_v19 = vld [vmem:[%s3672_s9 + $0x1c0] ss:$36 sps:$4 sm:$0xff]  }
  0x5b   : > { %3122 = vmatprep.subr.bf16.mxu1 %v3457_v26  ;;  %v3513_v26 = vld [vmem:[%s3672_s9 + $0x18] ss:$36 sps:$4 sm:$0xff]  }
  0x5c   : > { %1738 = vmatmul.mubr.bf16.gmra.mxu0 %v3405_v12  ;;  %1867 = vmatmul.mubr.bf16.gmra.mxu1 %v3406_v13  ;;  %v3490_v12 = vld [vmem:[%s3672_s9 + $0x3b4] ss:$36 sps:$4 sm:$0xff]   ;;  %v3492_v13 = vld [vmem:[%s3672_s9 + $0x17c] ss:$36 sps:$4 sm:$0xff]  }
  0x5d   : > { %1745 = vmatprep.mubr.bf16.mxu0 %v3411_v14  ;;  %1874 = vmatprep.mubr.bf16.mxu1 %v3413_v17  ;;  %v3494_v14 = vld [vmem:[%s3672_s9 + $0x3b0] ss:$36 sps:$4 sm:$0xff]   ;;  %v3498_v17 = vld [vmem:[%s3672_s9 + $0x1c4] ss:$36 sps:$4 sm:$0xff]  }
  0x5e   : > { %3123 = vmatpush3.bf16.msra.mxu1 %v3458_v28  ;;  %v3518_v28 = vld [vmem:[%s3672_s9 + $0x29c] ss:$36 sps:$4 sm:$0xff]  }
  0x5f   : > { %3124 = vmatprep.subr.bf16.mxu1 %v3472_v33  ;;  %v3526_v33 = vld [vmem:[%s3672_s9 + $0xac] ss:$36 sps:$4 sm:$0xff]  }
  0x62   : > { %3125 = vmatpush3.bf16.msra.mxu1 %v3473_v35  ;;  %v3529_v35 = vld [vmem:[%s3672_s9 + $0xa8] ss:$36 sps:$4 sm:$0xff]  }
  0x63   : > { %3126 = vmatprep.subr.bf16.mxu1 %v3487_v41  ;;  %v3539_v41 = vld [vmem:[%s3672_s9 + $0x13c] ss:$36 sps:$4 sm:$0xff]  }
  0x64   : > { %1746 = vmatmul.mubr.bf16.gmra.mxu0 %v3415_v20  ;;  %1875 = vmatmul.mubr.bf16.gmra.mxu1 %v3416_v21  ;;  %v3505_v20 = vld [vmem:[%s3672_s9 + $0x444] ss:$36 sps:$4 sm:$0xff]   ;;  %v3507_v21 = vld [vmem:[%s3672_s9 + $0x20c] ss:$36 sps:$4 sm:$0xff]  }
  0x65   : > { %1753 = vmatprep.mubr.bf16.mxu0 %v3417_v22  ;;  %1882 = vmatprep.mubr.bf16.mxu1 %v3419_v23  ;;  %v3509_v22 = vld [vmem:[%s3672_s9 + $0x440] ss:$36 sps:$4 sm:$0xff]   ;;  %v3510_v23 = vld [vmem:[%s3672_s9 + $0x208] ss:$36 sps:$4 sm:$0xff]  }
  0x66   : > { %3127 = vmatpush3.bf16.msra.mxu1 %v3488_v42  ;;  %v3541_v42 = vld [vmem:[%s3672_s9 + $0x370] ss:$36 sps:$4 sm:$0xff]  }
  0x67   : > { %3128 = vmatprep.subr.bf16.mxu1 %v3502_v47 }
  0x6a   : > { %3129 = vmatpush3.bf16.msra.mxu1 %v3503_v48 }
  0x6c   : > { %1754 = vmatmul.mubr.bf16.gmra.mxu0 %v3421_v27  ;;  %1883 = vmatmul.mubr.bf16.gmra.mxu1 %v3422_v30  ;;  %v3516_v27 = vld [vmem:[%s3672_s9 + $0x250] ss:$36 sps:$4 sm:$0xff]   ;;  %v3522_v30 = vld [vmem:[%s3672_s9 + $0x298] ss:$36 sps:$4 sm:$0xff]  }
  0x6d   : > { %1761 = vmatprep.mubr.bf16.mxu0 %v3427_v31  ;;  %1890 = vmatprep.mubr.bf16.mxu1 %v3429_v32  ;;  %v3523_v31 = vld [vmem:[%s3672_s9 + $0x60] ss:$36 sps:$4 sm:$0xff]  }
  0x6e   : > { %v3524_v32 = vld [vmem:[%s3672_s9 + $0x2e4] ss:$36 sps:$4 sm:$0xff]  }
  0x74   : > { %1762 = vmatmul.mubr.bf16.gmra.mxu0 %v3431_v34  ;;  %1891 = vmatmul.mubr.bf16.gmra.mxu1 %v3432_v36  ;;  %v3528_v34 = vld [vmem:[%s3672_s9 + $0x2e0] ss:$36 sps:$4 sm:$0xff]   ;;  %v3531_v36 = vld [vmem:[%s3672_s9 + $0x32c] ss:$36 sps:$4 sm:$0xff]  }
  0x75   : > { %1769 = vmatprep.mubr.bf16.mxu0 %v3435_v37  ;;  %1898 = vmatprep.mubr.bf16.mxu1 %v3437_v38  ;;  %v3533_v37 = vld [vmem:[%s3672_s9 + $0xf4] ss:$36 sps:$4 sm:$0xff]   ;;  %v3535_v38 = vld [vmem:[%s3672_s9 + $0x328] ss:$36 sps:$4 sm:$0xff]  }
  0x7c   : > { %1770 = vmatmul.mubr.bf16.gmra.mxu0 %v3439_v39  ;;  %1899 = vmatmul.mubr.bf16.gmra.mxu1 %v3440_v40  ;;  %v3536_v39 = vld [vmem:[%s3672_s9 + $0xf0] ss:$36 sps:$4 sm:$0xff]  }
  0x7d   : > { %1777 = vmatprep.mubr.bf16.mxu0 %v3443_v43  ;;  %1906 = vmatprep.mubr.bf16.mxu1 %v3445_v44  ;;  %v3537_v40 = vld [vmem:[%s3672_s9 + $0x374] ss:$36 sps:$4 sm:$0xff]   ;;  %v3544_v44 = vld [vmem:[%s3672_s9 + $0x3bc] ss:$36 sps:$4 sm:$0xff]  }
  0x7e   : > { %v3542_v43 = vld [vmem:[%s3672_s9 + $0x138] ss:$36 sps:$4 sm:$0xff]  }
  0x84   : > { %1778 = vmatmul.mubr.bf16.gmra.mxu0 %v3447_v45  ;;  %1907 = vmatmul.mubr.bf16.gmra.mxu1 %v3448_v46  ;;  %v3546_v45 = vld [vmem:[%s3672_s9 + $0x184] ss:$36 sps:$4 sm:$0xff]  }
  0x85   : > { %1914 = vmatprep.mubr.bf16.mxu1 %v3451_v49  ;;  %2011 = vmatprep.mubr.bf16.mxu0 %v3455_v50 }
  0x8c   : > { %1915 = vmatmul.mubr.bf16.gmra.mxu1 %v3456_v52  ;;  %2012 = vmatmul.mubr.bf16.vlgmr.msra.gmra.mxu0 %v3453_v51 }
  0x8d   : > { %3251 = vmatpush3.bf16.msra.mxu0 %v3459_v29  ;;  %1922 = vmatprep.mubr.bf16.mxu1 %v3460_v53  ;;  %v3520_v29 = vld [vmem:[%s3672_s9 + $0x64] ss:$36 sps:$4 sm:$0xff]  }
  0x8e   : > { %2019 = vmatprep.mubr.bf16.mxu0 %v3462_v54  ;;  %3252 = vmatprep.subr.bf16.mxu0 %v3474_v55  ;;  %v3548_v54 = vld [vmem:[%s3672_s9 + $0x3b8] ss:$36 sps:$4 sm:$0xff]  }
  0x91   : > { %3253 = vmatpush3.bf16.msra.mxu0 %v3474_v55  ;;  %v3549_v55 = vld [vmem:[%s3672_s9 + $0x180] ss:$36 sps:$4 sm:$0xff]  }
  0x92   : > { %3254 = vmatprep.subr.bf16.mxu0 %v3489_v56 }
  0x94   : > { %1923 = vmatmul.mubr.bf16.gmra.mxu1 %v3464_v57  ;;  %2020 = vmatmul.mubr.bf16.gmra.mxu0 %v3465_v58  ;;  %v3552_v57 = vld [vmem:[%s3672_s9 + $0x1cc] ss:$36 sps:$4 sm:$0xff]  }
  0x95   : > { %1930 = vmatprep.mubr.bf16.mxu1 %v3466_v59  ;;  %2027 = vmatprep.mubr.bf16.mxu0 %v3468_v60 }
  0x96   : > { %3255 = vmatpush3.bf16.msra.mxu0 %v3489_v56  ;;  %v3550_v56 = vld [vmem:[%s3672_s9 + $0x404] ss:$36 sps:$4 sm:$0xff]  }
  0x97   : > { %3256 = vmatprep.subr.bf16.mxu0 %v3504_v61 }
  0x9a   : > { %3257 = vmatpush3.bf16.msra.mxu0 %v3504_v61 }
  0x9b   : > { %3258 = vmatprep.subr.bf16.mxu0 %v3517_v63 }
  0x9c   : > { %1931 = vmatmul.mubr.bf16.gmra.mxu1 %v3470_v62  ;;  %2028 = vmatmul.mubr.bf16.gmra.mxu0 %v3471_v0 }
  0x9d   : > { %1938 = vmatprep.mubr.bf16.mxu1 %v3475_v1  ;;  %2035 = vmatprep.mubr.bf16.mxu0 %v3477_v2 }
  0x9e   : > { %3259 = vmatpush3.bf16.msra.mxu0 %v3517_v63 }
  0x9f   : > { %3260 = vmatprep.subr.bf16.mxu0 %v3530_v3 }
  0xa2   : > { %3261 = vmatpush3.bf16.msra.mxu0 %v3530_v3 }
  0xa3   : > { %3262 = vmatprep.subr.bf16.mxu0 %v3543_v5 }
  0xa4   : > { %1939 = vmatmul.mubr.bf16.gmra.mxu1 %v3479_v4  ;;  %2036 = vmatmul.mubr.bf16.gmra.mxu0 %v3480_v6  ;;  %v3554_v6 = vld [vmem:[%s3672_s9 + $0x400] ss:$36 sps:$4 sm:$0xff]  }
  0xa5   : > { %1946 = vmatprep.mubr.bf16.mxu1 %v3481_v7  ;;  %2043 = vmatprep.mubr.bf16.mxu0 %v3483_v8  ;;  %v3555_v7 = vld [vmem:[%s3672_s9 + $0x1c8] ss:$36 sps:$4 sm:$0xff]  }
  0xa6   : > { %3263 = vmatpush3.bf16.msra.mxu0 %v3543_v5  ;;  %v3557_v8 = vld [vmem:[%s3672_s9 + $0x44c] ss:$36 sps:$4 sm:$0xff]  }
  0xa7   : > { %3264 = vmatprep.subr.bf16.mxu0 %v3556_v9 }
  0xaa   : > { %3265 = vmatpush3.bf16.msra.mxu0 %v3556_v9  ;;  %v3559_v9 = vld [vmem:[%s3672_s9 + $0x214] ss:$36 sps:$4 sm:$0xff]  }
  0xac   : > { %1947 = vmatmul.mubr.bf16.gmra.mxu1 %v3485_v10  ;;  %2044 = vmatmul.mubr.bf16.gmra.mxu0 %v3486_v11 }
  0xad   : > { %1954 = vmatprep.mubr.bf16.mxu1 %v3490_v12  ;;  %2051 = vmatprep.mubr.bf16.mxu0 %v3492_v13 }
  0xb4   : > { %1955 = vmatmul.mubr.bf16.gmra.mxu1 %v3494_v14  ;;  %2052 = vmatmul.mubr.bf16.gmra.mxu0 %v3495_v15 }
  0xb5   : > { %1962 = vmatprep.mubr.bf16.mxu1 %v3496_v16  ;;  %2059 = vmatprep.mubr.bf16.mxu0 %v3498_v17 }
  0xbc   : > { %1963 = vmatmul.mubr.bf16.gmra.mxu1 %v3500_v18  ;;  %2060 = vmatmul.mubr.bf16.gmra.mxu0 %v3501_v19 }
  0xbd   : > { %1970 = vmatprep.mubr.bf16.mxu1 %v3505_v20  ;;  %2067 = vmatprep.mubr.bf16.mxu0 %v3507_v21 }
  0xc4   : > { %1971 = vmatmul.mubr.bf16.gmra.mxu1 %v3509_v22  ;;  %2068 = vmatmul.mubr.bf16.gmra.mxu0 %v3510_v23  ;;  %v3561_v22 = vld [vmem:[%s3672_s9 + $0x448] ss:$36 sps:$4 sm:$0xff]   ;;  %v3562_v23 = vld [vmem:[%s3672_s9 + $0x210] ss:$36 sps:$4 sm:$0xff]  }
  0xc5   : > { %2075 = vmatprep.mubr.bf16.mxu0 %v3511_v24  ;;  %2172 = vmatprep.mubr.bf16.mxu1 %v3515_v25  ;;  %v3565_v24 = vld [vmem:[%s3672_s9 + $0x25c] ss:$36 sps:$4 sm:$0xff]  }
  0xc6   : > { %v3566_v25 = vld [vmem:[%s3672_s9 + $0x20] ss:$36 sps:$4 sm:$0xff]  }
  0xcc   : > { %2076 = vmatmul.mubr.bf16.gmra.mxu0 %v3516_v27  ;;  %2173 = vmatmul.mubr.bf16.vlgmr.msra.gmra.mxu1 %v3513_v26 }
  0xcd   : > { %2083 = vmatprep.mubr.bf16.mxu0 %v3518_v28  ;;  %2180 = vmatprep.mubr.bf16.mxu1 %v3520_v29 }
  0xd4   : > { %2084 = vmatmul.mubr.bf16.gmra.mxu0 %v3522_v30  ;;  %2181 = vmatmul.mubr.bf16.gmra.mxu1 %v3523_v31 }
  0xd5   : > { %2091 = vmatprep.mubr.bf16.mxu0 %v3524_v32  ;;  %2188 = vmatprep.mubr.bf16.mxu1 %v3526_v33 }
  0xdc   : > { %2092 = vmatmul.mubr.bf16.gmra.mxu0 %v3528_v34  ;;  %2189 = vmatmul.mubr.bf16.gmra.mxu1 %v3529_v35 }
  0xdd   : > { %2099 = vmatprep.mubr.bf16.mxu0 %v3531_v36  ;;  %2196 = vmatprep.mubr.bf16.mxu1 %v3533_v37 }
  0xe4   : > { %2100 = vmatmul.mubr.bf16.gmra.mxu0 %v3535_v38  ;;  %2197 = vmatmul.mubr.bf16.gmra.mxu1 %v3536_v39  ;;  %v3563_v38 = vld [vmem:[%s3672_s9 + $0x258] ss:$36 sps:$4 sm:$0xff]   ;;  %v3567_v39 = vld [vmem:[%s3672_s9 + $0x68] ss:$36 sps:$4 sm:$0xff]  }
  0xe5   : > { %2107 = vmatprep.mubr.bf16.mxu0 %v3537_v40  ;;  %2204 = vmatprep.mubr.bf16.mxu1 %v3539_v41  ;;  %v3570_v40 = vld [vmem:[%s3672_s9 + $0x2a4] ss:$36 sps:$4 sm:$0xff]   ;;  %v3571_v41 = vld [vmem:[%s3672_s9 + $0xb0] ss:$36 sps:$4 sm:$0xff]  }
  0xec   : > { %v2794_v46 = vpop.f32.mrf.mxu0  ;;  %v2866_v47 = vpop.f32.mrf.mxu1  ;;  %2108 = vmatmul.mubr.bf16.gmra.mxu0 %v3541_v42  ;;  %2205 = vmatmul.mubr.bf16.gmra.mxu1 %v3542_v43 }
  0xed   : > { %2115 = vmatprep.mubr.bf16.mxu0 %v3544_v44  ;;  %2212 = vmatprep.mubr.bf16.mxu1 %v3546_v45 }
  0xee   : > { %v2795_v48 = vpop.f32.mrf.mxu0  ;;  %v2867_v49 = vpop.f32.mrf.mxu1 }
  0xef   : > { %v3965_v50 = vadd.f32 %v2795_v48, %v2794_v46  ;;  %v3967_v51 = vadd.f32 %v2867_v49, %v2866_v47  ;;  %v4016_v48 = vld [vmem:[%s4483_s2] ss:$0 sm:$0xff] }
  0xf0   : > { %v2797_v52 = vpop.f32.mrf.mxu0  ;;  %v2869_v53 = vpop.f32.mrf.mxu1 }
  0xf2   : > { %v2798_v58 = vpop.f32.mrf.mxu0  ;;  %v2870_v59 = vpop.f32.mrf.mxu1 }
  0xf3   : > { %v3973_v60 = vadd.f32 %v2798_v58, %v2797_v52  ;;  %v3975_v61 = vadd.f32 %v2870_v59, %v2869_v53  ;;  %v1692_v53 = vadd.f32 %v3965_v50, %v4016_v48  ;;  %v3568_v58 = vld [vmem:[%s3672_s9 + $0x2a0] ss:$36 sps:$4 sm:$0xff]   ;;  %v3572_v59 = vld [vmem:[%s3672_s9 + $0xf8] ss:$36 sps:$4 sm:$0xff]  }
  0xf4   : > { %v2800_v62 = vpop.f32.mrf.mxu0  ;;  %v2872_v63 = vpop.f32.mrf.mxu1  ;;  %2116 = vmatmul.mubr.bf16.gmra.mxu0 %v3548_v54  ;;  %2213 = vmatmul.mubr.bf16.gmra.mxu1 %v3549_v55 }
  0xf5   : > { %2123 = vmatprep.mubr.bf16.mxu0 %v3550_v56  ;;  %2220 = vmatprep.mubr.bf16.mxu1 %v3552_v57 }
  0xf6   : > { %v2801_v0 = vpop.f32.mrf.mxu0  ;;  %v2873_v1 = vpop.f32.mrf.mxu1 }
  0xf7   : > { %v3977_v2 = vadd.f32 %v2801_v0, %v2800_v62  ;;  %v3979_v3 = vadd.f32 %v2873_v1, %v2872_v63  ;;  %v3575_v63 = vld [vmem:[%s3672_s9 + $0x2ec] ss:$36 sps:$4 sm:$0xff]   ;;  %v3576_v0 = vld [vmem:[%s3672_s9 + $0x140] ss:$36 sps:$4 sm:$0xff]  }
  0xf8   : > { %v2803_v4 = vpop.f32.mrf.mxu0  ;;  %v2875_v5 = vpop.f32.mrf.mxu1 }
  0xfa   : > { %v2804_v10 = vpop.f32.mrf.mxu0  ;;  %v2876_v11 = vpop.f32.mrf.mxu1 }
  0xfb   : > { %v3985_v12 = vadd.f32 %v2804_v10, %v2803_v4  ;;  %v3987_v13 = vadd.f32 %v2876_v11, %v2875_v5  ;;  %v1695_v5 = vadd.f32 %v3973_v60, %v4016_v48  ;;  %v1700_v60 = vadd.f32 %v3977_v2, %v4016_v48 }
  0xfc   : > { %v2806_v14 = vpop.f32.mrf.mxu0  ;;  %v2878_v15 = vpop.f32.mrf.mxu1  ;;  %2124 = vmatmul.mubr.bf16.gmra.mxu0 %v3554_v6  ;;  %2221 = vmatmul.mubr.bf16.gmra.mxu1 %v3555_v7 }
  0xfd   : > { %2131 = vmatprep.mubr.bf16.mxu0 %v3557_v8  ;;  %2228 = vmatprep.mubr.bf16.mxu1 %v3559_v9 }
  0xfe   : > { %v2807_v16 = vpop.f32.mrf.mxu0  ;;  %v2879_v17 = vpop.f32.mrf.mxu1 }
  0xff   : > { %v3989_v18 = vadd.f32 %v2807_v16, %v2806_v14  ;;  %v3991_v19 = vadd.f32 %v2879_v17, %v2878_v15 }
 0x100   : > { %v2809_v20 = vpop.f32.mrf.mxu0  ;;  %v2881_v21 = vpop.f32.mrf.mxu1 }
 0x102   : > { %v2810_v26 = vpop.f32.mrf.mxu0  ;;  %v2882_v27 = vpop.f32.mrf.mxu1 }
 0x103   : > { %v3997_v28 = vadd.f32 %v2810_v26, %v2809_v20  ;;  %v3999_v29 = vadd.f32 %v2882_v27, %v2881_v21  ;;  %v3573_v20 = vld [vmem:[%s3672_s9 + $0x2e8] ss:$36 sps:$4 sm:$0xff]   ;;  %v1703_v27 = vadd.f32 %v3985_v12, %v4016_v48  ;;  %v1708_v12 = vadd.f32 %v3989_v18, %v4016_v48 }
 0x104   : > { %v2812_v30 = vpop.f32.mrf.mxu0  ;;  %v2884_v31 = vpop.f32.mrf.mxu1  ;;  %2132 = vmatmul.mubr.bf16.gmra.mxu0 %v3561_v22  ;;  %2229 = vmatmul.mubr.bf16.gmra.mxu1 %v3562_v23  ;;  %v3577_v21 = vld [vmem:[%s3672_s9 + $0x188] ss:$36 sps:$4 sm:$0xff]   ;;  %v3580_v23 = vld [vmem:[%s3672_s9 + $0x334] ss:$36 sps:$4 sm:$0xff]  }
 0x105   : > { %2236 = vmatprep.mubr.bf16.mxu1 %v3565_v24  ;;  %3266 = vmatprep.mubr.bf16.mxu0 %v3566_v25  ;;  %v3581_v24 = vld [vmem:[%s3672_s9 + $0x1d0] ss:$36 sps:$4 sm:$0xff]  }
 0x106   : > { %v2813_v32 = vpop.f32.mrf.mxu0  ;;  %v2885_v33 = vpop.f32.mrf.mxu1 }
 0x107   : > { %v4001_v34 = vadd.f32 %v2813_v32, %v2812_v30  ;;  %v4003_v35 = vadd.f32 %v2885_v33, %v2884_v31 }
 0x108   : > { %v2815_v36 = vpop.f32.mrf.mxu0  ;;  %v2887_v37 = vpop.f32.mrf.mxu1 }
 0x10a   : > { %v2816_v42 = vpop.f32.mrf.mxu0  ;;  %v2888_v43 = vpop.f32.mrf.mxu1 }
 0x10b   : > { %v4009_v44 = vadd.f32 %v2816_v42, %v2815_v36  ;;  %v4011_v45 = vadd.f32 %v2888_v43, %v2887_v37  ;;  %v3578_v42 = vld [vmem:[%s3672_s9 + $0x330] ss:$36 sps:$4 sm:$0xff]   ;;  %v3582_v43 = vld [vmem:[%s3672_s9 + $0x218] ss:$36 sps:$4 sm:$0xff]  }
 0x10c   : > { %v2818_v46 = vpop.f32.mrf.mxu0  ;;  %v2906_v47 = vpop.f32.mrf.mxu1  ;;  %2237 = vmatmul.mubr.bf16.gmra.mxu1 %v3563_v38  ;;  %3267 = vmatmul.mubr.bf16.vlgmr.msra.gmra.mxu0 %v3567_v39 }
 0x10d   : > { %2244 = vmatprep.mubr.bf16.mxu1 %v3570_v40  ;;  %3270 = vmatprep.mubr.bf16.mxu0 %v3571_v41 }
 0x10e   : > { %v2819_v49 = vpop.f32.mrf.mxu0  ;;  %v2907_v52 = vpop.f32.mrf.mxu1 }
 0x10f   : > { %v4020_v54 = vadd.f32 %v2819_v49, %v2818_v46  ;;  %v2908_v55 = vadd.f32 %v2907_v52, %v2906_v47  ;;  %v3585_v47 = vld [vmem:[%s3672_s9 + $0x37c] ss:$36 sps:$4 sm:$0xff]  }
 0x110   : > { %v2821_v56 = vpop.f32.mrf.mxu0  ;;  %v2909_v57 = vpop.f32.mrf.mxu1  ;;  %v3586_v49 = vld [vmem:[%s3672_s9 + $0x260] ss:$36 sps:$4 sm:$0xff]  }
 0x111   : > { %v4024_v62 = vadd.f32 %v2908_v55, %v1692_v53  ;;  %v1711_v55 = vadd.f32 %v3997_v28, %v4016_v48  ;;  %v1716_v28 = vadd.f32 %v4001_v34, %v4016_v48 }
 0x112   : > { %v2822_v1 = vpop.f32.mrf.mxu0  ;;  %v2910_v4 = vpop.f32.mrf.mxu1 }
 0x113   : > { %v4030_v6 = vadd.f32 %v2822_v1, %v2821_v56  ;;  %v2911_v50 = vadd.f32 %v2910_v4, %v2909_v57 }
 0x114   : > { %v2824_v7 = vpop.f32.mrf.mxu0  ;;  %v2912_v8 = vpop.f32.mrf.mxu1  ;;  %2245 = vmatmul.mubr.bf16.gmra.mxu1 %v3568_v58  ;;  %3271 = vmatmul.mubr.bf16.gmra.mxu0 %v3572_v59 }
 0x115   : > { %v4032_v9 = vadd.f32 %v2911_v50, %v1695_v5  ;;  %2252 = vmatprep.mubr.bf16.mxu1 %v3575_v63  ;;  %3274 = vmatprep.mubr.bf16.mxu0 %v3576_v0 }
 0x116   : > { %v2825_v10 = vpop.f32.mrf.mxu0  ;;  %v2913_v11 = vpop.f32.mrf.mxu1 }
 0x117   : > { %v4036_v14 = vadd.f32 %v2825_v10, %v2824_v7  ;;  %v2914_v15 = vadd.f32 %v2913_v11, %v2912_v8  ;;  %v3583_v7 = vld [vmem:[%s3672_s9 + $0x378] ss:$36 sps:$4 sm:$0xff]   ;;  %v3587_v8 = vld [vmem:[%s3672_s9 + $0x2a8] ss:$36 sps:$4 sm:$0xff]  }
 0x118   : > { %v2827_v16 = vpop.f32.mrf.mxu0  ;;  %v2915_v17 = vpop.f32.mrf.mxu1  ;;  %v3590_v11 = vld [vmem:[%s3672_s9 + $0x3c4] ss:$36 sps:$4 sm:$0xff]  }
 0x119   : > { %v4040_v22 = vadd.f32 %v2914_v15, %v1700_v60  ;;  %v3591_v60 = vld [vmem:[%s3672_s9 + $0x2f0] ss:$36 sps:$4 sm:$0xff]  }
 0x11a   : > { %v2828_v25 = vpop.f32.mrf.mxu0  ;;  %v2916_v26 = vpop.f32.mrf.mxu1 }
 0x11b   : > { %v4046_v30 = vadd.f32 %v2828_v25, %v2827_v16  ;;  %v2917_v2 = vadd.f32 %v2916_v26, %v2915_v17  ;;  %v1719_v17 = vadd.f32 %v4009_v44, %v4016_v48  ;;  %v1724_v44 = vadd.f32 %v4020_v54, %v4016_v48 }
 0x11c   : > { %v2830_v31 = vpop.f32.mrf.mxu0  ;;  %v2918_v32 = vpop.f32.mrf.mxu1  ;;  %2253 = vmatmul.mubr.bf16.gmra.mxu1 %v3573_v20  ;;  %3275 = vmatmul.mubr.bf16.gmra.mxu0 %v3577_v21 }
 0x11d   : > { %v4048_v33 = vadd.f32 %v2917_v2, %v1703_v27  ;;  %2260 = vmatprep.mubr.bf16.mxu1 %v3580_v23  ;;  %3278 = vmatprep.mubr.bf16.mxu0 %v3581_v24 }
 0x11e   : > { %v2831_v36 = vpop.f32.mrf.mxu0  ;;  %v2919_v37 = vpop.f32.mrf.mxu1 }
 0x11f   : > { %v4052_v38 = vadd.f32 %v2831_v36, %v2830_v31  ;;  %v2920_v39 = vadd.f32 %v2919_v37, %v2918_v32  ;;  %v3588_v36 = vld [vmem:[%s3672_s9 + $0x3c0] ss:$36 sps:$4 sm:$0xff]   ;;  %v3592_v37 = vld [vmem:[%s3672_s9 + $0x338] ss:$36 sps:$4 sm:$0xff]  }
 0x120   : > { %v2833_v40 = vpop.f32.mrf.mxu0  ;;  %v2921_v41 = vpop.f32.mrf.mxu1 }
 0x121   : > { %v4056_v46 = vadd.f32 %v2920_v39, %v1708_v12  ;;  %v3595_v39 = vld [vmem:[%s3672_s9 + $0x40c] ss:$36 sps:$4 sm:$0xff]  }
 0x122   : > { %v2834_v52 = vpop.f32.mrf.mxu0  ;;  %v2922_v53 = vpop.f32.mrf.mxu1 }
 0x123   : > { %v4062_v56 = vadd.f32 %v2834_v52, %v2833_v40  ;;  %v2923_v18 = vadd.f32 %v2922_v53, %v2921_v41  ;;  %v3596_v40 = vld [vmem:[%s3672_s9 + $0x380] ss:$36 sps:$4 sm:$0xff]  }
 0x124   : > { %v2836_v57 = vpop.f32.mrf.mxu0  ;;  %v2924_v58 = vpop.f32.mrf.mxu1  ;;  %2261 = vmatmul.mubr.bf16.gmra.mxu1 %v3578_v42  ;;  %3279 = vmatmul.mubr.bf16.gmra.mxu0 %v3582_v43  ;;  %v1727_v43 = vadd.f32 %v4030_v6, %v4016_v48  ;;  %v1732_v6 = vadd.f32 %v4036_v14, %v4016_v48 }
 0x125   : > { %v4064_v59 = vadd.f32 %v2923_v18, %v1711_v55  ;;  %2268 = vmatprep.mubr.bf16.mxu1 %v3585_v47  ;;  %3282 = vmatprep.mubr.bf16.mxu0 %v3586_v49 }
 0x126   : > { %v2837_v63 = vpop.f32.mrf.mxu0  ;;  %v2925_v0 = vpop.f32.mrf.mxu1 }
 0x127   : > { %v4068_v1 = vadd.f32 %v2837_v63, %v2836_v57  ;;  %v2926_v4 = vadd.f32 %v2925_v0, %v2924_v58 }
 0x128   : > { %v2839_v5 = vpop.f32.mrf.mxu0  ;;  %v2927_v50 = vpop.f32.mrf.mxu1 }
 0x129   : > { %v4072_v10 = vadd.f32 %v2926_v4, %v1716_v28  ;;  %v3593_v28 = vld [vmem:[%s3672_s9 + $0x408] ss:$36 sps:$4 sm:$0xff]  }
 0x12a   : > { %v2840_v15 = vpop.f32.mrf.mxu0  ;;  %v2928_v16 = vpop.f32.mrf.mxu1  ;;  %v3597_v4 = vld [vmem:[%s3672_s9 + $0x3c8] ss:$36 sps:$4 sm:$0xff]  }
 0x12b   : > { %v4078_v20 = vadd.f32 %v2840_v15, %v2839_v5  ;;  %v2929_v34 = vadd.f32 %v2928_v16, %v2927_v50  ;;  %v3600_v50 = vld [vmem:[%s3672_s9 + $0x454] ss:$36 sps:$4 sm:$0xff]  }
 0x12c   : > { %v2842_v21 = vpop.f32.mrf.mxu0  ;;  %v2930_v23 = vpop.f32.mrf.mxu1  ;;  %2269 = vmatmul.mubr.bf16.gmra.mxu1 %v3583_v7  ;;  %3283 = vmatmul.mubr.bf16.gmra.mxu0 %v3587_v8  ;;  %v3601_v7 = vld [vmem:[%s3672_s9 + $0x410] ss:$36 sps:$4 sm:$0xff]  }
 0x12d   : > { %v4080_v24 = vadd.f32 %v2929_v34, %v1719_v17  ;;  %2276 = vmatprep.mubr.bf16.mxu1 %v3590_v11  ;;  %3286 = vmatprep.mubr.bf16.mxu0 %v3591_v60  ;;  %v1735_v60 = vadd.f32 %v4046_v30, %v4016_v48 }
 0x12e   : > { %v2843_v25 = vpop.f32.mrf.mxu0  ;;  %v2931_v26 = vpop.f32.mrf.mxu1 }
 0x12f   : > { %v4084_v27 = vadd.f32 %v2843_v25, %v2842_v21  ;;  %v2932_v2 = vadd.f32 %v2931_v26, %v2930_v23  ;;  %v1740_v25 = vadd.f32 %v4052_v38, %v4016_v48 }
 0x130   : > { %v2845_v31 = vpop.f32.mrf.mxu0  ;;  %v2933_v32 = vpop.f32.mrf.mxu1 }
 0x131   : > { %v4088_v12 = vadd.f32 %v2932_v2, %v1724_v44 }
 0x132   : > { %v2846_v41 = vpop.f32.mrf.mxu0  ;;  %v2934_v42 = vpop.f32.mrf.mxu1 }
 0x133   : > { %v4094_v47 = vadd.f32 %v2846_v41, %v2845_v31  ;;  %v2935_v54 = vadd.f32 %v2934_v42, %v2933_v32  ;;  %v3598_v31 = vld [vmem:[%s3672_s9 + $0x450] ss:$36 sps:$4 sm:$0xff]   ;;  %v3602_v32 = vld [vmem:[%s3672_s9 + $0x458] ss:$36 sps:$4 sm:$0xff]   ;;  %s2558_s9 = sshll.u32 %s4506_s16, 3 }
 0x134   : > { %v2848_v49 = vpop.f32.mrf.mxu0  ;;  %v2936_v52 = vpop.f32.mrf.mxu1  ;;  %2277 = vmatmul.mubr.bf16.gmra.mxu1 %v3588_v36  ;;  %3287 = vmatmul.mubr.bf16.gmra.mxu0 %v3592_v37  ;;  %s4374_s22 = scalar_lea.vmem %s4484_s3, %s2558_s9 }
 0x135   : > { %v4096_v53 = vadd.f32 %v2935_v54, %v1727_v43  ;;  %2284 = vmatprep.mubr.bf16.mxu1 %v3595_v39  ;;  %3290 = vmatprep.mubr.bf16.mxu0 %v3596_v40  ;;  %v1743_v40 = vadd.f32 %v4062_v56, %v4016_v48 }
 0x136   : > { %v2849_v55 = vpop.f32.mrf.mxu0  ;;  %v2937_v18 = vpop.f32.mrf.mxu1 }
 0x137   : > { %v4100_v57 = vadd.f32 %v2849_v55, %v2848_v49  ;;  %v2938_v58 = vadd.f32 %v2937_v18, %v2936_v52  ;;  %v1748_v55 = vadd.f32 %v4068_v1, %v4016_v48 }
 0x138   : > { %v2851_v63 = vpop.f32.mrf.mxu0  ;;  %v2939_v0 = vpop.f32.mrf.mxu1 }
 0x139   : > { %v4104_v5 = vadd.f32 %v2938_v58, %v1732_v6 }
 0x13a   : > { %v2852_v8 = vpop.f32.mrf.mxu0  ;;  %v2940_v11 = vpop.f32.mrf.mxu1 }
 0x13b   : > { %v4110_v15 = vadd.f32 %v2852_v8, %v2851_v63  ;;  %v2941_v14 = vadd.f32 %v2940_v11, %v2939_v0 }
 0x13c   : > { %v2854_v16 = vpop.f32.mrf.mxu0  ;;  %v2942_v17 = vpop.f32.mrf.mxu1  ;;  %2285 = vmatmul.mubr.bf16.gmra.mxu1 %v3593_v28  ;;  %3291 = vmatmul.mubr.bf16.gmra.mxu0 %v3597_v4  ;;  %v1751_v4 = vadd.f32 %v4078_v20, %v4016_v48 }
 0x13d   : > { %v4112_v34 = vadd.f32 %v2941_v14, %v1735_v60  ;;  %2292 = vmatprep.mubr.bf16.mxu1 %v3600_v50  ;;  %3294 = vmatprep.mubr.bf16.mxu0 %v3601_v7 }
 0x13e   : > { %v2855_v21 = vpop.f32.mrf.mxu0  ;;  %v2943_v23 = vpop.f32.mrf.mxu1 }
 0x13f   : > { %v4116_v26 = vadd.f32 %v2855_v21, %v2854_v16  ;;  %v2944_v30 = vadd.f32 %v2943_v23, %v2942_v17  ;;  %v1756_v16 = vadd.f32 %v4084_v27, %v4016_v48 }
 0x140   : > { %v2857_v44 = vpop.f32.mrf.mxu0  ;;  %v2945_v2 = vpop.f32.mrf.mxu1 }
 0x141   : > { %v4120_v36 = vadd.f32 %v2944_v30, %v1740_v25 }
 0x142   : > { %v2858_v37 = vpop.f32.mrf.mxu0  ;;  %v2946_v39 = vpop.f32.mrf.mxu1 }
 0x143   : > { %v4124_v41 = vadd.f32 %v2858_v37, %v2857_v44  ;;  %v2947_v42 = vadd.f32 %v2946_v39, %v2945_v2 }
 0x144   : > { %v2860_v43 = vpop.f32.mrf.mxu0  ;;  %v2948_v54 = vpop.f32.mrf.mxu1  ;;  %2293 = vmatmul.mubr.bf16.gmra.mxu1 %v3598_v31  ;;  %3295 = vmatmul.mubr.bf16.gmra.mxu0 %v3602_v32  ;;  %v1759_v31 = vadd.f32 %v4094_v47, %v4016_v48 }
 0x145   : > { %v4126_v38 = vadd.f32 %v2947_v42, %v1743_v40 }
 0x146   : > { %v2861_v49 = vpop.f32.mrf.mxu0  ;;  %v2949_v52 = vpop.f32.mrf.mxu1 }
 0x147   : > { %v4130_v18 = vadd.f32 %v2861_v49, %v2860_v43  ;;  %v2950_v6 = vadd.f32 %v2949_v52, %v2948_v54 }
 0x148   : > { %v2863_v58 = vpop.f32.mrf.mxu0  ;;  %v2951_v63 = vpop.f32.mrf.mxu1 }
 0x149   : > { %v4132_v56 = vadd.f32 %v2950_v6, %v1748_v55 }
 0x14a   : > { %v2864_v0 = vpop.f32.mrf.mxu0  ;;  %v2952_v28 = vpop.f32.mrf.mxu1 }
 0x14b   : > { %v4136_v50 = vadd.f32 %v2864_v0, %v2863_v58  ;;  %v2953_v7 = vadd.f32 %v2952_v28, %v2951_v63 }
 0x14c   : > { %v2954_v8 = vpop.f32.mrf.mxu1  ;;  %v3018_v11 = vpop.f32.mrf.mxu0 }
 0x14d   : > { %v4138_v60 = vadd.f32 %v2953_v7, %v1751_v4 }
 0x14e   : > { %v2955_v1 = vpop.f32.mrf.mxu1  ;;  %v3019_v14 = vpop.f32.mrf.mxu0 }
 0x14f   : > { %v2956_v17 = vadd.f32 %v2955_v1, %v2954_v8  ;;  %v3020_v21 = vadd.f32 %v3019_v14, %v3018_v11 }
 0x150   : > { %v2957_v23 = vpop.f32.mrf.mxu1  ;;  %v3021_v25 = vpop.f32.mrf.mxu0 }
 0x151   : > { %v4142_v30 = vadd.f32 %v2956_v17, %v1756_v16  ;;  %v4145_v20 = vadd.f32 %v3020_v21, %v4024_v62  ;;  %v1764_v62 = vadd.f32 %v4100_v57, %v4016_v48 }
 0x152   : > { %v2958_v44 = vpop.f32.mrf.mxu1  ;;  %v3022_v2 = vpop.f32.mrf.mxu0 }
 0x153   : > { %v2959_v32 = vadd.f32 %v2958_v44, %v2957_v23  ;;  %v3023_v37 = vadd.f32 %v3022_v2, %v3021_v25 }
 0x154   : > { %v2960_v39 = vpop.f32.mrf.mxu1  ;;  %v3024_v40 = vpop.f32.mrf.mxu0 }
 0x155   : > { %v4149_v42 = vadd.f32 %v2959_v32, %v1759_v31  ;;  %v4152_v27 = vadd.f32 %v3023_v37, %v4032_v9  ;;  %v1767_v9 = vadd.f32 %v4110_v15, %v4016_v48 }
 0x156   : > { %v2961_v43 = vpop.f32.mrf.mxu1  ;;  %v3025_v54 = vpop.f32.mrf.mxu0 }
 0x157   : > { %v2962_v49 = vadd.f32 %v2961_v43, %v2960_v39  ;;  %v3026_v52 = vadd.f32 %v3025_v54, %v3024_v40 }
 0x158   : > { %v2963_v55 = vpop.f32.mrf.mxu1  ;;  %v3027_v6 = vpop.f32.mrf.mxu0 }
 0x159   : > { %v4156_v58 = vadd.f32 %v2962_v49, %v1764_v62  ;;  %v4159_v47 = vadd.f32 %v3026_v52, %v4040_v22  ;;  %v1772_v22 = vadd.f32 %v4116_v26, %v4016_v48 }
 0x15a   : > { %v2964_v63 = vpop.f32.mrf.mxu1  ;;  %v3028_v0 = vpop.f32.mrf.mxu0 }
 0x15b   : > { %v2965_v28 = vadd.f32 %v2964_v63, %v2963_v55  ;;  %v3029_v4 = vadd.f32 %v3028_v0, %v3027_v6 }
 0x15c   : > { %v2966_v7 = vpop.f32.mrf.mxu1  ;;  %v3030_v8 = vpop.f32.mrf.mxu0 }
 0x15d   : > { %v4163_v11 = vadd.f32 %v2965_v28, %v1767_v9  ;;  %v4166_v57 = vadd.f32 %v3029_v4, %v4048_v33  ;;  %v1775_v33 = vadd.f32 %v4124_v41, %v4016_v48 }
 0x15e   : > { %v2967_v1 = vpop.f32.mrf.mxu1  ;;  %v3031_v14 = vpop.f32.mrf.mxu0 }
 0x15f   : > { %v2968_v16 = vadd.f32 %v2967_v1, %v2966_v7  ;;  %v3032_v17 = vadd.f32 %v3031_v14, %v3030_v8 }
 0x160   : > { %v2969_v21 = vpop.f32.mrf.mxu1  ;;  %v3033_v23 = vpop.f32.mrf.mxu0 }
 0x161   : > { %v4170_v25 = vadd.f32 %v2968_v16, %v1772_v22  ;;  %v4173_v15 = vadd.f32 %v3032_v17, %v4056_v46  ;;  %v1780_v46 = vadd.f32 %v4130_v18, %v4016_v48 }
 0x162   : > { %v2970_v44 = vpop.f32.mrf.mxu1  ;;  %v3034_v2 = vpop.f32.mrf.mxu0 }
 0x163   : > { %v2971_v31 = vadd.f32 %v2970_v44, %v2969_v21  ;;  %v3035_v32 = vadd.f32 %v3034_v2, %v3033_v23 }
 0x164   : > { %v2972_v37 = vpop.f32.mrf.mxu1  ;;  %v3036_v39 = vpop.f32.mrf.mxu0 }
 0x165   : > { %v4177_v40 = vadd.f32 %v2971_v31, %v1775_v33  ;;  %v4180_v26 = vadd.f32 %v3035_v32, %v4064_v59  ;;  %v1783_v59 = vadd.f32 %v4136_v50, %v4016_v48 }
 0x166   : > { %v2973_v43 = vpop.f32.mrf.mxu1  ;;  %v3037_v54 = vpop.f32.mrf.mxu0 }
 0x167   : > { %v2974_v62 = vadd.f32 %v2973_v43, %v2972_v37  ;;  %v3038_v49 = vadd.f32 %v3037_v54, %v3036_v39 }
 0x168   : > { %v2975_v52 = vpop.f32.mrf.mxu1  ;;  %v3039_v55 = vpop.f32.mrf.mxu0 }
 0x169   : > { %v4184_v6 = vadd.f32 %v2974_v62, %v1780_v46  ;;  %v4187_v41 = vadd.f32 %v3038_v49, %v4072_v10  ;;  %v1788_v10 = vadd.f32 %v3967_v51, %v4016_v48 }
 0x16a   : > { %v2976_v63 = vpop.f32.mrf.mxu1  ;;  %v3040_v0 = vpop.f32.mrf.mxu0 }
 0x16b   : > { %v2977_v9 = vadd.f32 %v2976_v63, %v2975_v52  ;;  %v3041_v28 = vadd.f32 %v3040_v0, %v3039_v55 }
 0x16c   : > { %v2978_v4 = vpop.f32.mrf.mxu1  ;;  %v3042_v7 = vpop.f32.mrf.mxu0 }
 0x16d   : > { %v4191_v8 = vadd.f32 %v2977_v9, %v1783_v59  ;;  %v4194_v18 = vadd.f32 %v3041_v28, %v4080_v24  ;;  %v1791_v24 = vadd.f32 %v3975_v61, %v4016_v48 }
 0x16e   : > { %v2979_v1 = vpop.f32.mrf.mxu1  ;;  %v3043_v14 = vpop.f32.mrf.mxu0 }
 0x16f   : > { %v2980_v22 = vadd.f32 %v2979_v1, %v2978_v4  ;;  %v3044_v16 = vadd.f32 %v3043_v14, %v3042_v7 }
 0x170   : > { %v2981_v17 = vpop.f32.mrf.mxu1  ;;  %v3045_v21 = vpop.f32.mrf.mxu0 }
 0x171   : > { %v4198_v23 = vadd.f32 %v2980_v22, %v1788_v10  ;;  %v4201_v50 = vadd.f32 %v3044_v16, %v4088_v12  ;;  %v1796_v12 = vadd.f32 %v3979_v3, %v4016_v48 }
 0x172   : > { %v2982_v44 = vpop.f32.mrf.mxu1  ;;  %v3046_v2 = vpop.f32.mrf.mxu0 }
 0x173   : > { %v2983_v33 = vadd.f32 %v2982_v44, %v2981_v17  ;;  %v3047_v31 = vadd.f32 %v3046_v2, %v3045_v21 }
 0x174   : > { %v2984_v32 = vpop.f32.mrf.mxu1  ;;  %v3048_v37 = vpop.f32.mrf.mxu0 }
 0x175   : > { %v4205_v39 = vadd.f32 %v2983_v33, %v1791_v24  ;;  %v4208_v51 = vadd.f32 %v3047_v31, %v4096_v53  ;;  %v1799_v53 = vadd.f32 %v3987_v13, %v4016_v48 }
 0x176   : > { %v2985_v43 = vpop.f32.mrf.mxu1  ;;  %v3049_v54 = vpop.f32.mrf.mxu0 }
 0x177   : > { %v2986_v46 = vadd.f32 %v2985_v43, %v2984_v32  ;;  %v3050_v62 = vadd.f32 %v3049_v54, %v3048_v37 }
 0x178   : > { %v2987_v49 = vpop.f32.mrf.mxu1  ;;  %v3051_v52 = vpop.f32.mrf.mxu0 }
 0x179   : > { %v4212_v55 = vadd.f32 %v2986_v46, %v1796_v12  ;;  %v4215_v61 = vadd.f32 %v3050_v62, %v4104_v5  ;;  %v1804_v5 = vadd.f32 %v3991_v19, %v4016_v48 }
 0x17a   : > { %v2988_v63 = vpop.f32.mrf.mxu1  ;;  %v3052_v0 = vpop.f32.mrf.mxu0 }
 0x17b   : > { %v2989_v59 = vadd.f32 %v2988_v63, %v2987_v49  ;;  %v3053_v9 = vadd.f32 %v3052_v0, %v3051_v52 }
 0x17c   : > { %v2990_v28 = vpop.f32.mrf.mxu1  ;;  %v3054_v4 = vpop.f32.mrf.mxu0 }
 0x17d   : > { %v4219_v7 = vadd.f32 %v2989_v59, %v1799_v53  ;;  %v4222_v3 = vadd.f32 %v3053_v9, %v4112_v34  ;;  %v1807_v34 = vadd.f32 %v3999_v29, %v4016_v48 }
 0x17e   : > { %v2991_v1 = vpop.f32.mrf.mxu1  ;;  %v3055_v14 = vpop.f32.mrf.mxu0 }
 0x17f   : > { %v2992_v10 = vadd.f32 %v2991_v1, %v2990_v28  ;;  %v3056_v22 = vadd.f32 %v3055_v14, %v3054_v4 }
 0x180   : > { %v2993_v16 = vpop.f32.mrf.mxu1  ;;  %v3057_v17 = vpop.f32.mrf.mxu0 }
 0x181   : > { %v4226_v21 = vadd.f32 %v2992_v10, %v1804_v5  ;;  %v4229_v13 = vadd.f32 %v3056_v22, %v4120_v36  ;;  %v1812_v36 = vadd.f32 %v4003_v35, %v4016_v48 }
 0x182   : > { %v2994_v44 = vpop.f32.mrf.mxu1  ;;  %v3058_v2 = vpop.f32.mrf.mxu0 }
 0x183   : > { %v2995_v24 = vadd.f32 %v2994_v44, %v2993_v16  ;;  %v3059_v33 = vadd.f32 %v3058_v2, %v3057_v17 }
 0x184   : > { %v2996_v31 = vpop.f32.mrf.mxu1  ;;  %v3060_v32 = vpop.f32.mrf.mxu0 }
 0x185   : > { %v4233_v37 = vadd.f32 %v2995_v24, %v1807_v34  ;;  %v4236_v19 = vadd.f32 %v3059_v33, %v4126_v38  ;;  %v1815_v38 = vadd.f32 %v4011_v45, %v4016_v48 }
 0x186   : > { %v2997_v43 = vpop.f32.mrf.mxu1  ;;  %v3061_v54 = vpop.f32.mrf.mxu0 }
 0x187   : > { %v2998_v12 = vadd.f32 %v2997_v43, %v2996_v31  ;;  %v3062_v46 = vadd.f32 %v3061_v54, %v3060_v32 }
 0x188   : > { %v2999_v62 = vpop.f32.mrf.mxu1  ;;  %v3063_v49 = vpop.f32.mrf.mxu0 }
 0x189   : > { %v4240_v52 = vadd.f32 %v2998_v12, %v1812_v36  ;;  %v4243_v29 = vadd.f32 %v3062_v46, %v4132_v56 }
 0x18a   : > { %v3000_v63 = vpop.f32.mrf.mxu1  ;;  %v3064_v0 = vpop.f32.mrf.mxu0 }
 0x18b   : > { %v3001_v53 = vadd.f32 %v3000_v63, %v2999_v62  ;;  %v3065_v59 = vadd.f32 %v3064_v0, %v3063_v49 }
 0x18c   : > { %v3066_v9 = vpop.f32.mrf.mxu0  ;;  %v4247_v28 = vpop.f32.mrf.mxu1 }
 0x18d   : > { %v4249_v35 = vadd.f32 %v3001_v53, %v1815_v38  ;;  %v4252_v4 = vadd.f32 %v3065_v59, %v4138_v60 }
 0x18e   : > { %v3067_v1 = vpop.f32.mrf.mxu0  ;;  %v4254_v14 = vpop.f32.mrf.mxu1 }
 0x18f   : > { %v3068_v56 = vadd.f32 %v3067_v1, %v3066_v9 }
 0x190   : > { %v3069_v5 = vpop.f32.mrf.mxu0  ;;  %v4256_v10 = vpop.f32.mrf.mxu1 }
 0x191   : > { %v4259_v22 = vadd.f32 %v3068_v56, %v4142_v30 }
 0x192   : > { %v3070_v45 = vpop.f32.mrf.mxu0  ;;  %v4261_v48 = vpop.f32.mrf.mxu1 }
 0x193   : > { %v3071_v16 = vadd.f32 %v3070_v45, %v3069_v5 }
 0x194   : > { %v3072_v17 = vpop.f32.mrf.mxu0  ;;  %v4263_v44 = vpop.f32.mrf.mxu1 }
 0x195   : > { %v4266_v60 = vadd.f32 %v3071_v16, %v4149_v42 }
 0x196   : > { %v3073_v2 = vpop.f32.mrf.mxu0  ;;  %v4268_v34 = vpop.f32.mrf.mxu1 }
 0x197   : > { %4485 = vst [vmem:[#allocation2_spill] sm:$0xff] %v4266_v60  ;;  %v3074_v24 = vadd.f32 %v3073_v2, %v3072_v17 }
 0x198   : > { %v3075_v33 = vpop.f32.mrf.mxu0  ;;  %v4270_v31 = vpop.f32.mrf.mxu1 }
 0x199   : > { %v4273_v30 = vadd.f32 %v3074_v24, %v4156_v58 }
 0x19a   : > { %v3076_v32 = vpop.f32.mrf.mxu0  ;;  %v4275_v43 = vpop.f32.mrf.mxu1 }
 0x19b   : > { %v3077_v54 = vadd.f32 %v3076_v32, %v3075_v33 }
 0x19c   : > { %v3078_v36 = vpop.f32.mrf.mxu0  ;;  %v4277_v12 = vpop.f32.mrf.mxu1 }
 0x19d   : > { %v4280_v42 = vadd.f32 %v3077_v54, %v4163_v11 }
 0x19e   : > { %v3079_v46 = vpop.f32.mrf.mxu0  ;;  %v4282_v62 = vpop.f32.mrf.mxu1 }
 0x19f   : > { %v3080_v49 = vadd.f32 %v3079_v46, %v3078_v36 }
 0x1a0   : > { %v3081_v63 = vpop.f32.mrf.mxu0  ;;  %v4284_v0 = vpop.f32.mrf.mxu1 }
 0x1a1   : > { %v4287_v58 = vadd.f32 %v3080_v49, %v4170_v25 }
 0x1a2   : > { %v3082_v38 = vpop.f32.mrf.mxu0  ;;  %v4289_v53 = vpop.f32.mrf.mxu1 }
 0x1a3   : > { %4486 = vst [vmem:[#allocation3_spill] sm:$0xff] %v4287_v58  ;;  %v3083_v59 = vadd.f32 %v3082_v38, %v3081_v63 }
 0x1a4   : > { %v3084_v9 = vpop.f32.mrf.mxu0  ;;  %v4291_v1 = vpop.f32.mrf.mxu1 }
 0x1a5   : > { %v4294_v11 = vadd.f32 %v3083_v59, %v4177_v40 }
 0x1a6   : > { %v3085_v56 = vpop.f32.mrf.mxu0  ;;  %v4296_v5 = vpop.f32.mrf.mxu1 }
 0x1a7   : > { %4487 = vst [vmem:[#allocation4_spill] sm:$0xff] %v4294_v11  ;;  %v3086_v45 = vadd.f32 %v3085_v56, %v3084_v9 }
 0x1a8   : > { %v3087_v16 = vpop.f32.mrf.mxu0  ;;  %v4298_v17 = vpop.f32.mrf.mxu1 }
 0x1a9   : > { %v4301_v25 = vadd.f32 %v3086_v45, %v4184_v6 }
 0x1aa   : > { %v3088_v2 = vpop.f32.mrf.mxu0  ;;  %v4303_v24 = vpop.f32.mrf.mxu1 }
 0x1ab   : > { %4488 = vst [vmem:[#allocation5_spill] sm:$0xff] %v4301_v25  ;;  %v3089_v33 = vadd.f32 %v3088_v2, %v3087_v16 }
 0x1ac   : > { %v3090_v32 = vpop.f32.mrf.mxu0  ;;  %v4305_v54 = vpop.f32.mrf.mxu1 }
 0x1ad   : > { %v4308_v40 = vadd.f32 %v3089_v33, %v4191_v8 }
 0x1ae   : > { %v3091_v36 = vpop.f32.mrf.mxu0  ;;  %v4310_v46 = vpop.f32.mrf.mxu1 }
 0x1af   : > { %4489 = vst [vmem:[#allocation6_spill] sm:$0xff] %v4308_v40  ;;  %v3092_v49 = vadd.f32 %v3091_v36, %v3090_v32 }
 0x1b0   : > { %v3093_v63 = vpop.f32.mrf.mxu0  ;;  %v4312_v38 = vpop.f32.mrf.mxu1 }
 0x1b1   : > { %v4315_v6 = vadd.f32 %v3092_v49, %v4198_v23 }
 0x1b2   : > { %v3094_v59 = vpop.f32.mrf.mxu0  ;;  %v4317_v9 = vpop.f32.mrf.mxu1 }
 0x1b3   : > { %4490 = vst [vmem:[#allocation7_spill] sm:$0xff] %v4315_v6  ;;  %v3095_v56 = vadd.f32 %v3094_v59, %v3093_v63 }
 0x1b4   : > { %v3096_v45 = vpop.f32.mrf.mxu0  ;;  %v4319_v16 = vpop.f32.mrf.mxu1 }
 0x1b5   : > { %v4322_v8 = vadd.f32 %v3095_v56, %v4205_v39 }
 0x1b6   : > { %v3097_v2 = vpop.f32.mrf.mxu0  ;;  %v4324_v33 = vpop.f32.mrf.mxu1 }
 0x1b7   : > { %4491 = vst [vmem:[#allocation8_spill] sm:$0xff] %v4322_v8  ;;  %v3098_v32 = vadd.f32 %v3097_v2, %v3096_v45 }
 0x1b8   : > { %v3099_v36 = vpop.f32.mrf.mxu0  ;;  %v4326_v11 = vpop.f32.mrf.mxu1 }
 0x1b9   : > { %v4329_v23 = vadd.f32 %v3098_v32, %v4212_v55 }
 0x1ba   : > { %v3100_v49 = vpop.f32.mrf.mxu0  ;;  %v4331_v6 = vpop.f32.mrf.mxu1 }
 0x1bb   : > { %4492 = vst [vmem:[#allocation9_spill] sm:$0xff] %v4329_v23  ;;  %v3101_v63 = vadd.f32 %v3100_v49, %v3099_v36 }
 0x1bc   : > { %v3102_v59 = vpop.f32.mrf.mxu0  ;;  %v4333_v40 = vpop.f32.mrf.mxu1 }
 0x1bd   : > { %v4336_v39 = vadd.f32 %v3101_v63, %v4219_v7 }
 0x1be   : > { %v3103_v56 = vpop.f32.mrf.mxu0  ;;  %v4338_v8 = vpop.f32.mrf.mxu1 }
 0x1bf   : > { %4493 = vst [vmem:[#allocation10_spill] sm:$0xff] %v4336_v39  ;;  %v3104_v45 = vadd.f32 %v3103_v56, %v3102_v59  ;;  %v3138_v59 = vadd.f32 %v4268_v34, %v4263_v44 }
 0x1c0   : > { %v3105_v2 = vpop.f32.mrf.mxu0  ;;  %v4340_v58 = vpop.f32.mrf.mxu1 }
 0x1c1   : > { %v4343_v55 = vadd.f32 %v3104_v45, %v4226_v21  ;;  %v3132_v45 = vadd.f32 %v4254_v14, %v4247_v28  ;;  %v2183_v44 = vadd.f32 %v3138_v59, %v4159_v47  ;;  %v3135_v28 = vadd.f32 %v4261_v48, %v4256_v10 }
 0x1c2   : > { %v3106_v32 = vpop.f32.mrf.mxu0  ;;  %v4345_v23 = vpop.f32.mrf.mxu1 }
 0x1c3   : > { %v3107_v36 = vadd.f32 %v3106_v32, %v3105_v2  ;;  %v2178_v48 = vadd.f32 %v3135_v28, %v4152_v27 }
 0x1c4   : > { %v3108_v49 = vpop.f32.mrf.mxu0  ;;  %v4347_v25 = vpop.f32.mrf.mxu1 }
 0x1c5   : > { %v4350_v7 = vadd.f32 %v3107_v36, %v4233_v37  ;;  %v3141_v36 = vadd.f32 %v4275_v43, %v4270_v31 }
 0x1c6   : > { %v3109_v63 = vpop.f32.mrf.mxu0  ;;  %v4352_v39 = vpop.f32.mrf.mxu1 }
 0x1c7   : > { %4494 = vst [vmem:[#allocation11_spill] sm:$0xff] %v4350_v7  ;;  %v3110_v56 = vadd.f32 %v3109_v63, %v3108_v49  ;;  %v3150_v49 = vadd.f32 %v4296_v5, %v4291_v1  ;;  %v2186_v59 = vadd.f32 %v3141_v36, %v4166_v57  ;;  %v3153_v1 = vadd.f32 %v4303_v24, %v4298_v17 }
 0x1c8   : > { %v3111_v60 = vpop.f32.mrf.mxu0  ;;  %v4356_v21 = vpop.f32.mrf.mxu1  ;;  %v3162_v17 = vadd.f32 %v4324_v33, %v4319_v16  ;;  %v3165_v16 = vadd.f32 %v4331_v6, %v4326_v11  ;;  %v3174_v11 = vadd.f32 %v4352_v39, %v4347_v25 }
 0x1c9   : > { %v4361_v2 = vadd.f32 %v3110_v56, %v4240_v52  ;;  %v2199_v5 = vadd.f32 %v3150_v49, %v4187_v41  ;;  %v2202_v41 = vadd.f32 %v3153_v1, %v4194_v18 }
 0x1ca   : > { %v3112_v32 = vpop.f32.mrf.mxu0  ;;  %v4364_v37 = vpop.f32.mrf.mxu1  ;;  %v2215_v18 = vadd.f32 %v3162_v17, %v4215_v61  ;;  %v2218_v61 = vadd.f32 %v3165_v16, %v4222_v3  ;;  %v2231_v3 = vadd.f32 %v3174_v11, %v4243_v29  ;;  %v4495_v16 = vld [vmem:[#allocation2_spill] sm:$0xff]  ;;  %v4497_v11 = vld [vmem:[#allocation3_spill] sm:$0xff] }
 0x1cb   : > { %v3113_v7 = vadd.f32 %v3112_v32, %v3111_v60  ;;  %v2175_v60 = vadd.f32 %v3132_v45, %v4145_v20  ;;  %v3177_v25 = vadd.f32 %v4364_v37, %v4356_v21 }
 0x1cc   : > { %v4369_v34 = vpop.f32.mrf.mxu1  ;;  %v3268_v52 = vpop.f32.mrf.mxu0 }
 0x1cd   : > { %v4379_v14 = vadd.f32 %v3113_v7, %v4249_v35  ;;  %v2344_v31 = vadd.f32 %v3268_v52, %v2183_v44  ;;  %v3144_v35 = vadd.f32 %v4282_v62, %v4277_v12  ;;  %v3147_v12 = vadd.f32 %v4289_v53, %v4284_v0 }
 0x1ce   : > { %v4382_v47 = vpop.f32.mrf.mxu1  ;;  %v2335_v43 = vpop.f32.mrf.mxu0  ;;  %v3156_v0 = vadd.f32 %v4310_v46, %v4305_v54  ;;  %v3159_v54 = vadd.f32 %v4317_v9, %v4312_v38  ;;  %v3168_v38 = vadd.f32 %v4338_v8, %v4333_v40  ;;  %v3171_v40 = vadd.f32 %v4345_v23, %v4340_v58 }
 0x1cf   : > { %2464 = vst [vmem:[%s4374_s22 + $0x10] sm:$0xff] %v2344_v31  ;;  %v2336_v63 = vadd.f32 %v2335_v43, %v2175_v60  ;;  %v2191_v27 = vadd.f32 %v3144_v35, %v4173_v15  ;;  %v2194_v15 = vadd.f32 %v3147_v12, %v4180_v26  ;;  %v2234_v37 = vadd.f32 %v3177_v25, %v4252_v4 }
 0x1d0   : > { %v4388_v56 = vpop.f32.mrf.mxu1  ;;  %v3269_v10 = vpop.f32.mrf.mxu0  ;;  %v2207_v26 = vadd.f32 %v3156_v0, %v4201_v50  ;;  %v2210_v50 = vadd.f32 %v3159_v54, %v4208_v51  ;;  %v2223_v51 = vadd.f32 %v3168_v38, %v4229_v13  ;;  %v2226_v23 = vadd.f32 %v3171_v40, %v4236_v19  ;;  %v4498_v38 = vld [vmem:[#allocation6_spill] sm:$0xff] }
 0x1d1   : > { %2462 = vst [vmem:[%s4374_s22] sm:$0xff] %v2336_v63  ;;  %v2347_v20 = vadd.f32 %v3269_v10, %v2186_v59 }
 0x1d2   : > { %v4394_v7 = vpop.f32.mrf.mxu1  ;;  %v2338_v45 = vpop.f32.mrf.mxu0 }
 0x1d3   : > { %2465 = vst [vmem:[%s4374_s22 + $0x18] sm:$0xff] %v2347_v20  ;;  %v2339_v57 = vadd.f32 %v2338_v45, %v2178_v48 }
 0x1d4   : > { %v3184_v32 = vpop.f32.mrf.mxu1  ;;  %v3272_v36 = vpop.f32.mrf.mxu0 }
 0x1d5   : > { %2463 = vst [vmem:[%s4374_s22 + $0x8] sm:$0xff] %v2339_v57  ;;  %v2360_v62 = vadd.f32 %v3272_v36, %v2199_v5 }
 0x1d6   : > { %v3185_v44 = vpop.f32.mrf.mxu1  ;;  %v2351_v52 = vpop.f32.mrf.mxu0 }
 0x1d7   : > { %2468 = vst [vmem:[%s4374_s22 + $0x30] sm:$0xff] %v2360_v62  ;;  %v2352_v24 = vadd.f32 %v2351_v52, %v2191_v27  ;;  %v3186_v12 = vadd.f32 %v3185_v44, %v3184_v32  ;;  %v3180_v27 = vadd.f32 %v4382_v47, %v4369_v34 }
 0x1d8   : > { %v3187_v28 = vpop.f32.mrf.mxu1  ;;  %v3273_v31 = vpop.f32.mrf.mxu0 }
 0x1d9   : > { %2466 = vst [vmem:[%s4374_s22 + $0x20] sm:$0xff] %v2352_v24  ;;  %v2363_v53 = vadd.f32 %v3273_v31, %v2202_v41  ;;  %v2247_v44 = vadd.f32 %v3186_v12, %v4273_v30  ;;  %v3183_v41 = vadd.f32 %v4394_v7, %v4388_v56  ;;  %v2239_v47 = vadd.f32 %v3180_v27, %v4259_v22 }
 0x1da   : > { %v3188_v60 = vpop.f32.mrf.mxu1  ;;  %v2354_v43 = vpop.f32.mrf.mxu0 }
 0x1db   : > { %2469 = vst [vmem:[%s4374_s22 + $0x38] sm:$0xff] %v2363_v53  ;;  %v2355_v33 = vadd.f32 %v2354_v43, %v2194_v15  ;;  %v3189_v17 = vadd.f32 %v3188_v60, %v3187_v28  ;;  %v2242_v56 = vadd.f32 %v3183_v41, %v4495_v16 }
 0x1dc   : > { %v3190_v49 = vpop.f32.mrf.mxu1  ;;  %v3276_v63 = vpop.f32.mrf.mxu0 }
 0x1dd   : > { %2467 = vst [vmem:[%s4374_s22 + $0x28] sm:$0xff] %v2355_v33  ;;  %v2376_v46 = vadd.f32 %v3276_v63, %v2215_v18  ;;  %v2250_v53 = vadd.f32 %v3189_v17, %v4280_v42  ;;  %v4496_v63 = vld [vmem:[#allocation5_spill] sm:$0xff] }
 0x1de   : > { %v3191_v59 = vpop.f32.mrf.mxu1  ;;  %v2367_v10 = vpop.f32.mrf.mxu0 }
 0x1df   : > { %2472 = vst [vmem:[%s4374_s22 + $0x50] sm:$0xff] %v2376_v46  ;;  %v2368_v6 = vadd.f32 %v2367_v10, %v2207_v26  ;;  %v3192_v60 = vadd.f32 %v3191_v59, %v3190_v49 }
 0x1e0   : > { %v3193_v35 = vpop.f32.mrf.mxu1  ;;  %v3277_v20 = vpop.f32.mrf.mxu0 }
 0x1e1   : > { %2470 = vst [vmem:[%s4374_s22 + $0x40] sm:$0xff] %v2368_v6  ;;  %v2379_v9 = vadd.f32 %v3277_v20, %v2218_v61  ;;  %v2255_v49 = vadd.f32 %v3192_v60, %v4497_v11 }
 0x1e2   : > { %v3194_v48 = vpop.f32.mrf.mxu1  ;;  %v2370_v45 = vpop.f32.mrf.mxu0 }
 0x1e3   : > { %2473 = vst [vmem:[%s4374_s22 + $0x58] sm:$0xff] %v2379_v9  ;;  %v2371_v39 = vadd.f32 %v2370_v45, %v2210_v50  ;;  %v3195_v42 = vadd.f32 %v3194_v48, %v3193_v35 }
 0x1e4   : > { %v3196_v1 = vpop.f32.mrf.mxu1  ;;  %v3280_v57 = vpop.f32.mrf.mxu0 }
 0x1e5   : > { %2471 = vst [vmem:[%s4374_s22 + $0x48] sm:$0xff] %v2371_v39  ;;  %v2392_v8 = vadd.f32 %v3280_v57, %v2231_v3  ;;  %v4499_v3 = vld [vmem:[#allocation4_spill] sm:$0xff] }
 0x1e6   : > { %v3197_v5 = vpop.f32.mrf.mxu1  ;;  %v2383_v36 = vpop.f32.mrf.mxu0  ;;  %v2258_v35 = vadd.f32 %v3195_v42, %v4499_v3 }
 0x1e7   : > { %2476 = vst [vmem:[%s4374_s22 + $0x70] sm:$0xff] %v2392_v8  ;;  %v2384_v21 = vadd.f32 %v2383_v36, %v2223_v51  ;;  %v3198_v0 = vadd.f32 %v3197_v5, %v3196_v1  ;;  %v4500_v8 = vld [vmem:[#allocation9_spill] sm:$0xff] }
 0x1e8   : > { %v3199_v29 = vpop.f32.mrf.mxu1  ;;  %v3281_v62 = vpop.f32.mrf.mxu0 }
 0x1e9   : > { %2474 = vst [vmem:[%s4374_s22 + $0x60] sm:$0xff] %v2384_v21  ;;  %v2395_v58 = vadd.f32 %v3281_v62, %v2234_v37  ;;  %v2263_v54 = vadd.f32 %v3198_v0, %v4496_v63  ;;  %v4501_v37 = vld [vmem:[#allocation7_spill] sm:$0xff] }
 0x1ea   : > { %v3200_v13 = vpop.f32.mrf.mxu1  ;;  %v2386_v52 = vpop.f32.mrf.mxu0 }
 0x1eb   : > { %2477 = vst [vmem:[%s4374_s22 + $0x78] sm:$0xff] %v2395_v58  ;;  %v2387_v32 = vadd.f32 %v2386_v52, %v2226_v23  ;;  %v3201_v22 = vadd.f32 %v3200_v13, %v3199_v29  ;;  %v4502_v23 = vld [vmem:[#allocation10_spill] sm:$0xff] }
 0x1ec   : > { %v3202_v4 = vpop.f32.mrf.mxu1  ;;  %v3284_v24 = vpop.f32.mrf.mxu0 }
 0x1ed   : > { %2475 = vst [vmem:[%s4374_s22 + $0x68] sm:$0xff] %v2387_v32  ;;  %v2408_v34 = vadd.f32 %v3284_v24, %v2247_v44  ;;  %v2266_v9 = vadd.f32 %v3201_v22, %v4498_v38 }
 0x1ee   : > { %v3203_v19 = vpop.f32.mrf.mxu1  ;;  %v2399_v31 = vpop.f32.mrf.mxu0 }
 0x1ef   : > { %2480 = vst [vmem:[%s4374_s22 + $0x90] sm:$0xff] %v2408_v34  ;;  %v2400_v28 = vadd.f32 %v2399_v31, %v2239_v47  ;;  %v3204_v25 = vadd.f32 %v3203_v19, %v3202_v4  ;;  %v4503_v4 = vld [vmem:[#allocation8_spill] sm:$0xff] }
 0x1f0   : > { %v3205_v30 = vpop.f32.mrf.mxu1  ;;  %v3285_v15 = vpop.f32.mrf.mxu0 }
 0x1f1   : > { %2478 = vst [vmem:[%s4374_s22 + $0x80] sm:$0xff] %v2400_v28  ;;  %v2411_v43 = vadd.f32 %v3285_v15, %v2250_v53  ;;  %v2271_v29 = vadd.f32 %v3204_v25, %v4501_v37 }
 0x1f2   : > { %v3206_v7 = vpop.f32.mrf.mxu1  ;;  %v2402_v33 = vpop.f32.mrf.mxu0 }
 0x1f3   : > { %2481 = vst [vmem:[%s4374_s22 + $0x98] sm:$0xff] %v2411_v43  ;;  %v2403_v18 = vadd.f32 %v2402_v33, %v2242_v56  ;;  %v3207_v12 = vadd.f32 %v3206_v7, %v3205_v30  ;;  %v4504_v7 = vld [vmem:[#allocation11_spill] sm:$0xff] }
 0x1f4   : > { %v3208_v46 = vpop.f32.mrf.mxu1  ;;  %v3288_v26 = vpop.f32.mrf.mxu0 }
 0x1f5   : > { %2479 = vst [vmem:[%s4374_s22 + $0x88] sm:$0xff] %v2403_v18  ;;  %v2424_v10 = vadd.f32 %v3288_v26, %v2263_v54  ;;  %v2274_v24 = vadd.f32 %v3207_v12, %v4503_v4 }
 0x1f6   : > { %v3209_v59 = vpop.f32.mrf.mxu1  ;;  %v2415_v6 = vpop.f32.mrf.mxu0 }
 0x1f7   : > { %2484 = vst [vmem:[%s4374_s22 + $0xb0] sm:$0xff] %v2424_v10  ;;  %v3210_v61 = vadd.f32 %v3209_v59, %v3208_v46  ;;  %v2416_v20 = vadd.f32 %v2415_v6, %v2255_v49 }
 0x1f8   : > { %v3211_v50 = vpop.f32.mrf.mxu1  ;;  %v3289_v45 = vpop.f32.mrf.mxu0 }
 0x1f9   : > { %2482 = vst [vmem:[%s4374_s22 + $0xa0] sm:$0xff] %v2416_v20  ;;  %v2427_v39 = vadd.f32 %v3289_v45, %v2266_v9  ;;  %v2279_v51 = vadd.f32 %v3210_v61, %v4500_v8 }
 0x1fa   : > { %v3212_v48 = vpop.f32.mrf.mxu1  ;;  %v2418_v1 = vpop.f32.mrf.mxu0 }
 0x1fb   : > { %2485 = vst [vmem:[%s4374_s22 + $0xb8] sm:$0xff] %v2427_v39  ;;  %v3213_v57 = vadd.f32 %v3212_v48, %v3211_v50  ;;  %v2419_v40 = vadd.f32 %v2418_v1, %v2258_v35 }
 0x1fc   : > { %v3214_v5 = vpop.f32.mrf.mxu1  ;;  %v3292_v36 = vpop.f32.mrf.mxu0 }
 0x1fd   : > { %2483 = vst [vmem:[%s4374_s22 + $0xa8] sm:$0xff] %v2419_v40  ;;  %v2440_v21 = vadd.f32 %v3292_v36, %v2279_v51  ;;  %v2282_v13 = vadd.f32 %v3213_v57, %v4502_v23 }
 0x1fe   : > { %v3215_v62 = vpop.f32.mrf.mxu1  ;;  %v2431_v27 = vpop.f32.mrf.mxu0 }
 0x1ff   : > { %2488 = vst [vmem:[%s4374_s22 + $0xd0] sm:$0xff] %v2440_v21  ;;  %v2432_v58 = vadd.f32 %v2431_v27, %v2271_v29  ;;  %v3216_v32 = vadd.f32 %v3215_v62, %v3214_v5 }
 0x200   : > { %v3217_v52 = vpop.f32.mrf.mxu1  ;;  %v3293_v17 = vpop.f32.mrf.mxu0 }
 0x201   : > { %2486 = vst [vmem:[%s4374_s22 + $0xc0] sm:$0xff] %v2432_v58  ;;  %v2443_v44 = vadd.f32 %v3293_v17, %v2282_v13  ;;  %v2287_v28 = vadd.f32 %v3216_v32, %v4343_v55 }
 0x202   : > { %v3218_v41 = vpop.f32.mrf.mxu1  ;;  %v2434_v34 = vpop.f32.mrf.mxu0 }
 0x203   : > { %2489 = vst [vmem:[%s4374_s22 + $0xd8] sm:$0xff] %v2443_v44  ;;  %v2435_v47 = vadd.f32 %v2434_v34, %v2274_v24  ;;  %v3219_v0 = vadd.f32 %v3218_v41, %v3217_v52 }
 0x204   : > { %v3220_v19 = vpop.f32.mrf.mxu1  ;;  %v3296_v31 = vpop.f32.mrf.mxu0 }
 0x205   : > { %2487 = vst [vmem:[%s4374_s22 + $0xc8] sm:$0xff] %v2435_v47  ;;  %v2290_v33 = vadd.f32 %v3219_v0, %v4504_v7 }
 0x206   : > { %v3221_v53 = vpop.f32.mrf.mxu1  ;;  %v2447_v30 = vpop.f32.mrf.mxu0 }
 0x207   : > { %v3222_v15 = vadd.f32 %v3221_v53, %v3220_v19  ;;  %v2448_v60 = vadd.f32 %v2447_v30, %v2287_v28 }
 0x208   : > { %v3223_v43 = vpop.f32.mrf.mxu1  ;;  %v3297_v16 = vpop.f32.mrf.mxu0 }
 0x209   : > { %v2295_v56 = vadd.f32 %v3222_v15, %v4361_v2  ;;  %2490 = vst [vmem:[%s4374_s22 + $0xe0] sm:$0xff] %v2448_v60 }
 0x20a   : > { %v3224_v22 = vpop.f32.mrf.mxu1  ;;  %v2450_v18 = vpop.f32.mrf.mxu0 }
 0x20b   : > { %v2456_v63 = vadd.f32 %v3296_v31, %v2295_v56  ;;  %v3225_v54 = vadd.f32 %v3224_v22, %v3223_v43  ;;  %v2451_v46 = vadd.f32 %v2450_v18, %v2290_v33 }
 0x20d   : > { %2492 = vst [vmem:[%s4374_s22 + $0xf0] sm:$0xff] %v2456_v63  ;;  %v2298_v55 = vadd.f32 %v3225_v54, %v4379_v14  ;;  %2491 = vst [vmem:[%s4374_s22 + $0xe8] sm:$0xff] %v2451_v46 }
 0x20f   : > { %v2459_v26 = vadd.f32 %v3297_v16, %v2298_v55 }
 0x211   : > { %2493 = vst [vmem:[%s4374_s22 + $0xf8] sm:$0xff] %v2459_v26 }
 0x212 PF: > { %s13_s12 = sadd.s32 1, %s3609_s12  }
 0x213   : > { %p10_p4 = scmp.ge.s32.totalorder %s13_s12, 4  }
 0x215   :  { %12 = sbr.rel (!%p10_p4) target bundleno = 1 (0x1), region = 62 }

// kernel: fpn_forward.13
= control target key start
LH: loop header
LB: loop body
LE: loop exit
PB: predicated region body
PF: predicated region fallthrough
CT: control target
= control target key end

     0   :  { %s2848_s1 = inlined_call_operand.vmem [shape: bf16[1152,128], index: 1, kind: input, shape index: {}]   ;;  %s2849_s0 = inlined_call_operand.vmem [shape: bf16[128,1152], index: 0, kind: input, shape index: {}]   ;;  %s2850_s2 = inlined_call_operand.vmem [shape: f32[1,128], index: 2, kind: input, shape index: {}]   ;;  %s2851_s3 = inlined_call_operand.vmem [shape: f32[128,128], index: 3, kind: output, shape index: {}]  }
   0x1   :  { %v2016_v0 = vld [vmem:[%s2848_s1 + $0x78] sm:$0xff]   ;;  %v2020_v4 = vld [vmem:[%s2848_s1 + $0x70] sm:$0xff]   ;;  %v2024_v8 = vld [vmem:[%s2848_s1 + $0x68] sm:$0xff]  }
   0x2   :  { %v2017_v1 = vld [vmem:[%s2848_s1 + $0xf8] sm:$0xff]   ;;  %1696 = vmatprep.subr.bf16.mxu0 %v2016_v0  ;;  %v2021_v5 = vld [vmem:[%s2848_s1 + $0xf0] sm:$0xff]   ;;  %v2025_v9 = vld [vmem:[%s2848_s1 + $0xe8] sm:$0xff]  }
   0x3   :  { %v2018_v2 = vld [vmem:[%s2848_s1 + $0x38] sm:$0xff]   ;;  %1760 = vmatprep.subr.bf16.mxu1 %v2017_v1  ;;  %v2022_v6 = vld [vmem:[%s2848_s1 + $0x30] sm:$0xff]   ;;  %v2026_v10 = vld [vmem:[%s2848_s1 + $0x28] sm:$0xff]  }
   0x4   :  { %v2019_v3 = vld [vmem:[%s2848_s1 + $0xb8] sm:$0xff]   ;;  %1697 = vmatpush3.bf16.msra.mxu0 %v2018_v2  ;;  %v2023_v7 = vld [vmem:[%s2848_s1 + $0xb0] sm:$0xff]   ;;  %v2027_v11 = vld [vmem:[%s2848_s1 + $0xa8] sm:$0xff]  }
   0x5   :  { %1761 = vmatpush3.bf16.msra.mxu1 %v2019_v3  ;;  %1698 = vmatprep.subr.bf16.mxu0 %v2020_v4  ;;  %v2028_v12 = vld [vmem:[%s2848_s1 + $0x60] sm:$0xff]   ;;  %v2032_v16 = vld [vmem:[%s2848_s1 + $0x58] sm:$0xff]   ;;  %v2036_v20 = vld [vmem:[%s2848_s1 + $0x50] sm:$0xff]  }
   0x6   :  { %1762 = vmatprep.subr.bf16.mxu1 %v2021_v5  ;;  %v2029_v13 = vld [vmem:[%s2848_s1 + $0xe0] sm:$0xff]   ;;  %v2033_v17 = vld [vmem:[%s2848_s1 + $0xd8] sm:$0xff]   ;;  %v2037_v21 = vld [vmem:[%s2848_s1 + $0xd0] sm:$0xff]  }
   0x7   :  { %v2030_v14 = vld [vmem:[%s2848_s1 + $0x20] sm:$0xff]   ;;  %v2034_v18 = vld [vmem:[%s2848_s1 + $0x18] sm:$0xff]   ;;  %v2038_v22 = vld [vmem:[%s2848_s1 + $0x10] sm:$0xff]  }
   0x8   :  { %1699 = vmatpush3.bf16.msra.mxu0 %v2022_v6  ;;  %v2031_v15 = vld [vmem:[%s2848_s1 + $0xa0] sm:$0xff]   ;;  %v2035_v19 = vld [vmem:[%s2848_s1 + $0x98] sm:$0xff]   ;;  %v2039_v23 = vld [vmem:[%s2848_s1 + $0x90] sm:$0xff]  }
   0x9   :  { %1763 = vmatpush3.bf16.msra.mxu1 %v2023_v7  ;;  %1700 = vmatprep.subr.bf16.mxu0 %v2024_v8  ;;  %v2040_v24 = vld [vmem:[%s2848_s1 + $0x48] sm:$0xff]   ;;  %v2044_v28 = vld [vmem:[%s2848_s1 + $0x40] sm:$0xff]   ;;  %v2054_v36 = vld [vmem:[%s2848_s1 + $0x178] sm:$0xff]  }
   0xa   :  { %1764 = vmatprep.subr.bf16.mxu1 %v2025_v9  ;;  %v2041_v25 = vld [vmem:[%s2848_s1 + $0xc8] sm:$0xff]   ;;  %v2045_v29 = vld [vmem:[%s2848_s1 + $0xc0] sm:$0xff]   ;;  %v2055_v37 = vld [vmem:[%s2848_s1 + $0x1f8] sm:$0xff]  }
   0xb   :  { %v2042_v26 = vld [vmem:[%s2848_s1 + $0x8] sm:$0xff]   ;;  %v2046_v30 = vld [vmem:[%s2848_s1] sm:$0xff]   ;;  %v2056_v38 = vld [vmem:[%s2848_s1 + $0x138] sm:$0xff]  }
   0xc   :  { %1701 = vmatpush3.bf16.msra.mxu0 %v2026_v10  ;;  %v2043_v27 = vld [vmem:[%s2848_s1 + $0x88] sm:$0xff]   ;;  %v2047_v31 = vld [vmem:[%s2848_s1 + $0x80] sm:$0xff]   ;;  %v2057_v39 = vld [vmem:[%s2848_s1 + $0x1b8] sm:$0xff]  }
   0xd   :  { %1765 = vmatpush3.bf16.msra.mxu1 %v2027_v11  ;;  %1702 = vmatprep.subr.bf16.mxu0 %v2028_v12  ;;  %v2048_v32 = vld [vmem:[%s2849_s0] ss:$36 sps:$4 sm:$0xff]   ;;  %v2051_v34 = vld [vmem:[%s2849_s0 + $0x8] ss:$36 sps:$4 sm:$0xff]   ;;  %v2060_v41 = vld [vmem:[%s2849_s0 + $0x54] ss:$36 sps:$4 sm:$0xff]  }
   0xe   :  { %1766 = vmatprep.subr.bf16.mxu1 %v2029_v13  ;;  %v2050_v33 = vld [vmem:[%s2849_s0 + $0x4] ss:$36 sps:$4 sm:$0xff]   ;;  %v2053_v35 = vld [vmem:[%s2849_s0 + $0xc] ss:$36 sps:$4 sm:$0xff]   ;;  %v2068_v48 = vld [vmem:[%s2849_s0 + $0x94] ss:$36 sps:$4 sm:$0xff]  }
   0xf   :  { %1078 = vmatprep.mubr.bf16.mxu0 %v2050_v33  ;;  %1175 = vmatprep.mubr.bf16.mxu1 %v2053_v35  ;;  %v2058_v40 = vld [vmem:[%s2849_s0 + $0x4c] ss:$36 sps:$4 sm:$0xff]   ;;  %v2070_v49 = vld [vmem:[%s2849_s0 + $0x9c] ss:$36 sps:$4 sm:$0xff]   ;;  %v2080_v57 = vld [vmem:[%s2849_s0 + $0xe4] ss:$36 sps:$4 sm:$0xff]  }
  0x10   :  { %1703 = vmatpush3.bf16.msra.mxu0 %v2030_v14  ;;  %v2062_v42 = vld [vmem:[%s2849_s0 + $0x48] ss:$36 sps:$4 sm:$0xff]   ;;  %v2063_v43 = vld [vmem:[%s2849_s0 + $0x50] ss:$36 sps:$4 sm:$0xff]   ;;  %v2073_v51 = vld [vmem:[%s2849_s0 + $0x98] ss:$36 sps:$4 sm:$0xff]  }
  0x11   :  { %1767 = vmatpush3.bf16.msra.mxu1 %v2031_v15  ;;  %1704 = vmatprep.subr.bf16.mxu0 %v2032_v16  ;;  %v2064_v44 = vld [vmem:[%s2848_s1 + $0x170] sm:$0xff]   ;;  %v2074_v52 = vld [vmem:[%s2848_s1 + $0x168] sm:$0xff]   ;;  %v2078_v56 = vld [vmem:[%s2849_s0 + $0xdc] ss:$36 sps:$4 sm:$0xff]  }
  0x12   :  { %1768 = vmatprep.subr.bf16.mxu1 %v2033_v17  ;;  %v2065_v45 = vld [vmem:[%s2848_s1 + $0x1f0] sm:$0xff]   ;;  %v2075_v53 = vld [vmem:[%s2848_s1 + $0x1e8] sm:$0xff]   ;;  %v2082_v58 = vld [vmem:[%s2849_s0 + $0xd8] ss:$36 sps:$4 sm:$0xff]  }
  0x13   :  { %v2066_v46 = vld [vmem:[%s2848_s1 + $0x130] sm:$0xff]   ;;  %v2076_v54 = vld [vmem:[%s2848_s1 + $0x128] sm:$0xff]   ;;  %v2083_v59 = vld [vmem:[%s2849_s0 + $0xe0] ss:$36 sps:$4 sm:$0xff]  }
  0x14   :  { %1705 = vmatpush3.bf16.msra.mxu0 %v2034_v18  ;;  %v2067_v47 = vld [vmem:[%s2848_s1 + $0x1b0] sm:$0xff]   ;;  %v2077_v55 = vld [vmem:[%s2848_s1 + $0x1a8] sm:$0xff]   ;;  %v2084_v60 = vld [vmem:[%s2848_s1 + $0x160] sm:$0xff]  }
  0x15   :  { %1769 = vmatpush3.bf16.msra.mxu1 %v2035_v19  ;;  %1706 = vmatprep.subr.bf16.mxu0 %v2036_v20  ;;  %v2072_v50 = vld [vmem:[%s2849_s0 + $0x90] ss:$36 sps:$4 sm:$0xff]   ;;  %v2085_v61 = vld [vmem:[%s2848_s1 + $0x1e0] sm:$0xff]   ;;  %v2094_v3 = vld [vmem:[%s2848_s1 + $0x158] sm:$0xff]  }
  0x16   :  { %1770 = vmatprep.subr.bf16.mxu1 %v2037_v21  ;;  %v2086_v62 = vld [vmem:[%s2848_s1 + $0x120] sm:$0xff]   ;;  %v2090_v1 = vld [vmem:[%s2849_s0 + $0x12c] ss:$36 sps:$4 sm:$0xff]   ;;  %v2095_v5 = vld [vmem:[%s2848_s1 + $0x1d8] sm:$0xff]  }
  0x17   :  { %v2087_v63 = vld [vmem:[%s2848_s1 + $0x1a0] sm:$0xff]   ;;  %v2093_v4 = vld [vmem:[%s2849_s0 + $0x128] ss:$36 sps:$4 sm:$0xff]   ;;  %v2096_v6 = vld [vmem:[%s2848_s1 + $0x118] sm:$0xff]  }
  0x18   :  { %1707 = vmatpush3.bf16.msra.mxu0 %v2038_v22  ;;  %v2088_v0 = vld [vmem:[%s2849_s0 + $0x124] ss:$36 sps:$4 sm:$0xff]   ;;  %v2097_v7 = vld [vmem:[%s2848_s1 + $0x198] sm:$0xff]   ;;  %v2098_v8 = vld [vmem:[%s2849_s0 + $0x16c] ss:$36 sps:$4 sm:$0xff]  }
  0x19   :  { %1771 = vmatpush3.bf16.msra.mxu1 %v2039_v23  ;;  %1708 = vmatprep.subr.bf16.mxu0 %v2040_v24  ;;  %v2092_v2 = vld [vmem:[%s2849_s0 + $0x120] ss:$36 sps:$4 sm:$0xff]   ;;  %v2100_v9 = vld [vmem:[%s2849_s0 + $0x174] ss:$36 sps:$4 sm:$0xff]   ;;  %v2102_v12 = vld [vmem:[%s2849_s0 + $0x168] ss:$36 sps:$4 sm:$0xff]  }
  0x1a   :  { %1772 = vmatprep.subr.bf16.mxu1 %v2041_v25  ;;  %v2104_v10 = vld [vmem:[%s2848_s1 + $0x150] sm:$0xff]   ;;  %v2110_v17 = vld [vmem:[%s2849_s0 + $0x1bc] ss:$36 sps:$4 sm:$0xff]   ;;  %v2114_v18 = vld [vmem:[%s2848_s1 + $0x148] sm:$0xff]  }
  0x1b   :  { %v2105_v11 = vld [vmem:[%s2848_s1 + $0x1d0] sm:$0xff]   ;;  %v2115_v19 = vld [vmem:[%s2848_s1 + $0x1c8] sm:$0xff]   ;;  %v2113_v23 = vld [vmem:[%s2849_s0 + $0x1b8] ss:$36 sps:$4 sm:$0xff]  }
  0x1c   :  { %1709 = vmatpush3.bf16.msra.mxu0 %v2042_v26  ;;  %v2106_v13 = vld [vmem:[%s2848_s1 + $0x110] sm:$0xff]   ;;  %v2116_v20 = vld [vmem:[%s2848_s1 + $0x108] sm:$0xff]   ;;  %v2118_v24 = vld [vmem:[%s2849_s0 + $0x1fc] ss:$36 sps:$4 sm:$0xff]  }
  0x1d   :  { %1773 = vmatpush3.bf16.msra.mxu1 %v2043_v27  ;;  %1710 = vmatprep.subr.bf16.mxu0 %v2044_v28  ;;  %v2107_v14 = vld [vmem:[%s2848_s1 + $0x190] sm:$0xff]   ;;  %v2117_v21 = vld [vmem:[%s2848_s1 + $0x188] sm:$0xff]   ;;  %v2124_v26 = vld [vmem:[%s2848_s1 + $0x140] sm:$0xff]  }
  0x1e   :  { %1774 = vmatprep.subr.bf16.mxu1 %v2045_v29  ;;  %v2103_v15 = vld [vmem:[%s2849_s0 + $0x170] ss:$36 sps:$4 sm:$0xff]   ;;  %v2120_v25 = vld [vmem:[%s2849_s0 + $0x204] ss:$36 sps:$4 sm:$0xff]  }
  0x1f   :  { %v2108_v16 = vld [vmem:[%s2849_s0 + $0x1b4] ss:$36 sps:$4 sm:$0xff]   ;;  %v2125_v27 = vld [vmem:[%s2848_s1 + $0x1c0] sm:$0xff]  }
  0x20   :  { %1711 = vmatpush3.bf16.msra.mxu0 %v2046_v30  ;;  %v2112_v22 = vld [vmem:[%s2849_s0 + $0x1b0] ss:$36 sps:$4 sm:$0xff]   ;;  %v2126_v28 = vld [vmem:[%s2848_s1 + $0x100] sm:$0xff]   ;;  %v2122_v30 = vld [vmem:[%s2849_s0 + $0x1f8] ss:$36 sps:$4 sm:$0xff]  }
  0x21   :  { %1775 = vmatpush3.bf16.msra.mxu1 %v2047_v31  ;;  %1824 = vmatprep.subr.bf16.mxu0 %v2054_v36  ;;  %v2127_v29 = vld [vmem:[%s2848_s1 + $0x180] sm:$0xff]   ;;  %v2130_v33 = vld [vmem:[%s2849_s0 + $0x14] ss:$36 sps:$4 sm:$0xff]  }
  0x22   :  { %1888 = vmatprep.subr.bf16.mxu1 %v2055_v37  ;;  %v2123_v31 = vld [vmem:[%s2849_s0 + $0x200] ss:$36 sps:$4 sm:$0xff]   ;;  %v2128_v35 = vld [vmem:[%s2849_s0 + $0x10] ss:$36 sps:$4 sm:$0xff]   ;;  %v2131_v36 = vld [vmem:[%s2849_s0 + $0x18] ss:$36 sps:$4 sm:$0xff]  }
  0x23   :  { %1079 = vmatmul.mubr.bf16.vlgmr.msra.gmra.mxu0 %v2048_v32  ;;  %v2134_v32 = vld [vmem:[%s2848_s1 + $0x238] sm:$0xff]  }
  0x24   :  { %1176 = vmatmul.mubr.bf16.vlgmr.msra.gmra.mxu1 %v2051_v34  ;;  %1825 = vmatpush3.bf16.msra.mxu0 %v2056_v38  ;;  %v2133_v34 = vld [vmem:[%s2849_s0 + $0x1c] ss:$36 sps:$4 sm:$0xff]   ;;  %v2137_v38 = vld [vmem:[%s2849_s0 + $0x64] ss:$36 sps:$4 sm:$0xff]  }
  0x25   :  { %1889 = vmatpush3.bf16.msra.mxu1 %v2057_v39  ;;  %1086 = vmatprep.mubr.bf16.mxu0 %v2058_v40  ;;  %v2135_v37 = vld [vmem:[%s2849_s0 + $0x5c] ss:$36 sps:$4 sm:$0xff]   ;;  %v2141_v39 = vld [vmem:[%s2848_s1 + $0x230] sm:$0xff]   ;;  %v2148_v40 = vld [vmem:[%s2848_s1 + $0x228] sm:$0xff]  }
  0x26   :  { %1183 = vmatprep.mubr.bf16.mxu1 %v2060_v41  ;;  %1826 = vmatprep.subr.bf16.mxu0 %v2064_v44  ;;  %v2139_v41 = vld [vmem:[%s2849_s0 + $0x58] ss:$36 sps:$4 sm:$0xff]   ;;  %v2144_v44 = vld [vmem:[%s2849_s0 + $0xac] ss:$36 sps:$4 sm:$0xff]  }
  0x27   :  { %1890 = vmatprep.subr.bf16.mxu1 %v2065_v45  ;;  %v2155_v45 = vld [vmem:[%s2848_s1 + $0x220] sm:$0xff]  }
  0x28   :  { %1827 = vmatpush3.bf16.msra.mxu0 %v2066_v46  ;;  %v2162_v46 = vld [vmem:[%s2848_s1 + $0x218] sm:$0xff]  }
  0x29   :  { %1891 = vmatpush3.bf16.msra.mxu1 %v2067_v47  ;;  %1828 = vmatprep.subr.bf16.mxu0 %v2074_v52  ;;  %v2146_v47 = vld [vmem:[%s2849_s0 + $0xa0] ss:$36 sps:$4 sm:$0xff]   ;;  %v2153_v52 = vld [vmem:[%s2849_s0 + $0xe8] ss:$36 sps:$4 sm:$0xff]  }
  0x2a   :  { %1892 = vmatprep.subr.bf16.mxu1 %v2075_v53  ;;  %v2176_v53 = vld [vmem:[%s2848_s1 + $0x208] sm:$0xff]  }
  0x2b   :  { %1087 = vmatmul.mubr.bf16.gmra.mxu0 %v2062_v42  ;;  %v2140_v42 = vld [vmem:[%s2849_s0 + $0x60] ss:$36 sps:$4 sm:$0xff]  }
  0x2c   :  { %1184 = vmatmul.mubr.bf16.gmra.mxu1 %v2063_v43  ;;  %1094 = vmatprep.mubr.bf16.mxu0 %v2068_v48  ;;  %v2142_v43 = vld [vmem:[%s2849_s0 + $0xa4] ss:$36 sps:$4 sm:$0xff]  }
  0x2d   :  { %1191 = vmatprep.mubr.bf16.mxu1 %v2070_v49  ;;  %1829 = vmatpush3.bf16.msra.mxu0 %v2076_v54  ;;  %v2147_v48 = vld [vmem:[%s2849_s0 + $0xa8] ss:$36 sps:$4 sm:$0xff]   ;;  %v2154_v54 = vld [vmem:[%s2849_s0 + $0xf0] ss:$36 sps:$4 sm:$0xff]  }
  0x2e   :  { %1893 = vmatpush3.bf16.msra.mxu1 %v2077_v55  ;;  %1830 = vmatprep.subr.bf16.mxu0 %v2084_v60  ;;  %v2149_v49 = vld [vmem:[%s2849_s0 + $0xec] ss:$36 sps:$4 sm:$0xff]   ;;  %v2156_v55 = vld [vmem:[%s2849_s0 + $0x134] ss:$36 sps:$4 sm:$0xff]   ;;  %v2163_v60 = vld [vmem:[%s2849_s0 + $0x17c] ss:$36 sps:$4 sm:$0xff]  }
  0x2f   :  { %1894 = vmatprep.subr.bf16.mxu1 %v2085_v61  ;;  %v2165_v61 = vld [vmem:[%s2849_s0 + $0x184] ss:$36 sps:$4 sm:$0xff]  }
  0x31   :  { %1831 = vmatpush3.bf16.msra.mxu0 %v2086_v62  ;;  %v2167_v62 = vld [vmem:[%s2849_s0 + $0x178] ss:$36 sps:$4 sm:$0xff]  }
  0x32   :  { %1895 = vmatpush3.bf16.msra.mxu1 %v2087_v63  ;;  %1832 = vmatprep.subr.bf16.mxu0 %v2094_v3  ;;  %v2168_v63 = vld [vmem:[%s2849_s0 + $0x180] ss:$36 sps:$4 sm:$0xff]   ;;  %v2175_v3 = vld [vmem:[%s2849_s0 + $0x1c8] ss:$36 sps:$4 sm:$0xff]  }
  0x33   :  { %1095 = vmatmul.mubr.bf16.gmra.mxu0 %v2072_v50  ;;  %1896 = vmatprep.subr.bf16.mxu1 %v2095_v5  ;;  %v2151_v50 = vld [vmem:[%s2849_s0 + $0xf4] ss:$36 sps:$4 sm:$0xff]  }
  0x34   :  { %1192 = vmatmul.mubr.bf16.gmra.mxu1 %v2073_v51  ;;  %1102 = vmatprep.mubr.bf16.mxu0 %v2078_v56  ;;  %v2169_v51 = vld [vmem:[%s2848_s1 + $0x210] sm:$0xff]   ;;  %v2158_v56 = vld [vmem:[%s2849_s0 + $0x13c] ss:$36 sps:$4 sm:$0xff]  }
  0x35   :  { %1199 = vmatprep.mubr.bf16.mxu1 %v2080_v57  ;;  %1833 = vmatpush3.bf16.msra.mxu0 %v2096_v6  ;;  %v2183_v57 = vld [vmem:[%s2848_s1 + $0x200] sm:$0xff]   ;;  %v2179_v5 = vld [vmem:[%s2849_s0 + $0x214] ss:$36 sps:$4 sm:$0xff]   ;;  %v2181_v6 = vld [vmem:[%s2849_s0 + $0x208] ss:$36 sps:$4 sm:$0xff]  }
  0x36   :  { %1897 = vmatpush3.bf16.msra.mxu1 %v2097_v7  ;;  %1834 = vmatprep.subr.bf16.mxu0 %v2104_v10  ;;  %v2182_v7 = vld [vmem:[%s2849_s0 + $0x210] ss:$36 sps:$4 sm:$0xff]   ;;  %v2186_v10 = vld [vmem:[%s2849_s0 + $0x68] ss:$36 sps:$4 sm:$0xff]  }
  0x37   :  { %1898 = vmatprep.subr.bf16.mxu1 %v2105_v11  ;;  %v2187_v11 = vld [vmem:[%s2849_s0 + $0x188] ss:$36 sps:$4 sm:$0xff]  }
  0x39   :  { %1835 = vmatpush3.bf16.msra.mxu0 %v2106_v13  ;;  %v2189_v13 = vld [vmem:[%s2849_s0 + $0x1d0] ss:$36 sps:$4 sm:$0xff]  }
  0x3a   :  { %1899 = vmatpush3.bf16.msra.mxu1 %v2107_v14  ;;  %1836 = vmatprep.subr.bf16.mxu0 %v2114_v18  ;;  %v2190_v14 = vld [vmem:[%s2849_s0 + $0xf8] ss:$36 sps:$4 sm:$0xff]   ;;  %v2647_v18 = vld [vmem:[%s2850_s2] ss:$0 sm:$0xff] }
  0x3b   :  { %1103 = vmatmul.mubr.bf16.gmra.mxu0 %v2082_v58  ;;  %1900 = vmatprep.subr.bf16.mxu1 %v2115_v19  ;;  %v2160_v58 = vld [vmem:[%s2849_s0 + $0x130] ss:$36 sps:$4 sm:$0xff]  }
  0x3c   :  { %1200 = vmatmul.mubr.bf16.gmra.mxu1 %v2083_v59  ;;  %1110 = vmatprep.mubr.bf16.mxu0 %v2088_v0  ;;  %v2161_v59 = vld [vmem:[%s2849_s0 + $0x138] ss:$36 sps:$4 sm:$0xff]   ;;  %v2170_v0 = vld [vmem:[%s2849_s0 + $0x1c4] ss:$36 sps:$4 sm:$0xff]  }
  0x3d   :  { %1207 = vmatprep.mubr.bf16.mxu1 %v2090_v1  ;;  %1837 = vmatpush3.bf16.msra.mxu0 %v2116_v20  ;;  %v2172_v1 = vld [vmem:[%s2849_s0 + $0x1cc] ss:$36 sps:$4 sm:$0xff]  }
  0x3e   :  { %1901 = vmatpush3.bf16.msra.mxu1 %v2117_v21  ;;  %1838 = vmatprep.subr.bf16.mxu0 %v2124_v26 }
  0x3f   :  { %1902 = vmatprep.subr.bf16.mxu1 %v2125_v27 }
  0x41   :  { %1839 = vmatpush3.bf16.msra.mxu0 %v2126_v28 }
  0x42   :  { %1903 = vmatpush3.bf16.msra.mxu1 %v2127_v29  ;;  %1968 = vmatprep.subr.bf16.mxu0 %v2134_v32 }
  0x43   :  { %1111 = vmatmul.mubr.bf16.gmra.mxu0 %v2092_v2  ;;  %2000 = vmatprep.subr.bf16.mxu1 %v2134_v32  ;;  %v2174_v2 = vld [vmem:[%s2849_s0 + $0x1c0] ss:$36 sps:$4 sm:$0xff]  }
  0x44   :  { %1208 = vmatmul.mubr.bf16.gmra.mxu1 %v2093_v4  ;;  %1118 = vmatprep.mubr.bf16.mxu0 %v2098_v8  ;;  %v2177_v4 = vld [vmem:[%s2849_s0 + $0x20c] ss:$36 sps:$4 sm:$0xff]   ;;  %v2184_v8 = vld [vmem:[%s2849_s0 + $0x20] ss:$36 sps:$4 sm:$0xff]  }
  0x45   :  { %1215 = vmatprep.mubr.bf16.mxu1 %v2100_v9  ;;  %v2185_v9 = vld [vmem:[%s2849_s0 + $0x140] ss:$36 sps:$4 sm:$0xff]  }
  0x4b   :  { %1119 = vmatmul.mubr.bf16.gmra.mxu0 %v2102_v12  ;;  %v2188_v12 = vld [vmem:[%s2849_s0 + $0xb0] ss:$36 sps:$4 sm:$0xff]  }
  0x4c   :  { %1216 = vmatmul.mubr.bf16.gmra.mxu1 %v2103_v15  ;;  %1126 = vmatprep.mubr.bf16.mxu0 %v2108_v16  ;;  %v2191_v15 = vld [vmem:[%s2849_s0 + $0x218] ss:$36 sps:$4 sm:$0xff]  }
  0x4d   :  { %1223 = vmatprep.mubr.bf16.mxu1 %v2110_v17 }
  0x53   :  { %1127 = vmatmul.mubr.bf16.gmra.mxu0 %v2112_v22 }
  0x54   :  { %1224 = vmatmul.mubr.bf16.gmra.mxu1 %v2113_v23  ;;  %1134 = vmatprep.mubr.bf16.mxu0 %v2118_v24 }
  0x55   :  { %1231 = vmatprep.mubr.bf16.mxu1 %v2120_v25 }
  0x5b   :  { %1135 = vmatmul.mubr.bf16.gmra.mxu0 %v2122_v30 }
  0x5c   :  { %1232 = vmatmul.mubr.bf16.gmra.mxu1 %v2123_v31  ;;  %1272 = vmatprep.mubr.bf16.mxu0 %v2130_v33 }
  0x5d   :  { %1369 = vmatprep.mubr.bf16.mxu1 %v2133_v34 }
  0x63   :  { %1273 = vmatmul.mubr.bf16.vlgmr.msra.gmra.mxu0 %v2128_v35 }
  0x64   :  { %1370 = vmatmul.mubr.bf16.vlgmr.msra.gmra.mxu1 %v2131_v36  ;;  %1969 = vmatpush3.bf16.msra.mxu0 %v2134_v32 }
  0x65   :  { %2008 = vmatpush3.bf16.msra.mxu1 %v2134_v32  ;;  %1280 = vmatprep.mubr.bf16.mxu0 %v2135_v37 }
  0x66   :  { %1377 = vmatprep.mubr.bf16.mxu1 %v2137_v38  ;;  %1970 = vmatprep.subr.bf16.mxu0 %v2141_v39 }
  0x67   :  { %2001 = vmatprep.subr.bf16.mxu1 %v2141_v39 }
  0x68   :  { %1971 = vmatpush3.bf16.msra.mxu0 %v2141_v39 }
  0x69   :  { %2009 = vmatpush3.bf16.msra.mxu1 %v2141_v39  ;;  %1972 = vmatprep.subr.bf16.mxu0 %v2148_v40 }
  0x6a   :  { %2002 = vmatprep.subr.bf16.mxu1 %v2148_v40 }
  0x6b   :  { %1281 = vmatmul.mubr.bf16.gmra.mxu0 %v2139_v41 }
  0x6c   :  { %1378 = vmatmul.mubr.bf16.gmra.mxu1 %v2140_v42  ;;  %1288 = vmatprep.mubr.bf16.mxu0 %v2142_v43 }
  0x6d   :  { %1385 = vmatprep.mubr.bf16.mxu1 %v2144_v44  ;;  %1973 = vmatpush3.bf16.msra.mxu0 %v2148_v40 }
  0x6e   :  { %2010 = vmatpush3.bf16.msra.mxu1 %v2148_v40  ;;  %1974 = vmatprep.subr.bf16.mxu0 %v2155_v45 }
  0x6f   :  { %2003 = vmatprep.subr.bf16.mxu1 %v2155_v45 }
  0x71   :  { %1975 = vmatpush3.bf16.msra.mxu0 %v2155_v45 }
  0x72   :  { %2011 = vmatpush3.bf16.msra.mxu1 %v2155_v45  ;;  %1976 = vmatprep.subr.bf16.mxu0 %v2162_v46 }
  0x73   :  { %1289 = vmatmul.mubr.bf16.gmra.mxu0 %v2146_v47  ;;  %2004 = vmatprep.subr.bf16.mxu1 %v2162_v46 }
  0x74   :  { %1386 = vmatmul.mubr.bf16.gmra.mxu1 %v2147_v48  ;;  %1296 = vmatprep.mubr.bf16.mxu0 %v2149_v49 }
  0x75   :  { %1393 = vmatprep.mubr.bf16.mxu1 %v2151_v50  ;;  %1977 = vmatpush3.bf16.msra.mxu0 %v2162_v46 }
  0x76   :  { %2012 = vmatpush3.bf16.msra.mxu1 %v2162_v46  ;;  %1978 = vmatprep.subr.bf16.mxu0 %v2169_v51 }
  0x77   :  { %2005 = vmatprep.subr.bf16.mxu1 %v2169_v51 }
  0x79   :  { %1979 = vmatpush3.bf16.msra.mxu0 %v2169_v51 }
  0x7a   :  { %2013 = vmatpush3.bf16.msra.mxu1 %v2169_v51  ;;  %1980 = vmatprep.subr.bf16.mxu0 %v2176_v53 }
  0x7b   :  { %1297 = vmatmul.mubr.bf16.gmra.mxu0 %v2153_v52  ;;  %2006 = vmatprep.subr.bf16.mxu1 %v2176_v53 }
  0x7c   :  { %1394 = vmatmul.mubr.bf16.gmra.mxu1 %v2154_v54  ;;  %1304 = vmatprep.mubr.bf16.mxu0 %v2156_v55 }
  0x7d   :  { %1401 = vmatprep.mubr.bf16.mxu1 %v2158_v56  ;;  %1981 = vmatpush3.bf16.msra.mxu0 %v2176_v53 }
  0x7e   :  { %2014 = vmatpush3.bf16.msra.mxu1 %v2176_v53  ;;  %1982 = vmatprep.subr.bf16.mxu0 %v2183_v57 }
  0x7f   :  { %2007 = vmatprep.subr.bf16.mxu1 %v2183_v57 }
  0x81   :  { %1983 = vmatpush3.bf16.msra.mxu0 %v2183_v57 }
  0x82   :  { %2015 = vmatpush3.bf16.msra.mxu1 %v2183_v57 }
  0x83   :  { %1305 = vmatmul.mubr.bf16.gmra.mxu0 %v2160_v58 }
  0x84   :  { %1402 = vmatmul.mubr.bf16.gmra.mxu1 %v2161_v59  ;;  %1312 = vmatprep.mubr.bf16.mxu0 %v2163_v60 }
  0x85   :  { %1409 = vmatprep.mubr.bf16.mxu1 %v2165_v61 }
  0x8b   :  { %1313 = vmatmul.mubr.bf16.gmra.mxu0 %v2167_v62 }
  0x8c   :  { %1410 = vmatmul.mubr.bf16.gmra.mxu1 %v2168_v63  ;;  %1320 = vmatprep.mubr.bf16.mxu0 %v2170_v0 }
  0x8d   :  { %1417 = vmatprep.mubr.bf16.mxu1 %v2172_v1 }
  0x93   :  { %1321 = vmatmul.mubr.bf16.gmra.mxu0 %v2174_v2 }
  0x94   :  { %1418 = vmatmul.mubr.bf16.gmra.mxu1 %v2175_v3  ;;  %1328 = vmatprep.mubr.bf16.mxu0 %v2177_v4 }
  0x95   :  { %1425 = vmatprep.mubr.bf16.mxu1 %v2179_v5 }
  0x9b   :  { %1329 = vmatmul.mubr.bf16.gmra.mxu0 %v2181_v6 }
  0x9c   :  { %1426 = vmatmul.mubr.bf16.gmra.mxu1 %v2182_v7  ;;  %1984 = vmatprep.mubr.bf16.mxu0 %v2184_v8 }
  0x9d   :  { %1992 = vmatprep.mubr.bf16.mxu1 %v2185_v9 }
  0xa3   :  { %1985 = vmatmul.mubr.bf16.vlgmr.msra.gmra.mxu0 %v2186_v10 }
  0xa4   :  { %1993 = vmatmul.mubr.bf16.vlgmr.msra.gmra.mxu1 %v2187_v11  ;;  %1988 = vmatprep.mubr.bf16.mxu0 %v2188_v12 }
  0xa5   :  { %1996 = vmatprep.mubr.bf16.mxu1 %v2189_v13 }
  0xab   :  { %1989 = vmatmul.mubr.bf16.gmra.mxu0 %v2190_v14 }
  0xac   :  { %1997 = vmatmul.mubr.bf16.gmra.mxu1 %v2191_v15 }
  0xe3   :  { %v1712_v16 = vpop.f32.mrf.mxu0 }
  0xe4   :  { %v1776_v17 = vpop.f32.mrf.mxu1 }
  0xe5   :  { %v1713_v19 = vpop.f32.mrf.mxu0 }
  0xe6   :  { %v1714_v20 = vadd.f32 %v1713_v19, %v1712_v16  ;;  %v1777_v21 = vpop.f32.mrf.mxu1 }
  0xe7   :  { %v1778_v22 = vadd.f32 %v1777_v21, %v1776_v17  ;;  %v1715_v23 = vpop.f32.mrf.mxu0 }
  0xe8   :  { %v1081_v24 = vadd.f32 %v1714_v20, %v2647_v18  ;;  %v1779_v25 = vpop.f32.mrf.mxu1 }
  0xe9   :  { %v1716_v26 = vpop.f32.mrf.mxu0 }
  0xea   :  { %v2650_v27 = vadd.f32 %v1778_v22, %v1081_v24  ;;  %v1717_v28 = vadd.f32 %v1716_v26, %v1715_v23  ;;  %v1780_v29 = vpop.f32.mrf.mxu1 }
  0xeb   :  { %v1781_v30 = vadd.f32 %v1780_v29, %v1779_v25  ;;  %v1718_v31 = vpop.f32.mrf.mxu0 }
  0xec   :  { %v1084_v32 = vadd.f32 %v1717_v28, %v2647_v18  ;;  %v1782_v33 = vpop.f32.mrf.mxu1 }
  0xed   :  { %v1719_v34 = vpop.f32.mrf.mxu0 }
  0xee   :  { %v2653_v35 = vadd.f32 %v1781_v30, %v1084_v32  ;;  %v1720_v36 = vadd.f32 %v1719_v34, %v1718_v31  ;;  %v1783_v37 = vpop.f32.mrf.mxu1 }
  0xef   :  { %v1784_v38 = vadd.f32 %v1783_v37, %v1782_v33  ;;  %v1721_v39 = vpop.f32.mrf.mxu0 }
  0xf0   :  { %v1089_v40 = vadd.f32 %v1720_v36, %v2647_v18  ;;  %v1785_v41 = vpop.f32.mrf.mxu1 }
  0xf1   :  { %v1722_v42 = vpop.f32.mrf.mxu0 }
  0xf2   :  { %v2656_v43 = vadd.f32 %v1784_v38, %v1089_v40  ;;  %v1723_v44 = vadd.f32 %v1722_v42, %v1721_v39  ;;  %v1786_v45 = vpop.f32.mrf.mxu1 }
  0xf3   :  { %v1787_v46 = vadd.f32 %v1786_v45, %v1785_v41  ;;  %v1724_v47 = vpop.f32.mrf.mxu0 }
  0xf4   :  { %v1092_v48 = vadd.f32 %v1723_v44, %v2647_v18  ;;  %v1788_v49 = vpop.f32.mrf.mxu1 }
  0xf5   :  { %v1725_v50 = vpop.f32.mrf.mxu0 }
  0xf6   :  { %v2659_v51 = vadd.f32 %v1787_v46, %v1092_v48  ;;  %v1726_v52 = vadd.f32 %v1725_v50, %v1724_v47  ;;  %v1789_v53 = vpop.f32.mrf.mxu1 }
  0xf7   :  { %v1790_v54 = vadd.f32 %v1789_v53, %v1788_v49  ;;  %v1727_v55 = vpop.f32.mrf.mxu0 }
  0xf8   :  { %v1097_v56 = vadd.f32 %v1726_v52, %v2647_v18  ;;  %v1791_v57 = vpop.f32.mrf.mxu1 }
  0xf9   :  { %v1728_v58 = vpop.f32.mrf.mxu0 }
  0xfa   :  { %v2662_v59 = vadd.f32 %v1790_v54, %v1097_v56  ;;  %v1729_v60 = vadd.f32 %v1728_v58, %v1727_v55  ;;  %v1792_v61 = vpop.f32.mrf.mxu1 }
  0xfb   :  { %v1793_v62 = vadd.f32 %v1792_v61, %v1791_v57  ;;  %v1730_v63 = vpop.f32.mrf.mxu0 }
  0xfc   :  { %v1100_v0 = vadd.f32 %v1729_v60, %v2647_v18  ;;  %v1794_v1 = vpop.f32.mrf.mxu1 }
  0xfd   :  { %v1731_v2 = vpop.f32.mrf.mxu0 }
  0xfe   :  { %v2665_v3 = vadd.f32 %v1793_v62, %v1100_v0  ;;  %v1732_v4 = vadd.f32 %v1731_v2, %v1730_v63  ;;  %v1795_v5 = vpop.f32.mrf.mxu1 }
  0xff   :  { %v1796_v6 = vadd.f32 %v1795_v5, %v1794_v1  ;;  %v1733_v7 = vpop.f32.mrf.mxu0 }
 0x100   :  { %2852 = vst [vmem:[#allocation2_spill] sm:$0xff] %v2665_v3  ;;  %v1105_v8 = vadd.f32 %v1732_v4, %v2647_v18  ;;  %v1797_v9 = vpop.f32.mrf.mxu1 }
 0x101   :  { %v1734_v10 = vpop.f32.mrf.mxu0 }
 0x102   :  { %v2668_v11 = vadd.f32 %v1796_v6, %v1105_v8  ;;  %v1735_v12 = vadd.f32 %v1734_v10, %v1733_v7  ;;  %v1798_v13 = vpop.f32.mrf.mxu1 }
 0x103   :  { %v1799_v14 = vadd.f32 %v1798_v13, %v1797_v9  ;;  %v1736_v15 = vpop.f32.mrf.mxu0 }
 0x104   :  { %v1108_v16 = vadd.f32 %v1735_v12, %v2647_v18  ;;  %v1800_v17 = vpop.f32.mrf.mxu1 }
 0x105   :  { %v1737_v19 = vpop.f32.mrf.mxu0 }
 0x106   :  { %v2671_v20 = vadd.f32 %v1799_v14, %v1108_v16  ;;  %v1738_v21 = vadd.f32 %v1737_v19, %v1736_v15  ;;  %v1801_v22 = vpop.f32.mrf.mxu1 }
 0x107   :  { %v1802_v23 = vadd.f32 %v1801_v22, %v1800_v17  ;;  %v1739_v24 = vpop.f32.mrf.mxu0 }
 0x108   :  { %2853 = vst [vmem:[#allocation3_spill] sm:$0xff] %v2671_v20  ;;  %v1113_v25 = vadd.f32 %v1738_v21, %v2647_v18  ;;  %v1803_v26 = vpop.f32.mrf.mxu1 }
 0x109   :  { %v1740_v28 = vpop.f32.mrf.mxu0 }
 0x10a   :  { %v2674_v29 = vadd.f32 %v1802_v23, %v1113_v25  ;;  %v1741_v30 = vadd.f32 %v1740_v28, %v1739_v24  ;;  %v1804_v31 = vpop.f32.mrf.mxu1 }
 0x10b   :  { %v1805_v32 = vadd.f32 %v1804_v31, %v1803_v26  ;;  %v1742_v33 = vpop.f32.mrf.mxu0 }
 0x10c   :  { %v1116_v34 = vadd.f32 %v1741_v30, %v2647_v18  ;;  %v1806_v36 = vpop.f32.mrf.mxu1 }
 0x10d   :  { %v1743_v37 = vpop.f32.mrf.mxu0 }
 0x10e   :  { %v2677_v38 = vadd.f32 %v1805_v32, %v1116_v34  ;;  %v1744_v39 = vadd.f32 %v1743_v37, %v1742_v33  ;;  %v1807_v40 = vpop.f32.mrf.mxu1 }
 0x10f   :  { %v1808_v41 = vadd.f32 %v1807_v40, %v1806_v36  ;;  %v1745_v42 = vpop.f32.mrf.mxu0 }
 0x110   :  { %v1121_v44 = vadd.f32 %v1744_v39, %v2647_v18  ;;  %v1809_v45 = vpop.f32.mrf.mxu1 }
 0x111   :  { %v1746_v46 = vpop.f32.mrf.mxu0 }
 0x112   :  { %v2680_v47 = vadd.f32 %v1808_v41, %v1121_v44  ;;  %v1747_v48 = vadd.f32 %v1746_v46, %v1745_v42  ;;  %v1810_v49 = vpop.f32.mrf.mxu1 }
 0x113   :  { %v1811_v50 = vadd.f32 %v1810_v49, %v1809_v45  ;;  %v1748_v52 = vpop.f32.mrf.mxu0 }
 0x114   :  { %v1124_v53 = vadd.f32 %v1747_v48, %v2647_v18  ;;  %v1812_v54 = vpop.f32.mrf.mxu1 }
 0x115   :  { %v1749_v55 = vpop.f32.mrf.mxu0 }
 0x116   :  { %v2683_v56 = vadd.f32 %v1811_v50, %v1124_v53  ;;  %v1750_v57 = vadd.f32 %v1749_v55, %v1748_v52  ;;  %v1813_v58 = vpop.f32.mrf.mxu1 }
 0x117   :  { %v1814_v60 = vadd.f32 %v1813_v58, %v1812_v54  ;;  %v1751_v61 = vpop.f32.mrf.mxu0 }
 0x118   :  { %v1129_v62 = vadd.f32 %v1750_v57, %v2647_v18  ;;  %v1815_v63 = vpop.f32.mrf.mxu1 }
 0x119   :  { %v1752_v0 = vpop.f32.mrf.mxu0 }
 0x11a   :  { %v2686_v1 = vadd.f32 %v1814_v60, %v1129_v62  ;;  %v1753_v2 = vadd.f32 %v1752_v0, %v1751_v61  ;;  %v1816_v4 = vpop.f32.mrf.mxu1 }
 0x11b   :  { %v1817_v5 = vadd.f32 %v1816_v4, %v1815_v63  ;;  %v1754_v6 = vpop.f32.mrf.mxu0 }
 0x11c   :  { %2854 = vst [vmem:[#allocation4_spill] sm:$0xff] %v2686_v1  ;;  %v1132_v7 = vadd.f32 %v1753_v2, %v2647_v18  ;;  %v1818_v8 = vpop.f32.mrf.mxu1 }
 0x11d   :  { %v1755_v9 = vpop.f32.mrf.mxu0 }
 0x11e   :  { %v2689_v10 = vadd.f32 %v1817_v5, %v1132_v7  ;;  %v1756_v12 = vadd.f32 %v1755_v9, %v1754_v6  ;;  %v1819_v13 = vpop.f32.mrf.mxu1 }
 0x11f   :  { %v1820_v14 = vadd.f32 %v1819_v13, %v1818_v8  ;;  %v1757_v15 = vpop.f32.mrf.mxu0 }
 0x120   :  { %2855 = vst [vmem:[#allocation5_spill] sm:$0xff] %v2689_v10  ;;  %v1137_v16 = vadd.f32 %v1756_v12, %v2647_v18  ;;  %v1821_v17 = vpop.f32.mrf.mxu1 }
 0x121   :  { %v1758_v19 = vpop.f32.mrf.mxu0 }
 0x122   :  { %v2692_v21 = vadd.f32 %v1820_v14, %v1137_v16  ;;  %v1759_v22 = vadd.f32 %v1758_v19, %v1757_v15  ;;  %v1822_v23 = vpop.f32.mrf.mxu1 }
 0x123   :  { %v1823_v24 = vadd.f32 %v1822_v23, %v1821_v17  ;;  %v1840_v25 = vpop.f32.mrf.mxu0 }
 0x124   :  { %2856 = vst [vmem:[#allocation6_spill] sm:$0xff] %v2692_v21  ;;  %v1140_v26 = vadd.f32 %v1759_v22, %v2647_v18  ;;  %v2695_v28 = vpop.f32.mrf.mxu1 }
 0x125   :  { %v1841_v30 = vpop.f32.mrf.mxu0 }
 0x126   :  { %v2697_v31 = vadd.f32 %v1823_v24, %v1140_v26  ;;  %v2699_v32 = vpop.f32.mrf.mxu1 }
 0x127   :  { %v1843_v33 = vpop.f32.mrf.mxu0 }
 0x128   :  { %2857 = vst [vmem:[#allocation7_spill] sm:$0xff] %v2697_v31  ;;  %v2701_v34 = vpop.f32.mrf.mxu1  ;;  %v1842_v31 = vadd.f32 %v1841_v30, %v1840_v25  ;;  %v1906_v25 = vadd.f32 %v2699_v32, %v2695_v28 }
 0x129   :  { %v1844_v36 = vpop.f32.mrf.mxu0 }
 0x12a   :  { %v2703_v37 = vpop.f32.mrf.mxu1 }
 0x12b   :  { %v1846_v39 = vpop.f32.mrf.mxu0  ;;  %v1909_v30 = vadd.f32 %v2703_v37, %v2701_v34 }
 0x12c   :  { %v2705_v40 = vpop.f32.mrf.mxu1 }
 0x12d   :  { %v1847_v41 = vpop.f32.mrf.mxu0 }
 0x12e   :  { %v2707_v42 = vpop.f32.mrf.mxu1 }
 0x12f   :  { %v1849_v18 = vpop.f32.mrf.mxu0 }
 0x130   :  { %v2709_v44 = vpop.f32.mrf.mxu1 }
 0x131   :  { %v1850_v45 = vpop.f32.mrf.mxu0 }
 0x132   :  { %v2711_v46 = vpop.f32.mrf.mxu1 }
 0x133   :  { %v1852_v48 = vpop.f32.mrf.mxu0  ;;  %v1915_v34 = vadd.f32 %v2711_v46, %v2709_v44 }
 0x134   :  { %v2713_v49 = vpop.f32.mrf.mxu1 }
 0x135   :  { %2858 = vst [vmem:[#allocation8_spill] sm:$0xff] %v2713_v49  ;;  %v1853_v50 = vpop.f32.mrf.mxu0  ;;  %v1848_v49 = vadd.f32 %v1847_v41, %v1846_v39 }
 0x136   :  { %v2715_v52 = vpop.f32.mrf.mxu1  ;;  %v1854_v41 = vadd.f32 %v1853_v50, %v1852_v48 }
 0x137   :  { %2859 = vst [vmem:[#allocation9_spill] sm:$0xff] %v2715_v52  ;;  %v2717_v53 = vpop.f32.mrf.mxu0  ;;  %v1845_v52 = vadd.f32 %v1844_v36, %v1843_v33 }
 0x138   :  { %2860 = vst [vmem:[#allocation10_spill] sm:$0xff] %v2717_v53  ;;  %v2719_v54 = vpop.f32.mrf.mxu1  ;;  %v1291_v50 = vadd.f32 %v1854_v41, %v2662_v59 }
 0x139   :  { %2861 = vst [vmem:[#allocation11_spill] sm:$0xff] %v2719_v54  ;;  %v2721_v55 = vpop.f32.mrf.mxu0 }
 0x13a   :  { %2862 = vst [vmem:[#allocation12_spill] sm:$0xff] %v2721_v55  ;;  %v2723_v57 = vpop.f32.mrf.mxu1  ;;  %v1851_v55 = vadd.f32 %v1850_v45, %v1849_v18 }
 0x13b   :  { %2863 = vst [vmem:[#allocation13_spill] sm:$0xff] %v2723_v57  ;;  %v1858_v58 = vpop.f32.mrf.mxu0 }
 0x13c   :  { %v2725_v60 = vpop.f32.mrf.mxu1 }
 0x13d   :  { %2864 = vst [vmem:[#allocation14_spill] sm:$0xff] %v2725_v60  ;;  %v1859_v61 = vpop.f32.mrf.mxu0 }
 0x13e   :  { %v2727_v62 = vpop.f32.mrf.mxu1 }
 0x13f   :  { %2865 = vst [vmem:[#allocation15_spill] sm:$0xff] %v2727_v62  ;;  %v2729_v63 = vpop.f32.mrf.mxu0 }
 0x140   :  { %v2731_v0 = vpop.f32.mrf.mxu1 }
 0x141   :  { %2866 = vst [vmem:[#allocation16_spill] sm:$0xff] %v2731_v0  ;;  %v2733_v2 = vpop.f32.mrf.mxu0 }
 0x142   :  { %v2735_v4 = vpop.f32.mrf.mxu1 }
 0x143   :  { %2867 = vst [vmem:[#allocation17_spill] sm:$0xff] %v2735_v4  ;;  %v1864_v5 = vpop.f32.mrf.mxu0 }
 0x144   :  { %v1928_v6 = vpop.f32.mrf.mxu1 }
 0x145   :  { %v1865_v7 = vpop.f32.mrf.mxu0 }
 0x146   :  { %v1929_v8 = vpop.f32.mrf.mxu1  ;;  %v1866_v21 = vadd.f32 %v1865_v7, %v1864_v5 }
 0x147   :  { %v1867_v9 = vpop.f32.mrf.mxu0 }
 0x148   :  { %v2737_v12 = vpop.f32.mrf.mxu1 }
 0x149   :  { %v1868_v13 = vpop.f32.mrf.mxu0 }
 0x14a   :  { %v2739_v14 = vpop.f32.mrf.mxu1 }
 0x14b   :  { %2868 = vst [vmem:[#allocation18_spill] sm:$0xff] %v2739_v14  ;;  %v1870_v15 = vpop.f32.mrf.mxu0 }
 0x14c   :  { %v1934_v16 = vpop.f32.mrf.mxu1 }
 0x14d   :  { %v1871_v17 = vpop.f32.mrf.mxu0 }
 0x14e   :  { %v1935_v19 = vpop.f32.mrf.mxu1  ;;  %v1872_v62 = vadd.f32 %v1871_v17, %v1870_v15 }
 0x14f   :  { %v1873_v22 = vpop.f32.mrf.mxu0  ;;  %v1936_v45 = vadd.f32 %v1935_v19, %v1934_v16  ;;  %v2879_v19 = vld [vmem:[#allocation4_spill] sm:$0xff] }
 0x150   :  { %v1937_v23 = vpop.f32.mrf.mxu1  ;;  %v1315_v33 = vadd.f32 %v1872_v62, %v2680_v47  ;;  %v1860_v47 = vadd.f32 %v1859_v61, %v1858_v58  ;;  %v1930_v62 = vadd.f32 %v1929_v8, %v1928_v6 }
 0x151   :  { %v1874_v24 = vpop.f32.mrf.mxu0 }
 0x152   :  { %v1938_v26 = vpop.f32.mrf.mxu1  ;;  %v1875_v36 = vadd.f32 %v1874_v24, %v1873_v22  ;;  %v1412_v48 = vadd.f32 %v1936_v45, %v1315_v33  ;;  %v1299_v61 = vadd.f32 %v1860_v47, %v2668_v11  ;;  %v2881_v33 = vld [vmem:[#allocation8_spill] sm:$0xff]  ;;  %v2886_v45 = vld [vmem:[#allocation7_spill] sm:$0xff] }
 0x153   :  { %v1876_v57 = vpop.f32.mrf.mxu0  ;;  %v1939_v5 = vadd.f32 %v1938_v26, %v1937_v23 }
 0x154   :  { %v2741_v54 = vpop.f32.mrf.mxu1 }
 0x155   :  { %2869 = vst [vmem:[#allocation19_spill] sm:$0xff] %v2741_v54  ;;  %v1877_v10 = vpop.f32.mrf.mxu0  ;;  %v1275_v54 = vadd.f32 %v1842_v31, %v2650_v27  ;;  %v1912_v27 = vadd.f32 %v2707_v42, %v2705_v40  ;;  %v1286_v31 = vadd.f32 %v1851_v55, %v2659_v51  ;;  %v1318_v40 = vadd.f32 %v1875_v36, %v2683_v56  ;;  %v2882_v36 = vld [vmem:[#allocation9_spill] sm:$0xff] }
 0x156   :  { %v2743_v4 = vpop.f32.mrf.mxu1  ;;  %v1878_v7 = vadd.f32 %v1877_v10, %v1876_v57  ;;  %v1863_v56 = vadd.f32 %v2733_v2, %v2729_v63  ;;  %v2875_v63 = vld [vmem:[#allocation10_spill] sm:$0xff]  ;;  %v2876_v2 = vld [vmem:[#allocation12_spill] sm:$0xff] }
 0x157   :  { %2870 = vst [vmem:[#allocation20_spill] sm:$0xff] %v2743_v4  ;;  %v2745_v0 = vpop.f32.mrf.mxu0  ;;  %v1278_v4 = vadd.f32 %v1845_v52, %v2653_v35  ;;  %v1869_v35 = vadd.f32 %v1868_v13, %v1867_v9  ;;  %v1372_v32 = vadd.f32 %v1906_v25, %v1275_v54  ;;  %v1383_v54 = vadd.f32 %v1915_v34, %v1286_v31  ;;  %v2878_v13 = vld [vmem:[#allocation15_spill] sm:$0xff] }
 0x158   :  { %2871 = vst [vmem:[#allocation21_spill] sm:$0xff] %v2745_v0  ;;  %v2747_v3 = vpop.f32.mrf.mxu1  ;;  %v1283_v0 = vadd.f32 %v1848_v49, %v2656_v43  ;;  %v1307_v43 = vadd.f32 %v1866_v21, %v2674_v29  ;;  %v1415_v8 = vadd.f32 %v1939_v5, %v1318_v40  ;;  %v1857_v9 = vadd.f32 %v2876_v2, %v2875_v63  ;;  %v2888_v40 = vld [vmem:[#allocation16_spill] sm:$0xff] }
 0x159   :  { %2872 = vst [vmem:[#allocation22_spill] sm:$0xff] %v2747_v3  ;;  %v2749_v20 = vpop.f32.mrf.mxu0  ;;  %v1375_v52 = vadd.f32 %v1909_v30, %v1278_v4  ;;  %v1310_v29 = vadd.f32 %v1869_v35, %v2677_v38  ;;  %v2874_v4 = vld [vmem:[#allocation6_spill] sm:$0xff]  ;;  %v1323_v22 = vadd.f32 %v1878_v7, %v2879_v19 }
 0x15a   :  { %v2751_v1 = vpop.f32.mrf.mxu1  ;;  %v1380_v49 = vadd.f32 %v1912_v27, %v1283_v0  ;;  %v1404_v58 = vadd.f32 %v1930_v62, %v1307_v43  ;;  %v2883_v27 = vld [vmem:[#allocation3_spill] sm:$0xff] }
 0x15b   :  { %v1882_v60 = vpop.f32.mrf.mxu0  ;;  %v1302_v31 = vadd.f32 %v1863_v56, %v2883_v27 }
 0x15c   :  { %v1946_v53 = vpop.f32.mrf.mxu1 }
 0x15d   :  { %v1883_v14 = vpop.f32.mrf.mxu0 }
 0x15e   :  { %v1947_v3 = vpop.f32.mrf.mxu1  ;;  %v1884_v51 = vadd.f32 %v1883_v14, %v1882_v60  ;;  %v2873_v60 = vld [vmem:[#allocation18_spill] sm:$0xff] }
 0x15f   :  { %v1885_v39 = vpop.f32.mrf.mxu0  ;;  %v1933_v0 = vadd.f32 %v2873_v60, %v2737_v12  ;;  %v2877_v12 = vld [vmem:[#allocation14_spill] sm:$0xff]  ;;  %v2880_v23 = vld [vmem:[#allocation21_spill] sm:$0xff]  ;;  %v1948_v26 = vadd.f32 %v1947_v3, %v1946_v53  ;;  %v2885_v3 = vld [vmem:[#allocation20_spill] sm:$0xff] }
 0x160   :  { %v2764_v18 = vpop.f32.mrf.mxu1  ;;  %v1331_v6 = vadd.f32 %v1884_v51, %v2874_v4  ;;  %v1924_v14 = vadd.f32 %v2878_v13, %v2877_v12  ;;  %v1881_v24 = vadd.f32 %v2749_v20, %v2880_v23  ;;  %v2884_v20 = vld [vmem:[#allocation19_spill] sm:$0xff]  ;;  %v2889_v51 = vld [vmem:[#allocation17_spill] sm:$0xff] }
 0x161   :  { %v1886_v28 = vpop.f32.mrf.mxu0  ;;  %v1407_v17 = vadd.f32 %v1933_v0, %v1310_v29  ;;  %v1942_v53 = vadd.f32 %v2885_v3, %v2884_v20  ;;  %v2893_v0 = vld [vmem:[#allocation22_spill] sm:$0xff] }
 0x162   :  { %v1950_v37 = vpop.f32.mrf.mxu1  ;;  %v1887_v10 = vadd.f32 %v1886_v28, %v1885_v39  ;;  %v1918_v39 = vadd.f32 %v2882_v36, %v2881_v33  ;;  %v1396_v43 = vadd.f32 %v1924_v14, %v1299_v61  ;;  %v1428_v47 = vadd.f32 %v1948_v26, %v1331_v6 }
 0x163   :  { %v1986_v42 = vpop.f32.mrf.mxu0 }
 0x164   :  { %v1477_v21 = vadd.f32 %v1986_v42, %v1380_v49  ;;  %v1994_v55 = vpop.f32.mrf.mxu1  ;;  %v1334_v28 = vadd.f32 %v1887_v10, %v2886_v45  ;;  %v2887_v49 = vld [vmem:[#allocation2_spill] sm:$0xff]  ;;  %v1927_v42 = vadd.f32 %v2889_v51, %v2888_v40  ;;  %v1388_v29 = vadd.f32 %v1918_v39, %v1291_v50 }
 0x165   :  { %v1509_v44 = vadd.f32 %v1994_v55, %v1412_v48  ;;  %v1468_v46 = vpop.f32.mrf.mxu0  ;;  %v1294_v62 = vadd.f32 %v1857_v9, %v2887_v49 }
 0x166   :  { %1533 = vst [vmem:[%s2851_s3 + $0x10] sm:$0xff] %v1477_v21  ;;  %v1469_v59 = vadd.f32 %v1468_v46, %v1372_v32  ;;  %v1500_v38 = vpop.f32.mrf.mxu1  ;;  %v2890_v21 = vld [vmem:[#allocation5_spill] sm:$0xff]  ;;  %v2891_v46 = vld [vmem:[#allocation11_spill] sm:$0xff]  ;;  %v1399_v60 = vadd.f32 %v1927_v42, %v1302_v31 }
 0x167   :  { %1541 = vst [vmem:[%s2851_s3 + $0x50] sm:$0xff] %v1509_v44  ;;  %v1501_v11 = vadd.f32 %v1500_v38, %v1404_v58  ;;  %v1987_v57 = vpop.f32.mrf.mxu0  ;;  %v1326_v55 = vadd.f32 %v1881_v24, %v2890_v21  ;;  %v1420_v44 = vadd.f32 %v1942_v53, %v1323_v22  ;;  %v2892_v58 = vld [vmem:[#allocation13_spill] sm:$0xff] }
 0x168   :  { %1531 = vst [vmem:[%s2851_s3] sm:$0xff] %v1469_v59  ;;  %v1480_v15 = vadd.f32 %v1987_v57, %v1383_v54  ;;  %v1995_v16 = vpop.f32.mrf.mxu1  ;;  %v1951_v54 = vadd.f32 %v1950_v37, %v2764_v18  ;;  %v1921_v61 = vadd.f32 %v2892_v58, %v2891_v46  ;;  %v1945_v18 = vadd.f32 %v2751_v1, %v2893_v0 }
 0x169   :  { %1539 = vst [vmem:[%s2851_s3 + $0x40] sm:$0xff] %v1501_v11  ;;  %v1512_v25 = vadd.f32 %v1995_v16, %v1415_v8  ;;  %v1471_v30 = vpop.f32.mrf.mxu0 }
 0x16a   :  { %1534 = vst [vmem:[%s2851_s3 + $0x18] sm:$0xff] %v1480_v15  ;;  %v1472_v41 = vadd.f32 %v1471_v30, %v1375_v52  ;;  %v1503_v35 = vpop.f32.mrf.mxu1  ;;  %v1431_v38 = vadd.f32 %v1951_v54, %v1334_v28  ;;  %v1391_v10 = vadd.f32 %v1921_v61, %v1294_v62  ;;  %v1423_v57 = vadd.f32 %v1945_v18, %v1326_v55 }
 0x16b   :  { %1542 = vst [vmem:[%s2851_s3 + $0x58] sm:$0xff] %v1512_v25  ;;  %v1504_v32 = vadd.f32 %v1503_v35, %v1407_v17  ;;  %v1990_v34 = vpop.f32.mrf.mxu0 }
 0x16c   :  { %1532 = vst [vmem:[%s2851_s3 + $0x8] sm:$0xff] %v1472_v41  ;;  %v1493_v52 = vadd.f32 %v1990_v34, %v1396_v43  ;;  %v1998_v48 = vpop.f32.mrf.mxu1 }
 0x16d   :  { %1540 = vst [vmem:[%s2851_s3 + $0x48] sm:$0xff] %v1504_v32  ;;  %v1525_v5 = vadd.f32 %v1998_v48, %v1428_v47  ;;  %v1484_v7 = vpop.f32.mrf.mxu0 }
 0x16e   :  { %1537 = vst [vmem:[%s2851_s3 + $0x30] sm:$0xff] %v1493_v52  ;;  %v1485_v56 = vadd.f32 %v1484_v7, %v1388_v29  ;;  %v1516_v50 = vpop.f32.mrf.mxu1 }
 0x16f   :  { %1545 = vst [vmem:[%s2851_s3 + $0x70] sm:$0xff] %v1525_v5  ;;  %v1517_v37 = vadd.f32 %v1516_v50, %v1420_v44  ;;  %v1991_v59 = vpop.f32.mrf.mxu0 }
 0x170   :  { %1535 = vst [vmem:[%s2851_s3 + $0x20] sm:$0xff] %v1485_v56  ;;  %v1496_v4 = vadd.f32 %v1991_v59, %v1399_v60  ;;  %v1999_v6 = vpop.f32.mrf.mxu1 }
 0x171   :  { %1543 = vst [vmem:[%s2851_s3 + $0x60] sm:$0xff] %v1517_v37  ;;  %v1528_v11 = vadd.f32 %v1999_v6, %v1431_v38  ;;  %v1487_v1 = vpop.f32.mrf.mxu0 }
 0x172   :  { %1538 = vst [vmem:[%s2851_s3 + $0x38] sm:$0xff] %v1496_v4  ;;  %v1488_v8 = vadd.f32 %v1487_v1, %v1391_v10  ;;  %v1519_v63 = vpop.f32.mrf.mxu1 }
 0x173   :  { %1546 = vst [vmem:[%s2851_s3 + $0x78] sm:$0xff] %v1528_v11  ;;  %v1520_v2 = vadd.f32 %v1519_v63, %v1423_v57 }
 0x174   :  { %1536 = vst [vmem:[%s2851_s3 + $0x28] sm:$0xff] %v1488_v8 }
 0x175   :  { %1544 = vst [vmem:[%s2851_s3 + $0x68] sm:$0xff] %v1520_v2 }

// kernel: fpn_forward.11
= control target key start
LH: loop header
LB: loop body
LE: loop exit
PB: predicated region body
PF: predicated region fallthrough
CT: control target
= control target key end

     0   :  { %s1599_s1 = inlined_call_operand.vmem [shape: bf16[1152,128], index: 1, kind: input, shape index: {}]   ;;  %s1600_s0 = inlined_call_operand.vmem [shape: bf16[32,1152], index: 0, kind: input, shape index: {}]   ;;  %s1601_s2 = inlined_call_operand.vmem [shape: f32[1,128], index: 2, kind: input, shape index: {}]   ;;  %s1602_s3 = inlined_call_operand.vmem [shape: f32[32,128], index: 3, kind: output, shape index: {}]  }
   0x1   :  { %v1196_v0 = vld [vmem:[%s1599_s1 + $0x78] sm:$0xff]   ;;  %v1200_v4 = vld [vmem:[%s1599_s1 + $0x70] sm:$0xff]   ;;  %v1204_v8 = vld [vmem:[%s1599_s1 + $0x68] sm:$0xff]  }
   0x2   :  { %v1197_v1 = vld [vmem:[%s1599_s1 + $0x38] sm:$0xff]   ;;  %1054 = vmatprep.subr.bf16.mxu0 %v1196_v0  ;;  %v1201_v5 = vld [vmem:[%s1599_s1 + $0x30] sm:$0xff]   ;;  %v1205_v9 = vld [vmem:[%s1599_s1 + $0x28] sm:$0xff]  }
   0x3   :  { %v1198_v2 = vld [vmem:[%s1599_s1 + $0xf8] sm:$0xff]   ;;  %1055 = vmatpush3.bf16.msra.mxu0 %v1197_v1  ;;  %v1202_v6 = vld [vmem:[%s1599_s1 + $0xf0] sm:$0xff]   ;;  %v1206_v10 = vld [vmem:[%s1599_s1 + $0xe8] sm:$0xff]  }
   0x4   :  { %v1199_v3 = vld [vmem:[%s1599_s1 + $0xb8] sm:$0xff]   ;;  %1082 = vmatprep.subr.bf16.mxu1 %v1198_v2  ;;  %1056 = vmatprep.subr.bf16.mxu0 %v1200_v4  ;;  %v1203_v7 = vld [vmem:[%s1599_s1 + $0xb0] sm:$0xff]   ;;  %v1207_v11 = vld [vmem:[%s1599_s1 + $0xa8] sm:$0xff]  }
   0x5   :  { %1083 = vmatpush3.bf16.msra.mxu1 %v1199_v3  ;;  %v1208_v12 = vld [vmem:[%s1599_s1 + $0x60] sm:$0xff]   ;;  %v1212_v16 = vld [vmem:[%s1599_s1 + $0x58] sm:$0xff]   ;;  %v1216_v20 = vld [vmem:[%s1599_s1 + $0x50] sm:$0xff]  }
   0x6   :  { %1084 = vmatprep.subr.bf16.mxu1 %v1202_v6  ;;  %v1209_v13 = vld [vmem:[%s1599_s1 + $0x20] sm:$0xff]   ;;  %v1213_v17 = vld [vmem:[%s1599_s1 + $0x18] sm:$0xff]   ;;  %v1217_v21 = vld [vmem:[%s1599_s1 + $0x10] sm:$0xff]  }
   0x7   :  { %1057 = vmatpush3.bf16.msra.mxu0 %v1201_v5  ;;  %v1210_v14 = vld [vmem:[%s1599_s1 + $0xe0] sm:$0xff]   ;;  %v1214_v18 = vld [vmem:[%s1599_s1 + $0xd8] sm:$0xff]   ;;  %v1218_v22 = vld [vmem:[%s1599_s1 + $0xd0] sm:$0xff]  }
   0x8   :  { %1058 = vmatprep.subr.bf16.mxu0 %v1204_v8  ;;  %v1211_v15 = vld [vmem:[%s1599_s1 + $0xa0] sm:$0xff]   ;;  %v1215_v19 = vld [vmem:[%s1599_s1 + $0x98] sm:$0xff]   ;;  %v1219_v23 = vld [vmem:[%s1599_s1 + $0x90] sm:$0xff]  }
   0x9   :  { %1085 = vmatpush3.bf16.msra.mxu1 %v1203_v7  ;;  %v1220_v24 = vld [vmem:[%s1599_s1 + $0x48] sm:$0xff]   ;;  %v1224_v28 = vld [vmem:[%s1599_s1 + $0x40] sm:$0xff]   ;;  %v1231_v34 = vld [vmem:[%s1599_s1 + $0x178] sm:$0xff]  }
   0xa   :  { %1086 = vmatprep.subr.bf16.mxu1 %v1206_v10  ;;  %v1221_v25 = vld [vmem:[%s1599_s1 + $0x8] sm:$0xff]   ;;  %v1225_v29 = vld [vmem:[%s1599_s1] sm:$0xff]   ;;  %v1235_v37 = vld [vmem:[%s1599_s1 + $0x138] sm:$0xff]  }
   0xb   :  { %1059 = vmatpush3.bf16.msra.mxu0 %v1205_v9  ;;  %v1222_v26 = vld [vmem:[%s1599_s1 + $0xc8] sm:$0xff]   ;;  %v1226_v30 = vld [vmem:[%s1599_s1 + $0xc0] sm:$0xff]   ;;  %v1236_v38 = vld [vmem:[%s1599_s1 + $0x1f8] sm:$0xff]  }
   0xc   :  { %1060 = vmatprep.subr.bf16.mxu0 %v1208_v12  ;;  %v1223_v27 = vld [vmem:[%s1599_s1 + $0x88] sm:$0xff]   ;;  %v1227_v31 = vld [vmem:[%s1600_s0] ss:$36 sps:$4 sm:$0xff]   ;;  %v1237_v39 = vld [vmem:[%s1599_s1 + $0x1b8] sm:$0xff]  }
   0xd   :  { %1087 = vmatpush3.bf16.msra.mxu1 %v1207_v11  ;;  %v1229_v32 = vld [vmem:[%s1600_s0 + $0x4] ss:$36 sps:$4 sm:$0xff]   ;;  %v1234_v36 = vld [vmem:[%s1600_s0 + $0xc] ss:$36 sps:$4 sm:$0xff]   ;;  %v1250_v52 = vld [vmem:[%s1599_s1 + $0x158] sm:$0xff]  }
   0xe   :  { %1088 = vmatprep.subr.bf16.mxu1 %v1210_v14  ;;  %v1230_v33 = vld [vmem:[%s1599_s1 + $0x80] sm:$0xff]   ;;  %742 = vmatprep.mubr.bf16.mxu0 %v1229_v32  ;;  %v1232_v35 = vld [vmem:[%s1600_s0 + $0x8] ss:$36 sps:$4 sm:$0xff]   ;;  %v1238_v40 = vld [vmem:[%s1599_s1 + $0x170] sm:$0xff]  }
   0xf   :  { %1061 = vmatpush3.bf16.msra.mxu0 %v1209_v13  ;;  %791 = vmatprep.mubr.bf16.mxu1 %v1234_v36  ;;  %v1239_v41 = vld [vmem:[%s1599_s1 + $0x130] sm:$0xff]   ;;  %v1242_v44 = vld [vmem:[%s1599_s1 + $0x168] sm:$0xff]   ;;  %v1246_v48 = vld [vmem:[%s1599_s1 + $0x160] sm:$0xff]  }
  0x10   :  { %1062 = vmatprep.subr.bf16.mxu0 %v1212_v16  ;;  %v1240_v42 = vld [vmem:[%s1599_s1 + $0x1f0] sm:$0xff]   ;;  %v1243_v45 = vld [vmem:[%s1599_s1 + $0x128] sm:$0xff]   ;;  %v1247_v49 = vld [vmem:[%s1599_s1 + $0x120] sm:$0xff]  }
  0x11   :  { %1089 = vmatpush3.bf16.msra.mxu1 %v1211_v15  ;;  %v1241_v43 = vld [vmem:[%s1599_s1 + $0x1b0] sm:$0xff]   ;;  %v1244_v46 = vld [vmem:[%s1599_s1 + $0x1e8] sm:$0xff]   ;;  %v1248_v50 = vld [vmem:[%s1599_s1 + $0x1e0] sm:$0xff]  }
  0x12   :  { %1090 = vmatprep.subr.bf16.mxu1 %v1214_v18  ;;  %v1245_v47 = vld [vmem:[%s1599_s1 + $0x1a8] sm:$0xff]   ;;  %v1249_v51 = vld [vmem:[%s1599_s1 + $0x1a0] sm:$0xff]   ;;  %v1251_v53 = vld [vmem:[%s1599_s1 + $0x118] sm:$0xff]  }
  0x13   :  { %1063 = vmatpush3.bf16.msra.mxu0 %v1213_v17  ;;  %v1252_v54 = vld [vmem:[%s1600_s0 + $0x4c] ss:$36 sps:$4 sm:$0xff]   ;;  %v1254_v55 = vld [vmem:[%s1599_s1 + $0x1d8] sm:$0xff]   ;;  %v1268_v4 = vld [vmem:[%s1599_s1 + $0x140] sm:$0xff]  }
  0x14   :  { %1064 = vmatprep.subr.bf16.mxu0 %v1216_v20  ;;  %v1255_v56 = vld [vmem:[%s1600_s0 + $0x48] ss:$36 sps:$4 sm:$0xff]   ;;  %v1256_v57 = vld [vmem:[%s1599_s1 + $0x198] sm:$0xff]   ;;  %v1259_v59 = vld [vmem:[%s1599_s1 + $0x150] sm:$0xff]  }
  0x15   :  { %1091 = vmatpush3.bf16.msra.mxu1 %v1215_v19  ;;  %v1257_v58 = vld [vmem:[%s1600_s0 + $0x54] ss:$36 sps:$4 sm:$0xff]   ;;  %v1264_v0 = vld [vmem:[%s1599_s1 + $0x148] sm:$0xff]   ;;  %v1269_v5 = vld [vmem:[%s1599_s1 + $0x100] sm:$0xff]  }
  0x16   :  { %1092 = vmatprep.subr.bf16.mxu1 %v1218_v22  ;;  %v1260_v60 = vld [vmem:[%s1600_s0 + $0x50] ss:$36 sps:$4 sm:$0xff]   ;;  %v1265_v1 = vld [vmem:[%s1599_s1 + $0x108] sm:$0xff]   ;;  %v1270_v6 = vld [vmem:[%s1599_s1 + $0x1c0] sm:$0xff]  }
  0x17   :  { %1065 = vmatpush3.bf16.msra.mxu0 %v1217_v21  ;;  %v1261_v61 = vld [vmem:[%s1599_s1 + $0x110] sm:$0xff]   ;;  %v1266_v2 = vld [vmem:[%s1599_s1 + $0x1c8] sm:$0xff]   ;;  %v1274_v9 = vld [vmem:[%s1599_s1 + $0x180] sm:$0xff]  }
  0x18   :  { %1066 = vmatprep.subr.bf16.mxu0 %v1220_v24  ;;  %v1262_v62 = vld [vmem:[%s1599_s1 + $0x1d0] sm:$0xff]   ;;  %v1267_v3 = vld [vmem:[%s1599_s1 + $0x188] sm:$0xff]   ;;  %v1275_v10 = vld [vmem:[%s1599_s1 + $0x238] sm:$0xff]  }
  0x19   :  { %1093 = vmatpush3.bf16.msra.mxu1 %v1219_v23  ;;  %v1263_v63 = vld [vmem:[%s1599_s1 + $0x190] sm:$0xff]   ;;  %v1276_v11 = vld [vmem:[%s1600_s0 + $0x18] ss:$36 sps:$4 sm:$0xff]   ;;  %v1283_v16 = vld [vmem:[%s1599_s1 + $0x228] sm:$0xff]  }
  0x1a   :  { %1094 = vmatprep.subr.bf16.mxu1 %v1222_v26  ;;  %v1271_v7 = vld [vmem:[%s1600_s0 + $0x10] ss:$36 sps:$4 sm:$0xff]   ;;  %v1278_v12 = vld [vmem:[%s1600_s0 + $0x1c] ss:$36 sps:$4 sm:$0xff]   ;;  %v1284_v17 = vld [vmem:[%s1600_s0 + $0x64] ss:$36 sps:$4 sm:$0xff]  }
  0x1b   :  { %1067 = vmatpush3.bf16.msra.mxu0 %v1221_v25  ;;  %v1273_v8 = vld [vmem:[%s1600_s0 + $0x14] ss:$36 sps:$4 sm:$0xff]   ;;  %v1280_v14 = vld [vmem:[%s1600_s0 + $0x5c] ss:$36 sps:$4 sm:$0xff]   ;;  %v1290_v23 = vld [vmem:[%s1599_s1 + $0x208] sm:$0xff]  }
  0x1c   :  { %1068 = vmatprep.subr.bf16.mxu0 %v1224_v28  ;;  %v1279_v13 = vld [vmem:[%s1599_s1 + $0x230] sm:$0xff]   ;;  %v1282_v15 = vld [vmem:[%s1600_s0 + $0x58] ss:$36 sps:$4 sm:$0xff]   ;;  %v1286_v18 = vld [vmem:[%s1600_s0 + $0x60] ss:$36 sps:$4 sm:$0xff]  }
  0x1d   :  { %1095 = vmatpush3.bf16.msra.mxu1 %v1223_v27  ;;  %v1287_v19 = vld [vmem:[%s1599_s1 + $0x220] sm:$0xff]   ;;  %v1288_v20 = vld [vmem:[%s1599_s1 + $0x218] sm:$0xff]   ;;  %v1289_v22 = vld [vmem:[%s1599_s1 + $0x210] sm:$0xff]  }
  0x1e   :  { %1096 = vmatprep.subr.bf16.mxu1 %v1226_v30  ;;  %v1292_v21 = vld [vmem:[%s1600_s0 + $0x20] ss:$36 sps:$4 sm:$0xff]   ;;  %v1293_v25 = vld [vmem:[%s1600_s0 + $0x68] ss:$36 sps:$4 sm:$0xff]  }
  0x1f   :  { %1069 = vmatpush3.bf16.msra.mxu0 %v1225_v29  ;;  %v1291_v24 = vld [vmem:[%s1599_s1 + $0x200] sm:$0xff]  }
  0x20   :  { %1110 = vmatprep.subr.bf16.mxu0 %v1231_v34 }
  0x21   :  { %1097 = vmatpush3.bf16.msra.mxu1 %v1230_v33 }
  0x22   :  { %743 = vmatmul.mubr.bf16.vlgmr.msra.gmra.mxu0 %v1227_v31  ;;  %1138 = vmatprep.subr.bf16.mxu1 %v1236_v38 }
  0x23   :  { %1111 = vmatpush3.bf16.msra.mxu0 %v1235_v37  ;;  %750 = vmatprep.mubr.bf16.mxu0 %v1252_v54 }
  0x24   :  { %792 = vmatmul.mubr.bf16.vlgmr.msra.gmra.mxu1 %v1232_v35  ;;  %1112 = vmatprep.subr.bf16.mxu0 %v1238_v40 }
  0x25   :  { %1139 = vmatpush3.bf16.msra.mxu1 %v1237_v39  ;;  %799 = vmatprep.mubr.bf16.mxu1 %v1257_v58 }
  0x26   :  { %1140 = vmatprep.subr.bf16.mxu1 %v1240_v42 }
  0x27   :  { %1113 = vmatpush3.bf16.msra.mxu0 %v1239_v41 }
  0x28   :  { %1114 = vmatprep.subr.bf16.mxu0 %v1242_v44 }
  0x29   :  { %1141 = vmatpush3.bf16.msra.mxu1 %v1241_v43 }
  0x2a   :  { %1142 = vmatprep.subr.bf16.mxu1 %v1244_v46  ;;  %751 = vmatmul.mubr.bf16.gmra.mxu0 %v1255_v56 }
  0x2b   :  { %1115 = vmatpush3.bf16.msra.mxu0 %v1243_v45  ;;  %840 = vmatprep.mubr.bf16.mxu0 %v1273_v8 }
  0x2c   :  { %1116 = vmatprep.subr.bf16.mxu0 %v1246_v48  ;;  %800 = vmatmul.mubr.bf16.gmra.mxu1 %v1260_v60 }
  0x2d   :  { %1143 = vmatpush3.bf16.msra.mxu1 %v1245_v47  ;;  %889 = vmatprep.mubr.bf16.mxu1 %v1278_v12 }
  0x2e   :  { %1144 = vmatprep.subr.bf16.mxu1 %v1248_v50 }
  0x2f   :  { %1117 = vmatpush3.bf16.msra.mxu0 %v1247_v49 }
  0x30   :  { %1118 = vmatprep.subr.bf16.mxu0 %v1250_v52 }
  0x31   :  { %1145 = vmatpush3.bf16.msra.mxu1 %v1249_v51 }
  0x32   :  { %1146 = vmatprep.subr.bf16.mxu1 %v1254_v55  ;;  %v963_v55 = vld [vmem:[%s1601_s2] ss:$0 sm:$0xff] }
  0x33   :  { %1119 = vmatpush3.bf16.msra.mxu0 %v1251_v53 }
  0x34   :  { %1120 = vmatprep.subr.bf16.mxu0 %v1259_v59 }
  0x35   :  { %1147 = vmatpush3.bf16.msra.mxu1 %v1256_v57 }
  0x36   :  { %1148 = vmatprep.subr.bf16.mxu1 %v1262_v62 }
  0x37   :  { %1121 = vmatpush3.bf16.msra.mxu0 %v1261_v61 }
  0x38   :  { %1122 = vmatprep.subr.bf16.mxu0 %v1264_v0 }
  0x39   :  { %1149 = vmatpush3.bf16.msra.mxu1 %v1263_v63 }
  0x3a   :  { %1150 = vmatprep.subr.bf16.mxu1 %v1266_v2 }
  0x3b   :  { %1123 = vmatpush3.bf16.msra.mxu0 %v1265_v1 }
  0x3c   :  { %1124 = vmatprep.subr.bf16.mxu0 %v1268_v4 }
  0x3d   :  { %1151 = vmatpush3.bf16.msra.mxu1 %v1267_v3 }
  0x3e   :  { %1152 = vmatprep.subr.bf16.mxu1 %v1270_v6 }
  0x3f   :  { %1125 = vmatpush3.bf16.msra.mxu0 %v1269_v5 }
  0x40   :  { %1176 = vmatprep.subr.bf16.mxu0 %v1275_v10 }
  0x41   :  { %1153 = vmatpush3.bf16.msra.mxu1 %v1274_v9 }
  0x42   :  { %841 = vmatmul.mubr.bf16.vlgmr.msra.gmra.mxu0 %v1271_v7 }
  0x43   :  { %1177 = vmatpush3.bf16.msra.mxu0 %v1275_v10  ;;  %848 = vmatprep.mubr.bf16.mxu0 %v1280_v14 }
  0x44   :  { %890 = vmatmul.mubr.bf16.vlgmr.msra.gmra.mxu1 %v1276_v11  ;;  %1178 = vmatprep.subr.bf16.mxu0 %v1279_v13 }
  0x45   :  { %897 = vmatprep.mubr.bf16.mxu1 %v1284_v17 }
  0x47   :  { %1179 = vmatpush3.bf16.msra.mxu0 %v1279_v13 }
  0x48   :  { %1180 = vmatprep.subr.bf16.mxu0 %v1283_v16 }
  0x4a   :  { %849 = vmatmul.mubr.bf16.gmra.mxu0 %v1282_v15 }
  0x4b   :  { %1181 = vmatpush3.bf16.msra.mxu0 %v1283_v16  ;;  %1192 = vmatprep.mubr.bf16.mxu0 %v1292_v21 }
  0x4c   :  { %898 = vmatmul.mubr.bf16.gmra.mxu1 %v1286_v18  ;;  %1182 = vmatprep.subr.bf16.mxu0 %v1287_v19 }
  0x4f   :  { %1183 = vmatpush3.bf16.msra.mxu0 %v1287_v19 }
  0x50   :  { %1184 = vmatprep.subr.bf16.mxu0 %v1288_v20 }
  0x53   :  { %1185 = vmatpush3.bf16.msra.mxu0 %v1288_v20 }
  0x54   :  { %1186 = vmatprep.subr.bf16.mxu0 %v1289_v22 }
  0x57   :  { %1187 = vmatpush3.bf16.msra.mxu0 %v1289_v22 }
  0x58   :  { %1188 = vmatprep.subr.bf16.mxu0 %v1290_v23 }
  0x5b   :  { %1189 = vmatpush3.bf16.msra.mxu0 %v1290_v23 }
  0x5c   :  { %1190 = vmatprep.subr.bf16.mxu0 %v1291_v24 }
  0x5f   :  { %1191 = vmatpush3.bf16.msra.mxu0 %v1291_v24 }
  0x62   :  { %1193 = vmatmul.mubr.bf16.vlgmr.msra.gmra.mxu0 %v1293_v25 }
  0xe2   :  { %v1070_v26 = vpop.f32.mrf.mxu0 }
  0xe4   :  { %v1098_v27 = vpop.f32.mrf.mxu1  ;;  %v1071_v28 = vpop.f32.mrf.mxu0 }
  0xe5   :  { %v1072_v54 = vadd.f32 %v1071_v28, %v1070_v26 }
  0xe6   :  { %v1099_v29 = vpop.f32.mrf.mxu1  ;;  %v1073_v30 = vpop.f32.mrf.mxu0 }
  0xe7   :  { %v745_v61 = vadd.f32 %v1072_v54, %v963_v55  ;;  %v1100_v62 = vadd.f32 %v1099_v29, %v1098_v27 }
  0xe8   :  { %v1101_v31 = vpop.f32.mrf.mxu1  ;;  %v1074_v32 = vpop.f32.mrf.mxu0 }
  0xe9   :  { %v1075_v63 = vadd.f32 %v1074_v32, %v1073_v30  ;;  %v794_v7 = vadd.f32 %v1100_v62, %v745_v61 }
  0xea   :  { %v1076_v33 = vpop.f32.mrf.mxu0  ;;  %v1102_v34 = vpop.f32.mrf.mxu1 }
  0xeb   :  { %v748_v8 = vadd.f32 %v1075_v63, %v963_v55  ;;  %v1103_v9 = vadd.f32 %v1102_v34, %v1101_v31 }
  0xec   :  { %v1104_v35 = vpop.f32.mrf.mxu1  ;;  %v1077_v36 = vpop.f32.mrf.mxu0 }
  0xed   :  { %v1078_v53 = vadd.f32 %v1077_v36, %v1076_v33  ;;  %v797_v18 = vadd.f32 %v1103_v9, %v748_v8 }
  0xee   :  { %v1105_v37 = vpop.f32.mrf.mxu1  ;;  %v1079_v38 = vpop.f32.mrf.mxu0 }
  0xef   :  { %v753_v58 = vadd.f32 %v1078_v53, %v963_v55  ;;  %v1106_v59 = vadd.f32 %v1105_v37, %v1104_v35 }
  0xf0   :  { %v1107_v39 = vpop.f32.mrf.mxu1  ;;  %v1080_v40 = vpop.f32.mrf.mxu0 }
  0xf1   :  { %v1081_v60 = vadd.f32 %v1080_v40, %v1079_v38  ;;  %v802_v3 = vadd.f32 %v1106_v59, %v753_v58 }
  0xf2   :  { %v1108_v42 = vpop.f32.mrf.mxu1 }
  0xf3   :  { %v756_v4 = vadd.f32 %v1081_v60, %v963_v55  ;;  %v1109_v5 = vadd.f32 %v1108_v42, %v1107_v39 }
  0xf5   :  { %v805_v14 = vadd.f32 %v1109_v5, %v756_v4 }
 0x102   :  { %v1126_v41 = vpop.f32.mrf.mxu0 }
 0x104   :  { %v1127_v43 = vpop.f32.mrf.mxu0  ;;  %v1154_v44 = vpop.f32.mrf.mxu1 }
 0x105   :  { %v1128_v6 = vadd.f32 %v1127_v43, %v1126_v41 }
 0x106   :  { %v1129_v45 = vpop.f32.mrf.mxu0  ;;  %v1155_v46 = vpop.f32.mrf.mxu1 }
 0x107   :  { %v843_v15 = vadd.f32 %v1128_v6, %v794_v7  ;;  %v1156_v16 = vadd.f32 %v1155_v46, %v1154_v44 }
 0x108   :  { %v1130_v47 = vpop.f32.mrf.mxu0  ;;  %v1157_v48 = vpop.f32.mrf.mxu1 }
 0x109   :  { %v1131_v17 = vadd.f32 %v1130_v47, %v1129_v45  ;;  %v892_v26 = vadd.f32 %v1156_v16, %v843_v15 }
 0x10a   :  { %v1132_v49 = vpop.f32.mrf.mxu0  ;;  %v1158_v50 = vpop.f32.mrf.mxu1 }
 0x10b   :  { %v846_v23 = vadd.f32 %v1131_v17, %v797_v18  ;;  %v1159_v24 = vadd.f32 %v1158_v50, %v1157_v48 }
 0x10c   :  { %v1133_v51 = vpop.f32.mrf.mxu0  ;;  %v1160_v52 = vpop.f32.mrf.mxu1 }
 0x10d   :  { %v1134_v0 = vadd.f32 %v1133_v51, %v1132_v49  ;;  %v895_v32 = vadd.f32 %v1159_v24, %v846_v23 }
 0x10e   :  { %v1135_v56 = vpop.f32.mrf.mxu0  ;;  %v1161_v57 = vpop.f32.mrf.mxu1 }
 0x10f   :  { %v851_v10 = vadd.f32 %v1134_v0, %v802_v3  ;;  %v1162_v11 = vadd.f32 %v1161_v57, %v1160_v52 }
 0x110   :  { %v1136_v1 = vpop.f32.mrf.mxu0  ;;  %v1163_v2 = vpop.f32.mrf.mxu1 }
 0x111   :  { %v1137_v12 = vadd.f32 %v1136_v1, %v1135_v56  ;;  %v900_v21 = vadd.f32 %v1162_v11, %v851_v10 }
 0x112   :  { %v1164_v13 = vpop.f32.mrf.mxu1 }
 0x113   :  { %v854_v19 = vadd.f32 %v1137_v12, %v805_v14  ;;  %v1165_v20 = vadd.f32 %v1164_v13, %v1163_v2 }
 0x115   :  { %v903_v29 = vadd.f32 %v1165_v20, %v854_v19 }
 0x122   :  { %v1194_v22 = vpop.f32.mrf.mxu0 }
 0x123   :  { %v949_v25 = vadd.f32 %v1194_v22, %v900_v21 }
 0x124   :  { %v940_v27 = vpop.f32.mrf.mxu0 }
 0x125   :  { %957 = vst [vmem:[%s1602_s3 + $0x10] sm:$0xff] %v949_v25  ;;  %v941_v28 = vadd.f32 %v940_v27, %v892_v26 }
 0x126   :  { %v1195_v30 = vpop.f32.mrf.mxu0 }
 0x127   :  { %955 = vst [vmem:[%s1602_s3] sm:$0xff] %v941_v28  ;;  %v952_v31 = vadd.f32 %v1195_v30, %v903_v29 }
 0x128   :  { %v943_v33 = vpop.f32.mrf.mxu0 }
 0x129   :  { %958 = vst [vmem:[%s1602_s3 + $0x18] sm:$0xff] %v952_v31  ;;  %v944_v34 = vadd.f32 %v943_v33, %v895_v32 }
 0x12b   :  { %956 = vst [vmem:[%s1602_s3 + $0x8] sm:$0xff] %v944_v34 }

// kernel: fpn_forward.9
= control target key start
LH: loop header
LB: loop body
LE: loop exit
PB: predicated region body
PF: predicated region fallthrough
CT: control target
= control target key end

     0   :  { %v1119_v32 = vmov 0   ;;  %vm1121_vm0 = vmmov 0   ;;  %s1384_s1 = inlined_call_operand.vmem [shape: bf16[1152,128], index: 1, kind: input, shape index: {}]   ;;  %s1385_s0 = inlined_call_operand.vmem [shape: bf16[8,1152], index: 0, kind: input, shape index: {}]   ;;  %s1386_s2 = inlined_call_operand.vmem [shape: f32[1,128], index: 2, kind: input, shape index: {}]   ;;  %s1387_s3 = inlined_call_operand.vmem [shape: f32[8,128], index: 3, kind: output, shape index: {}]  }
   0x1   :  { %v1047_v0 = vld [vmem:[%s1384_s1 + $0x78] sm:$0xff]   ;;  %v1051_v4 = vld [vmem:[%s1384_s1 + $0x70] sm:$0xff]   ;;  %v1055_v8 = vld [vmem:[%s1384_s1 + $0x68] sm:$0xff]  }
   0x2   :  { %v1048_v1 = vld [vmem:[%s1384_s1 + $0x38] sm:$0xff]   ;;  %927 = vmatprep.subr.bf16.mxu0 %v1047_v0  ;;  %v1052_v5 = vld [vmem:[%s1384_s1 + $0x30] sm:$0xff]   ;;  %v1056_v9 = vld [vmem:[%s1384_s1 + $0x28] sm:$0xff]  }
   0x3   :  { %v1049_v2 = vld [vmem:[%s1384_s1 + $0xf8] sm:$0xff]   ;;  %928 = vmatpush3.bf16.msra.mxu0 %v1048_v1  ;;  %v1053_v6 = vld [vmem:[%s1384_s1 + $0xf0] sm:$0xff]   ;;  %v1057_v10 = vld [vmem:[%s1384_s1 + $0xe8] sm:$0xff]  }
   0x4   :  { %v1050_v3 = vld [vmem:[%s1384_s1 + $0xb8] sm:$0xff]   ;;  %949 = vmatprep.subr.bf16.mxu1 %v1049_v2  ;;  %929 = vmatprep.subr.bf16.mxu0 %v1051_v4  ;;  %v1054_v7 = vld [vmem:[%s1384_s1 + $0xb0] sm:$0xff]   ;;  %v1058_v11 = vld [vmem:[%s1384_s1 + $0xa8] sm:$0xff]  }
   0x5   :  { %950 = vmatpush3.bf16.msra.mxu1 %v1050_v3  ;;  %v1059_v12 = vld [vmem:[%s1384_s1 + $0x60] sm:$0xff]   ;;  %v1063_v16 = vld [vmem:[%s1384_s1 + $0x58] sm:$0xff]   ;;  %v1067_v20 = vld [vmem:[%s1384_s1 + $0x50] sm:$0xff]  }
   0x6   :  { %951 = vmatprep.subr.bf16.mxu1 %v1053_v6  ;;  %v1060_v13 = vld [vmem:[%s1384_s1 + $0x20] sm:$0xff]   ;;  %v1064_v17 = vld [vmem:[%s1384_s1 + $0x18] sm:$0xff]   ;;  %v1068_v21 = vld [vmem:[%s1384_s1 + $0x10] sm:$0xff]  }
   0x7   :  { %930 = vmatpush3.bf16.msra.mxu0 %v1052_v5  ;;  %v1061_v14 = vld [vmem:[%s1384_s1 + $0xe0] sm:$0xff]   ;;  %v1065_v18 = vld [vmem:[%s1384_s1 + $0xd8] sm:$0xff]   ;;  %v1069_v22 = vld [vmem:[%s1384_s1 + $0xd0] sm:$0xff]  }
   0x8   :  { %931 = vmatprep.subr.bf16.mxu0 %v1055_v8  ;;  %v1062_v15 = vld [vmem:[%s1384_s1 + $0xa0] sm:$0xff]   ;;  %v1066_v19 = vld [vmem:[%s1384_s1 + $0x98] sm:$0xff]   ;;  %v1070_v23 = vld [vmem:[%s1384_s1 + $0x90] sm:$0xff]  }
   0x9   :  { %952 = vmatpush3.bf16.msra.mxu1 %v1054_v7  ;;  %v1071_v24 = vld [vmem:[%s1384_s1 + $0x48] sm:$0xff]   ;;  %v1075_v28 = vld [vmem:[%s1384_s1 + $0x40] sm:$0xff]   ;;  %v1079_v35 = vld [vmem:[%s1384_s1 + $0x178] sm:$0xff]  }
   0xa   :  { %953 = vmatprep.subr.bf16.mxu1 %v1057_v10  ;;  %v1072_v25 = vld [vmem:[%s1384_s1 + $0x8] sm:$0xff]   ;;  %v1076_v29 = vld [vmem:[%s1384_s1] sm:$0xff]   ;;  %v1080_v40 = vld [vmem:[%s1384_s1 + $0x138] sm:$0xff]  }
   0xb   :  { %932 = vmatpush3.bf16.msra.mxu0 %v1056_v9  ;;  %v1073_v26 = vld [vmem:[%s1384_s1 + $0xc8] sm:$0xff]   ;;  %v1077_v30 = vld [vmem:[%s1384_s1 + $0xc0] sm:$0xff]   ;;  %v1081_v41 = vld [vmem:[%s1384_s1 + $0x1f8] sm:$0xff]  }
   0xc   :  { %933 = vmatprep.subr.bf16.mxu0 %v1059_v12  ;;  %v1074_v27 = vld [vmem:[%s1384_s1 + $0x88] sm:$0xff]   ;;  %v15_v31 = vld [vmem:[%s1385_s0] sm:$0xff]  ;;  %v1082_v44 = vld [vmem:[%s1384_s1 + $0x1b8] sm:$0xff]  }
   0xd   :  { %954 = vmatpush3.bf16.msra.mxu1 %v1058_v11  ;;  %v20_v33 = vmax.bf16 %v1119_v32, %v15_v31  ;;  %v1078_v34 = vld [vmem:[%s1384_s1 + $0x80] sm:$0xff]   ;;  %v16_v36 = vld [vmem:[%s1385_s0 + $0x8] sm:$0xff]  ;;  %v1083_v45 = vld [vmem:[%s1384_s1 + $0x170] sm:$0xff]  }
   0xe   :  { %955 = vmatprep.subr.bf16.mxu1 %v1061_v14  ;;  %v21_v39 = vmax.bf16 %v1119_v32, %v16_v36  ;;  %v1084_v46 = vld [vmem:[%s1384_s1 + $0x130] sm:$0xff]   ;;  %v1087_v49 = vld [vmem:[%s1384_s1 + $0x168] sm:$0xff]   ;;  %v1091_v53 = vld [vmem:[%s1384_s1 + $0x160] sm:$0xff]  }
   0xf   :  { %934 = vmatpush3.bf16.msra.mxu0 %v1060_v13  ;;  %v847_v37 = vcombine.high %v20_v33, %v20_v33  ;;  %v846_v38 = vcombine.low %v20_v33, %v20_v33  ;;  %v1085_v47 = vld [vmem:[%s1384_s1 + $0x1f0] sm:$0xff]   ;;  %v1088_v50 = vld [vmem:[%s1384_s1 + $0x128] sm:$0xff]   ;;  %v1092_v54 = vld [vmem:[%s1384_s1 + $0x120] sm:$0xff]  }
  0x10   :  { %935 = vmatprep.subr.bf16.mxu0 %v1063_v16  ;;  %v849_v42 = vcombine.high %v21_v39, %v21_v39  ;;  %v848_v43 = vcombine.low %v21_v39, %v21_v39  ;;  %v1086_v48 = vld [vmem:[%s1384_s1 + $0x1b0] sm:$0xff]   ;;  %v1089_v51 = vld [vmem:[%s1384_s1 + $0x1e8] sm:$0xff]   ;;  %v1093_v55 = vld [vmem:[%s1384_s1 + $0x1e0] sm:$0xff]   ;;  %v1120_v16 = vmov 0.0  }
  0x11   :  { %956 = vmatpush3.bf16.msra.mxu1 %v1062_v15  ;;  %672 = vmatprep.mubr.bf16.mxu0 %v847_v37  ;;  %v1090_v52 = vld [vmem:[%s1384_s1 + $0x1a8] sm:$0xff]   ;;  %v1094_v56 = vld [vmem:[%s1384_s1 + $0x1a0] sm:$0xff]   ;;  %v1095_v57 = vld [vmem:[%s1384_s1 + $0x158] sm:$0xff]  }
  0x12   :  { %957 = vmatprep.subr.bf16.mxu1 %v1065_v18  ;;  %712 = vmatprep.mubr.bf16.mxu1 %v849_v42  ;;  %v1096_v58 = vld [vmem:[%s1384_s1 + $0x118] sm:$0xff]   ;;  %v1099_v61 = vld [vmem:[%s1384_s1 + $0x150] sm:$0xff]   ;;  %v1103_v1 = vld [vmem:[%s1384_s1 + $0x148] sm:$0xff]  }
  0x13   :  { %936 = vmatpush3.bf16.msra.mxu0 %v1064_v17  ;;  %v1097_v59 = vld [vmem:[%s1384_s1 + $0x1d8] sm:$0xff]   ;;  %v1100_v62 = vld [vmem:[%s1384_s1 + $0x110] sm:$0xff]   ;;  %v1104_v2 = vld [vmem:[%s1384_s1 + $0x108] sm:$0xff]  }
  0x14   :  { %937 = vmatprep.subr.bf16.mxu0 %v1067_v20  ;;  %v1098_v60 = vld [vmem:[%s1384_s1 + $0x198] sm:$0xff]   ;;  %v1101_v63 = vld [vmem:[%s1384_s1 + $0x1d0] sm:$0xff]   ;;  %v1105_v3 = vld [vmem:[%s1384_s1 + $0x1c8] sm:$0xff]  }
  0x15   :  { %958 = vmatpush3.bf16.msra.mxu1 %v1066_v19  ;;  %v1102_v0 = vld [vmem:[%s1384_s1 + $0x190] sm:$0xff]   ;;  %v1106_v4 = vld [vmem:[%s1384_s1 + $0x188] sm:$0xff]   ;;  %v1107_v5 = vld [vmem:[%s1384_s1 + $0x140] sm:$0xff]  }
  0x16   :  { %959 = vmatprep.subr.bf16.mxu1 %v1069_v22  ;;  %v1108_v6 = vld [vmem:[%s1384_s1 + $0x100] sm:$0xff]   ;;  %v17_v8 = vld [vmem:[%s1385_s0 + $0x10] sm:$0xff]  ;;  %v18_v11 = vld [vmem:[%s1385_s0 + $0x18] sm:$0xff] }
  0x17   :  { %938 = vmatpush3.bf16.msra.mxu0 %v1068_v21  ;;  %v1109_v7 = vld [vmem:[%s1384_s1 + $0x1c0] sm:$0xff]   ;;  %v22_v9 = vmax.bf16 %v1119_v32, %v17_v8  ;;  %v23_v14 = vmax.bf16 %v1119_v32, %v18_v11  ;;  %v1111_v15 = vld [vmem:[%s1384_s1 + $0x238] sm:$0xff]   ;;  %v1112_v19 = vld [vmem:[%s1384_s1 + $0x230] sm:$0xff]  }
  0x18   :  { %939 = vmatprep.subr.bf16.mxu0 %v1071_v24  ;;  %v1110_v10 = vld [vmem:[%s1384_s1 + $0x180] sm:$0xff]   ;;  %v1113_v21 = vld [vmem:[%s1384_s1 + $0x228] sm:$0xff]   ;;  %v1115_v24 = vld [vmem:[%s1384_s1 + $0x218] sm:$0xff]  }
  0x19   :  { %960 = vmatpush3.bf16.msra.mxu1 %v1070_v23  ;;  %v851_v12 = vcombine.high %v22_v9, %v22_v9  ;;  %v850_v13 = vcombine.low %v22_v9, %v22_v9  ;;  %v853_v17 = vcombine.high %v23_v14, %v23_v14  ;;  %v852_v18 = vcombine.low %v23_v14, %v23_v14  ;;  %v19_v20 = vld [vmem:[%s1385_s0 + $0x20] sm:$0xf] }
  0x1a   :  { %961 = vmatprep.subr.bf16.mxu1 %v1073_v26  ;;  %v24_v22 = vmax.bf16 %v1119_v32, %v19_v20  ;;  %v1114_v23 = vld [vmem:[%s1384_s1 + $0x220] sm:$0xff]   ;;  %v1117_v26 = vld [vmem:[%s1384_s1 + $0x208] sm:$0xff]  }
  0x1b   :  { %940 = vmatpush3.bf16.msra.mxu0 %v1072_v25  ;;  %v1116_v25 = vld [vmem:[%s1384_s1 + $0x210] sm:$0xff]  }
  0x1c   :  { %941 = vmatprep.subr.bf16.mxu0 %v1075_v28  ;;  %v854_v28 = vcombine.low %v24_v22, %v24_v22 }
  0x1d   :  { %962 = vmatpush3.bf16.msra.mxu1 %v1074_v27  ;;  %v1118_v27 = vld [vmem:[%s1384_s1 + $0x200] sm:$0xff]  }
  0x1e   :  { %963 = vmatprep.subr.bf16.mxu1 %v1077_v30 }
  0x1f   :  { %942 = vmatpush3.bf16.msra.mxu0 %v1076_v29 }
  0x20   :  { %971 = vmatprep.subr.bf16.mxu0 %v1079_v35 }
  0x21   :  { %964 = vmatpush3.bf16.msra.mxu1 %v1078_v34 }
  0x22   :  { %673 = vmatmul.mubr.bf16.vlgmr.msra.gmra.mxu0 %v846_v38  ;;  %993 = vmatprep.subr.bf16.mxu1 %v1081_v41 }
  0x23   :  { %972 = vmatpush3.bf16.msra.mxu0 %v1080_v40  ;;  %752 = vmatprep.mubr.bf16.mxu0 %v851_v12 }
  0x24   :  { %713 = vmatmul.mubr.bf16.vlgmr.msra.gmra.mxu1 %v848_v43  ;;  %973 = vmatprep.subr.bf16.mxu0 %v1083_v45 }
  0x25   :  { %994 = vmatpush3.bf16.msra.mxu1 %v1082_v44  ;;  %792 = vmatprep.mubr.bf16.mxu1 %v853_v17 }
  0x26   :  { %995 = vmatprep.subr.bf16.mxu1 %v1085_v47 }
  0x27   :  { %974 = vmatpush3.bf16.msra.mxu0 %v1084_v46  ;;  %v845_v46 = vld [vmem:[%s1386_s2] ss:$0 sm:$0xff] }
  0x28   :  { %975 = vmatprep.subr.bf16.mxu0 %v1087_v49 }
  0x29   :  { %996 = vmatpush3.bf16.msra.mxu1 %v1086_v48 }
  0x2a   :  { %997 = vmatprep.subr.bf16.mxu1 %v1089_v51 }
  0x2b   :  { %976 = vmatpush3.bf16.msra.mxu0 %v1088_v50 }
  0x2c   :  { %977 = vmatprep.subr.bf16.mxu0 %v1091_v53 }
  0x2d   :  { %998 = vmatpush3.bf16.msra.mxu1 %v1090_v52 }
  0x2e   :  { %999 = vmatprep.subr.bf16.mxu1 %v1093_v55 }
  0x2f   :  { %978 = vmatpush3.bf16.msra.mxu0 %v1092_v54 }
  0x30   :  { %979 = vmatprep.subr.bf16.mxu0 %v1095_v57 }
  0x31   :  { %1000 = vmatpush3.bf16.msra.mxu1 %v1094_v56 }
  0x32   :  { %1001 = vmatprep.subr.bf16.mxu1 %v1097_v59 }
  0x33   :  { %980 = vmatpush3.bf16.msra.mxu0 %v1096_v58 }
  0x34   :  { %981 = vmatprep.subr.bf16.mxu0 %v1099_v61 }
  0x35   :  { %1002 = vmatpush3.bf16.msra.mxu1 %v1098_v60 }
  0x36   :  { %1003 = vmatprep.subr.bf16.mxu1 %v1101_v63 }
  0x37   :  { %982 = vmatpush3.bf16.msra.mxu0 %v1100_v62 }
  0x38   :  { %983 = vmatprep.subr.bf16.mxu0 %v1103_v1 }
  0x39   :  { %1004 = vmatpush3.bf16.msra.mxu1 %v1102_v0 }
  0x3a   :  { %1005 = vmatprep.subr.bf16.mxu1 %v1105_v3 }
  0x3b   :  { %984 = vmatpush3.bf16.msra.mxu0 %v1104_v2 }
  0x3c   :  { %985 = vmatprep.subr.bf16.mxu0 %v1107_v5 }
  0x3d   :  { %1006 = vmatpush3.bf16.msra.mxu1 %v1106_v4 }
  0x3e   :  { %1007 = vmatprep.subr.bf16.mxu1 %v1109_v7 }
  0x3f   :  { %986 = vmatpush3.bf16.msra.mxu0 %v1108_v6 }
  0x40   :  { %1024 = vmatprep.subr.bf16.mxu0 %v1120_v16 }
  0x41   :  { %1008 = vmatpush3.bf16.msra.mxu1 %v1110_v10 }
  0x42   :  { %753 = vmatmul.mubr.bf16.vlgmr.msra.gmra.mxu0 %v850_v13 }
  0x43   :  { %1025 = vmatpush3.bf16.msra.mxu0 %v1111_v15  ;;  %1040 = vmatprep.mubr.msk.bf16.mxu0 %vm1121_vm0, %v1120_v16 }
  0x44   :  { %793 = vmatmul.mubr.bf16.vlgmr.msra.gmra.mxu1 %v852_v18  ;;  %1026 = vmatprep.subr.bf16.mxu0 %v1120_v16 }
  0x47   :  { %1027 = vmatpush3.bf16.msra.mxu0 %v1112_v19 }
  0x48   :  { %1028 = vmatprep.subr.bf16.mxu0 %v1120_v16 }
  0x4b   :  { %1029 = vmatpush3.bf16.msra.mxu0 %v1113_v21 }
  0x4c   :  { %1030 = vmatprep.subr.bf16.mxu0 %v1120_v16 }
  0x4f   :  { %1031 = vmatpush3.bf16.msra.mxu0 %v1114_v23 }
  0x50   :  { %1032 = vmatprep.subr.bf16.mxu0 %v1120_v16 }
  0x53   :  { %1033 = vmatpush3.bf16.msra.mxu0 %v1115_v24 }
  0x54   :  { %1034 = vmatprep.subr.bf16.mxu0 %v1120_v16 }
  0x57   :  { %1035 = vmatpush3.bf16.msra.mxu0 %v1116_v25 }
  0x58   :  { %1036 = vmatprep.subr.bf16.mxu0 %v1120_v16 }
  0x5b   :  { %1037 = vmatpush3.bf16.msra.mxu0 %v1117_v26 }
  0x5c   :  { %1038 = vmatprep.subr.bf16.mxu0 %v1120_v16 }
  0x5f   :  { %1039 = vmatpush3.bf16.msra.mxu0 %v1118_v27 }
  0x62   :  { %1041 = vmatmul.mubr.bf16.vlgmr.msra.gmra.mxu0 %v854_v28 }
  0xe2   :  { %v943_v29 = vpop.f32.mrf.mxu0 }
  0xe4   :  { %v944_v30 = vpop.f32.mrf.mxu0  ;;  %v965_v31 = vpop.f32.mrf.mxu1 }
  0xe5   :  { %v945_v45 = vadd.f32 %v944_v30, %v943_v29 }
  0xe6   :  { %v946_v32 = vpop.f32.mrf.mxu0  ;;  %v966_v33 = vpop.f32.mrf.mxu1 }
  0xe7   :  { %v675_v47 = vadd.f32 %v945_v45, %v845_v46  ;;  %v967_v48 = vadd.f32 %v966_v33, %v965_v31 }
  0xe8   :  { %v947_v34 = vpop.f32.mrf.mxu0  ;;  %v968_v35 = vpop.f32.mrf.mxu1 }
  0xe9   :  { %v715_v50 = vadd.f32 %v967_v48, %v675_v47 }
  0xea   :  { %v969_v36 = vpop.f32.mrf.mxu1 }
 0x102   :  { %v987_v37 = vpop.f32.mrf.mxu0 }
 0x104   :  { %v988_v38 = vpop.f32.mrf.mxu0  ;;  %v1009_v39 = vpop.f32.mrf.mxu1 }
 0x105   :  { %v989_v49 = vadd.f32 %v988_v38, %v987_v37 }
 0x106   :  { %v990_v40 = vpop.f32.mrf.mxu0  ;;  %v1010_v41 = vpop.f32.mrf.mxu1 }
 0x107   :  { %v755_v51 = vadd.f32 %v989_v49, %v715_v50  ;;  %v1011_v52 = vadd.f32 %v1010_v41, %v1009_v39 }
 0x108   :  { %v991_v42 = vpop.f32.mrf.mxu0  ;;  %v1012_v43 = vpop.f32.mrf.mxu1 }
 0x109   :  { %v795_v53 = vadd.f32 %v1011_v52, %v755_v51 }
 0x10a   :  { %v1013_v44 = vpop.f32.mrf.mxu1 }
 0x122   :  { %v834_v54 = vpop.f32.mrf.mxu0 }
 0x123   :  { %v835_v55 = vadd.f32 %v834_v54, %v795_v53 }
 0x124   :  { %v1042_v56 = vpop.f32.mrf.mxu0 }
 0x125   :  { %840 = vst [vmem:[%s1387_s3] sm:$0xff] %v835_v55 }
 0x126   :  { %v837_v57 = vpop.f32.mrf.mxu0 }
 0x128   :  { %v1043_v58 = vpop.f32.mrf.mxu0 }

// kernel: fpn_forward.8
= control target key start
LH: loop header
LB: loop body
LE: loop exit
PB: predicated region body
PF: predicated region fallthrough
CT: control target
= control target key end

     0   :  { %s5190_s1 = inlined_call_operand.vmem [shape: bf16[4608,128], index: 1, kind: input, shape index: {}]   ;;  %s5191_s0 = inlined_call_operand.vmem [shape: bf16[8,4608], index: 0, kind: input, shape index: {}]   ;;  %s5192_s2 = inlined_call_operand.vmem [shape: f32[1,128], index: 2, kind: input, shape index: {}]   ;;  %s5193_s3 = inlined_call_operand.vmem [shape: f32[8,128], index: 3, kind: output, shape index: {}]  }
   0x1   :  { %v3916_v0 = vld [vmem:[%s5190_s1 + $0x78] sm:$0xff]   ;;  %v3920_v4 = vld [vmem:[%s5190_s1 + $0x70] sm:$0xff]   ;;  %v3924_v8 = vld [vmem:[%s5190_s1 + $0x68] sm:$0xff]  }
   0x2   :  { %v3917_v1 = vld [vmem:[%s5190_s1 + $0xf8] sm:$0xff]   ;;  %3520 = vmatprep.subr.bf16.mxu0 %v3916_v0  ;;  %v3921_v5 = vld [vmem:[%s5190_s1 + $0xf0] sm:$0xff]   ;;  %v3925_v9 = vld [vmem:[%s5190_s1 + $0xe8] sm:$0xff]  }
   0x3   :  { %v3918_v2 = vld [vmem:[%s5190_s1 + $0x38] sm:$0xff]   ;;  %3542 = vmatprep.subr.bf16.mxu1 %v3917_v1  ;;  %v3922_v6 = vld [vmem:[%s5190_s1 + $0x30] sm:$0xff]   ;;  %v3926_v10 = vld [vmem:[%s5190_s1 + $0x28] sm:$0xff]  }
   0x4   :  { %v3919_v3 = vld [vmem:[%s5190_s1 + $0xb8] sm:$0xff]   ;;  %3521 = vmatpush3.bf16.msra.mxu0 %v3918_v2  ;;  %v3923_v7 = vld [vmem:[%s5190_s1 + $0xb0] sm:$0xff]   ;;  %v3927_v11 = vld [vmem:[%s5190_s1 + $0xa8] sm:$0xff]  }
   0x5   :  { %3543 = vmatpush3.bf16.msra.mxu1 %v3919_v3  ;;  %3522 = vmatprep.subr.bf16.mxu0 %v3920_v4  ;;  %v3928_v12 = vld [vmem:[%s5190_s1 + $0x60] sm:$0xff]   ;;  %v3932_v16 = vld [vmem:[%s5190_s1 + $0x58] sm:$0xff]   ;;  %v3936_v20 = vld [vmem:[%s5190_s1 + $0x50] sm:$0xff]  }
   0x6   :  { %3544 = vmatprep.subr.bf16.mxu1 %v3921_v5  ;;  %v3929_v13 = vld [vmem:[%s5190_s1 + $0xe0] sm:$0xff]   ;;  %v3933_v17 = vld [vmem:[%s5190_s1 + $0xd8] sm:$0xff]   ;;  %v3937_v21 = vld [vmem:[%s5190_s1 + $0xd0] sm:$0xff]  }
   0x7   :  { %v3930_v14 = vld [vmem:[%s5190_s1 + $0x20] sm:$0xff]   ;;  %v3934_v18 = vld [vmem:[%s5190_s1 + $0x18] sm:$0xff]   ;;  %v3938_v22 = vld [vmem:[%s5190_s1 + $0x10] sm:$0xff]  }
   0x8   :  { %3523 = vmatpush3.bf16.msra.mxu0 %v3922_v6  ;;  %v3931_v15 = vld [vmem:[%s5190_s1 + $0xa0] sm:$0xff]   ;;  %v3935_v19 = vld [vmem:[%s5190_s1 + $0x98] sm:$0xff]   ;;  %v3939_v23 = vld [vmem:[%s5190_s1 + $0x90] sm:$0xff]  }
   0x9   :  { %3545 = vmatpush3.bf16.msra.mxu1 %v3923_v7  ;;  %3524 = vmatprep.subr.bf16.mxu0 %v3924_v8  ;;  %v3940_v24 = vld [vmem:[%s5190_s1 + $0x48] sm:$0xff]   ;;  %v3944_v28 = vld [vmem:[%s5190_s1 + $0x40] sm:$0xff]   ;;  %v3952_v38 = vld [vmem:[%s5190_s1 + $0x178] sm:$0xff]  }
   0xa   :  { %3546 = vmatprep.subr.bf16.mxu1 %v3925_v9  ;;  %v3941_v25 = vld [vmem:[%s5190_s1 + $0xc8] sm:$0xff]   ;;  %v3945_v29 = vld [vmem:[%s5190_s1 + $0xc0] sm:$0xff]   ;;  %v3953_v39 = vld [vmem:[%s5190_s1 + $0x1f8] sm:$0xff]  }
   0xb   :  { %v3942_v26 = vld [vmem:[%s5190_s1 + $0x8] sm:$0xff]   ;;  %v3946_v30 = vld [vmem:[%s5190_s1] sm:$0xff]   ;;  %v3954_v40 = vld [vmem:[%s5190_s1 + $0x138] sm:$0xff]  }
   0xc   :  { %3525 = vmatpush3.bf16.msra.mxu0 %v3926_v10  ;;  %v3943_v27 = vld [vmem:[%s5190_s1 + $0x88] sm:$0xff]   ;;  %v3947_v31 = vld [vmem:[%s5190_s1 + $0x80] sm:$0xff]   ;;  %v3955_v41 = vld [vmem:[%s5190_s1 + $0x1b8] sm:$0xff]  }
   0xd   :  { %3547 = vmatpush3.bf16.msra.mxu1 %v3927_v11  ;;  %3526 = vmatprep.subr.bf16.mxu0 %v3928_v12  ;;  %v15_v32 = vld [vmem:[%s5191_s0] sm:$0xff]  ;;  %v16_v33 = vld [vmem:[%s5191_s0 + $0x8] sm:$0xff]  ;;  %v3956_v42 = vld [vmem:[%s5190_s1 + $0x170] sm:$0xff]  }
   0xe   :  { %3548 = vmatprep.subr.bf16.mxu1 %v3929_v13  ;;  %v3196_v34 = vcombine.low %v15_v32, %v15_v32  ;;  %v3197_v35 = vcombine.high %v15_v32, %v15_v32  ;;  %v3198_v36 = vcombine.low %v16_v33, %v16_v33  ;;  %v3199_v37 = vcombine.high %v16_v33, %v16_v33  ;;  %v3957_v43 = vld [vmem:[%s5190_s1 + $0x1f0] sm:$0xff]   ;;  %v3960_v46 = vld [vmem:[%s5190_s1 + $0x168] sm:$0xff]   ;;  %v3964_v50 = vld [vmem:[%s5190_s1 + $0x160] sm:$0xff]  }
   0xf   :  { %v3958_v44 = vld [vmem:[%s5190_s1 + $0x130] sm:$0xff]   ;;  %v3961_v47 = vld [vmem:[%s5190_s1 + $0x1e8] sm:$0xff]   ;;  %v3965_v51 = vld [vmem:[%s5190_s1 + $0x1e0] sm:$0xff]  }
  0x10   :  { %3527 = vmatpush3.bf16.msra.mxu0 %v3930_v14  ;;  %2502 = vmatprep.mubr.bf16.mxu0 %v3197_v35  ;;  %v3959_v45 = vld [vmem:[%s5190_s1 + $0x1b0] sm:$0xff]   ;;  %v3962_v48 = vld [vmem:[%s5190_s1 + $0x128] sm:$0xff]   ;;  %v3966_v52 = vld [vmem:[%s5190_s1 + $0x120] sm:$0xff]  }
  0x11   :  { %3549 = vmatpush3.bf16.msra.mxu1 %v3931_v15  ;;  %3528 = vmatprep.subr.bf16.mxu0 %v3932_v16  ;;  %v3963_v49 = vld [vmem:[%s5190_s1 + $0x1a8] sm:$0xff]   ;;  %v3967_v53 = vld [vmem:[%s5190_s1 + $0x1a0] sm:$0xff]   ;;  %v3968_v54 = vld [vmem:[%s5190_s1 + $0x158] sm:$0xff]  }
  0x12   :  { %3550 = vmatprep.subr.bf16.mxu1 %v3933_v17  ;;  %2542 = vmatprep.mubr.bf16.mxu1 %v3199_v37  ;;  %v3969_v55 = vld [vmem:[%s5190_s1 + $0x1d8] sm:$0xff]   ;;  %v3972_v58 = vld [vmem:[%s5190_s1 + $0x150] sm:$0xff]   ;;  %v3976_v62 = vld [vmem:[%s5190_s1 + $0x148] sm:$0xff]  }
  0x13   :  { %v3970_v56 = vld [vmem:[%s5190_s1 + $0x118] sm:$0xff]   ;;  %v3973_v59 = vld [vmem:[%s5190_s1 + $0x1d0] sm:$0xff]   ;;  %v3977_v63 = vld [vmem:[%s5190_s1 + $0x1c8] sm:$0xff]  }
  0x14   :  { %3529 = vmatpush3.bf16.msra.mxu0 %v3934_v18  ;;  %v3971_v57 = vld [vmem:[%s5190_s1 + $0x198] sm:$0xff]   ;;  %v3974_v60 = vld [vmem:[%s5190_s1 + $0x110] sm:$0xff]   ;;  %v3978_v0 = vld [vmem:[%s5190_s1 + $0x108] sm:$0xff]  }
  0x15   :  { %3551 = vmatpush3.bf16.msra.mxu1 %v3935_v19  ;;  %3530 = vmatprep.subr.bf16.mxu0 %v3936_v20  ;;  %v3975_v61 = vld [vmem:[%s5190_s1 + $0x190] sm:$0xff]   ;;  %v3979_v1 = vld [vmem:[%s5190_s1 + $0x188] sm:$0xff]   ;;  %v3980_v2 = vld [vmem:[%s5190_s1 + $0x140] sm:$0xff]  }
  0x16   :  { %3552 = vmatprep.subr.bf16.mxu1 %v3937_v21  ;;  %v3981_v3 = vld [vmem:[%s5190_s1 + $0x1c0] sm:$0xff]   ;;  %v17_v6 = vld [vmem:[%s5191_s0 + $0x10] sm:$0xff]  ;;  %v18_v9 = vld [vmem:[%s5191_s0 + $0x18] sm:$0xff] }
  0x17   :  { %v3982_v4 = vld [vmem:[%s5190_s1 + $0x100] sm:$0xff]   ;;  %v3200_v7 = vcombine.low %v17_v6, %v17_v6  ;;  %v3201_v8 = vcombine.high %v17_v6, %v17_v6  ;;  %v3202_v10 = vcombine.low %v18_v9, %v18_v9  ;;  %v3203_v11 = vcombine.high %v18_v9, %v18_v9  ;;  %v3988_v12 = vld [vmem:[%s5190_s1 + $0x278] sm:$0xff]   ;;  %v3992_v16 = vld [vmem:[%s5190_s1 + $0x270] sm:$0xff]  }
  0x18   :  { %3531 = vmatpush3.bf16.msra.mxu0 %v3938_v22  ;;  %v3983_v5 = vld [vmem:[%s5190_s1 + $0x180] sm:$0xff]   ;;  %v3989_v13 = vld [vmem:[%s5190_s1 + $0x2f8] sm:$0xff]   ;;  %v3993_v17 = vld [vmem:[%s5190_s1 + $0x2f0] sm:$0xff]  }
  0x19   :  { %3553 = vmatpush3.bf16.msra.mxu1 %v3939_v23  ;;  %3532 = vmatprep.subr.bf16.mxu0 %v3940_v24  ;;  %v3990_v14 = vld [vmem:[%s5190_s1 + $0x238] sm:$0xff]   ;;  %v3994_v18 = vld [vmem:[%s5190_s1 + $0x230] sm:$0xff]   ;;  %v3996_v20 = vld [vmem:[%s5190_s1 + $0x268] sm:$0xff]  }
  0x1a   :  { %3554 = vmatprep.subr.bf16.mxu1 %v3941_v25  ;;  %v3991_v15 = vld [vmem:[%s5190_s1 + $0x2b8] sm:$0xff]   ;;  %v3995_v19 = vld [vmem:[%s5190_s1 + $0x2b0] sm:$0xff]   ;;  %v3997_v21 = vld [vmem:[%s5190_s1 + $0x2e8] sm:$0xff]  }
  0x1b   :  { %v3998_v22 = vld [vmem:[%s5190_s1 + $0x228] sm:$0xff]   ;;  %v4000_v24 = vld [vmem:[%s5190_s1 + $0x260] sm:$0xff]   ;;  %v4008_v32 = vld [vmem:[%s5190_s1 + $0x250] sm:$0xff]  }
  0x1c   :  { %3533 = vmatpush3.bf16.msra.mxu0 %v3942_v26  ;;  %v3999_v23 = vld [vmem:[%s5190_s1 + $0x2a8] sm:$0xff]   ;;  %v4001_v25 = vld [vmem:[%s5190_s1 + $0x2e0] sm:$0xff]   ;;  %v4009_v33 = vld [vmem:[%s5190_s1 + $0x2d0] sm:$0xff]  }
  0x1d   :  { %3555 = vmatpush3.bf16.msra.mxu1 %v3943_v27  ;;  %3534 = vmatprep.subr.bf16.mxu0 %v3944_v28  ;;  %v4002_v26 = vld [vmem:[%s5190_s1 + $0x220] sm:$0xff]   ;;  %v4004_v28 = vld [vmem:[%s5190_s1 + $0x258] sm:$0xff]   ;;  %v4011_v35 = vld [vmem:[%s5190_s1 + $0x290] sm:$0xff]  }
  0x1e   :  { %3556 = vmatprep.subr.bf16.mxu1 %v3945_v29  ;;  %v4003_v27 = vld [vmem:[%s5190_s1 + $0x2a0] sm:$0xff]   ;;  %v4005_v29 = vld [vmem:[%s5190_s1 + $0x2d8] sm:$0xff]   ;;  %v4013_v37 = vld [vmem:[%s5190_s1 + $0x2c8] sm:$0xff]  }
  0x1f   :  { %v4044_v6 = vld [vmem:[%s5190_s1 + $0x350] sm:$0xff]  }
  0x20   :  { %3535 = vmatpush3.bf16.msra.mxu0 %v3946_v30  ;;  %v4006_v30 = vld [vmem:[%s5190_s1 + $0x218] sm:$0xff]   ;;  %v4047_v9 = vld [vmem:[%s5190_s1 + $0x390] sm:$0xff]  }
  0x21   :  { %3557 = vmatpush3.bf16.msra.mxu1 %v3947_v31  ;;  %3564 = vmatprep.subr.bf16.mxu0 %v3952_v38  ;;  %v4007_v31 = vld [vmem:[%s5190_s1 + $0x298] sm:$0xff]   ;;  %v4014_v38 = vld [vmem:[%s5190_s1 + $0x208] sm:$0xff]  }
  0x22   :  { %3586 = vmatprep.subr.bf16.mxu1 %v3953_v39  ;;  %v4015_v39 = vld [vmem:[%s5190_s1 + $0x288] sm:$0xff]  }
  0x23   :  { %2503 = vmatmul.mubr.bf16.vlgmr.msra.gmra.mxu0 %v3196_v34  ;;  %v4010_v34 = vld [vmem:[%s5190_s1 + $0x210] sm:$0xff]  }
  0x24   :  { %2543 = vmatmul.mubr.bf16.vlgmr.msra.gmra.mxu1 %v3198_v36  ;;  %3565 = vmatpush3.bf16.msra.mxu0 %v3954_v40  ;;  %v4012_v36 = vld [vmem:[%s5190_s1 + $0x248] sm:$0xff]   ;;  %v4016_v40 = vld [vmem:[%s5190_s1 + $0x240] sm:$0xff]  }
  0x25   :  { %3587 = vmatpush3.bf16.msra.mxu1 %v3955_v41  ;;  %3566 = vmatprep.subr.bf16.mxu0 %v3956_v42  ;;  %v4017_v41 = vld [vmem:[%s5190_s1 + $0x2c0] sm:$0xff]  }
  0x26   :  { %3588 = vmatprep.subr.bf16.mxu1 %v3957_v43  ;;  %2582 = vmatprep.mubr.bf16.mxu0 %v3201_v8  ;;  %v4018_v42 = vld [vmem:[%s5190_s1 + $0x200] sm:$0xff]   ;;  %v4046_v8 = vld [vmem:[%s5190_s1 + $0x310] sm:$0xff]  }
  0x27   :  { %2622 = vmatprep.mubr.bf16.mxu1 %v3203_v11  ;;  %v4019_v43 = vld [vmem:[%s5190_s1 + $0x280] sm:$0xff]   ;;  %v4049_v11 = vld [vmem:[%s5190_s1 + $0x3c8] sm:$0xff]  }
  0x28   :  { %3567 = vmatpush3.bf16.msra.mxu0 %v3958_v44  ;;  %v19_v44 = vld [vmem:[%s5191_s0 + $0x20] sm:$0xff] }
  0x29   :  { %3589 = vmatpush3.bf16.msra.mxu1 %v3959_v45  ;;  %3568 = vmatprep.subr.bf16.mxu0 %v3960_v46  ;;  %v20_v45 = vld [vmem:[%s5191_s0 + $0x28] sm:$0xff]  ;;  %v3204_v46 = vcombine.low %v19_v44, %v19_v44 }
  0x2a   :  { %3590 = vmatprep.subr.bf16.mxu1 %v3961_v47  ;;  %v3205_v47 = vcombine.high %v19_v44, %v19_v44  ;;  %v4080_v44 = vld [vmem:[%s5190_s1 + $0x450] sm:$0xff]  }
  0x2c   :  { %3569 = vmatpush3.bf16.msra.mxu0 %v3962_v48  ;;  %v3206_v48 = vcombine.low %v20_v45, %v20_v45 }
  0x2d   :  { %3591 = vmatpush3.bf16.msra.mxu1 %v3963_v49  ;;  %3570 = vmatprep.subr.bf16.mxu0 %v3964_v50  ;;  %v3207_v49 = vcombine.high %v20_v45, %v20_v45  ;;  %v4024_v50 = vld [vmem:[%s5190_s1 + $0x378] sm:$0xff]   ;;  %v4081_v45 = vld [vmem:[%s5190_s1 + $0x4d0] sm:$0xff]  }
  0x2e   :  { %3592 = vmatprep.subr.bf16.mxu1 %v3965_v51  ;;  %v4025_v51 = vld [vmem:[%s5190_s1 + $0x3f8] sm:$0xff]  }
  0x30   :  { %3571 = vmatpush3.bf16.msra.mxu0 %v3966_v52  ;;  %v4026_v52 = vld [vmem:[%s5190_s1 + $0x338] sm:$0xff]  }
  0x31   :  { %3593 = vmatpush3.bf16.msra.mxu1 %v3967_v53  ;;  %3572 = vmatprep.subr.bf16.mxu0 %v3968_v54  ;;  %v4027_v53 = vld [vmem:[%s5190_s1 + $0x3b8] sm:$0xff]   ;;  %v4028_v54 = vld [vmem:[%s5190_s1 + $0x370] sm:$0xff]  }
  0x32   :  { %3594 = vmatprep.subr.bf16.mxu1 %v3969_v55  ;;  %v4029_v55 = vld [vmem:[%s5190_s1 + $0x3f0] sm:$0xff]  }
  0x34   :  { %3573 = vmatpush3.bf16.msra.mxu0 %v3970_v56  ;;  %v4030_v56 = vld [vmem:[%s5190_s1 + $0x330] sm:$0xff]  }
  0x35   :  { %3595 = vmatpush3.bf16.msra.mxu1 %v3971_v57  ;;  %3574 = vmatprep.subr.bf16.mxu0 %v3972_v58  ;;  %v4031_v57 = vld [vmem:[%s5190_s1 + $0x3b0] sm:$0xff]   ;;  %v4032_v58 = vld [vmem:[%s5190_s1 + $0x368] sm:$0xff]  }
  0x36   :  { %3596 = vmatprep.subr.bf16.mxu1 %v3973_v59  ;;  %v4033_v59 = vld [vmem:[%s5190_s1 + $0x3e8] sm:$0xff]  }
  0x38   :  { %3575 = vmatpush3.bf16.msra.mxu0 %v3974_v60  ;;  %v4034_v60 = vld [vmem:[%s5190_s1 + $0x328] sm:$0xff]  }
  0x39   :  { %3597 = vmatpush3.bf16.msra.mxu1 %v3975_v61  ;;  %3576 = vmatprep.subr.bf16.mxu0 %v3976_v62  ;;  %v4035_v61 = vld [vmem:[%s5190_s1 + $0x3a8] sm:$0xff]   ;;  %v4036_v62 = vld [vmem:[%s5190_s1 + $0x360] sm:$0xff]  }
  0x3a   :  { %3598 = vmatprep.subr.bf16.mxu1 %v3977_v63  ;;  %v4037_v63 = vld [vmem:[%s5190_s1 + $0x3e0] sm:$0xff]  }
  0x3c   :  { %3577 = vmatpush3.bf16.msra.mxu0 %v3978_v0  ;;  %v4038_v0 = vld [vmem:[%s5190_s1 + $0x320] sm:$0xff]  }
  0x3d   :  { %3599 = vmatpush3.bf16.msra.mxu1 %v3979_v1  ;;  %3578 = vmatprep.subr.bf16.mxu0 %v3980_v2  ;;  %v4039_v1 = vld [vmem:[%s5190_s1 + $0x3a0] sm:$0xff]   ;;  %v4040_v2 = vld [vmem:[%s5190_s1 + $0x358] sm:$0xff]  }
  0x3e   :  { %3600 = vmatprep.subr.bf16.mxu1 %v3981_v3  ;;  %v4041_v3 = vld [vmem:[%s5190_s1 + $0x3d8] sm:$0xff]  }
  0x40   :  { %3579 = vmatpush3.bf16.msra.mxu0 %v3982_v4  ;;  %v4042_v4 = vld [vmem:[%s5190_s1 + $0x318] sm:$0xff]  }
  0x41   :  { %3601 = vmatpush3.bf16.msra.mxu1 %v3983_v5  ;;  %3608 = vmatprep.subr.bf16.mxu0 %v3988_v12  ;;  %v4043_v5 = vld [vmem:[%s5190_s1 + $0x398] sm:$0xff]   ;;  %v4050_v12 = vld [vmem:[%s5190_s1 + $0x308] sm:$0xff]  }
  0x42   :  { %3630 = vmatprep.subr.bf16.mxu1 %v3989_v13  ;;  %v4051_v13 = vld [vmem:[%s5190_s1 + $0x388] sm:$0xff]  }
  0x43   :  { %2583 = vmatmul.mubr.bf16.vlgmr.msra.gmra.mxu0 %v3200_v7  ;;  %v4045_v7 = vld [vmem:[%s5190_s1 + $0x3d0] sm:$0xff]  }
  0x44   :  { %2623 = vmatmul.mubr.bf16.vlgmr.msra.gmra.mxu1 %v3202_v10  ;;  %3609 = vmatpush3.bf16.msra.mxu0 %v3990_v14  ;;  %v4048_v10 = vld [vmem:[%s5190_s1 + $0x348] sm:$0xff]   ;;  %v4052_v14 = vld [vmem:[%s5190_s1 + $0x340] sm:$0xff]  }
  0x45   :  { %3631 = vmatpush3.bf16.msra.mxu1 %v3991_v15  ;;  %3610 = vmatprep.subr.bf16.mxu0 %v3992_v16  ;;  %v4053_v15 = vld [vmem:[%s5190_s1 + $0x3c0] sm:$0xff]  }
  0x46   :  { %3632 = vmatprep.subr.bf16.mxu1 %v3993_v17  ;;  %2662 = vmatprep.mubr.bf16.mxu0 %v3205_v47  ;;  %v4054_v16 = vld [vmem:[%s5190_s1 + $0x300] sm:$0xff]   ;;  %v4083_v47 = vld [vmem:[%s5190_s1 + $0x490] sm:$0xff]  }
  0x47   :  { %2702 = vmatprep.mubr.bf16.mxu1 %v3207_v49  ;;  %v4055_v17 = vld [vmem:[%s5190_s1 + $0x380] sm:$0xff]   ;;  %v4085_v49 = vld [vmem:[%s5190_s1 + $0x4c8] sm:$0xff]  }
  0x48   :  { %3611 = vmatpush3.bf16.msra.mxu0 %v3994_v18  ;;  %v21_v18 = vld [vmem:[%s5191_s0 + $0x30] sm:$0xff] }
  0x49   :  { %3633 = vmatpush3.bf16.msra.mxu1 %v3995_v19  ;;  %3612 = vmatprep.subr.bf16.mxu0 %v3996_v20  ;;  %v22_v19 = vld [vmem:[%s5191_s0 + $0x38] sm:$0xff]  ;;  %v3208_v20 = vcombine.low %v21_v18, %v21_v18 }
  0x4a   :  { %3634 = vmatprep.subr.bf16.mxu1 %v3997_v21  ;;  %v3209_v21 = vcombine.high %v21_v18, %v21_v18  ;;  %v4116_v18 = vld [vmem:[%s5190_s1 + $0x550] sm:$0xff]  }
  0x4c   :  { %3613 = vmatpush3.bf16.msra.mxu0 %v3998_v22  ;;  %v3210_v22 = vcombine.low %v22_v19, %v22_v19 }
  0x4d   :  { %3635 = vmatpush3.bf16.msra.mxu1 %v3999_v23  ;;  %3614 = vmatprep.subr.bf16.mxu0 %v4000_v24  ;;  %v4060_v23 = vld [vmem:[%s5190_s1 + $0x478] sm:$0xff]   ;;  %v3211_v24 = vcombine.high %v22_v19, %v22_v19  ;;  %v4117_v19 = vld [vmem:[%s5190_s1 + $0x5d0] sm:$0xff]  }
  0x4e   :  { %3636 = vmatprep.subr.bf16.mxu1 %v4001_v25  ;;  %v4061_v25 = vld [vmem:[%s5190_s1 + $0x4f8] sm:$0xff]  }
  0x50   :  { %3615 = vmatpush3.bf16.msra.mxu0 %v4002_v26  ;;  %v4062_v26 = vld [vmem:[%s5190_s1 + $0x438] sm:$0xff]  }
  0x51   :  { %3637 = vmatpush3.bf16.msra.mxu1 %v4003_v27  ;;  %3616 = vmatprep.subr.bf16.mxu0 %v4004_v28  ;;  %v4063_v27 = vld [vmem:[%s5190_s1 + $0x4b8] sm:$0xff]   ;;  %v4064_v28 = vld [vmem:[%s5190_s1 + $0x470] sm:$0xff]  }
  0x52   :  { %3638 = vmatprep.subr.bf16.mxu1 %v4005_v29  ;;  %v4065_v29 = vld [vmem:[%s5190_s1 + $0x4f0] sm:$0xff]  }
  0x54   :  { %3617 = vmatpush3.bf16.msra.mxu0 %v4006_v30  ;;  %v4066_v30 = vld [vmem:[%s5190_s1 + $0x430] sm:$0xff]  }
  0x55   :  { %3639 = vmatpush3.bf16.msra.mxu1 %v4007_v31  ;;  %3618 = vmatprep.subr.bf16.mxu0 %v4008_v32  ;;  %v4067_v31 = vld [vmem:[%s5190_s1 + $0x4b0] sm:$0xff]   ;;  %v4068_v32 = vld [vmem:[%s5190_s1 + $0x468] sm:$0xff]  }
  0x56   :  { %3640 = vmatprep.subr.bf16.mxu1 %v4009_v33  ;;  %v4069_v33 = vld [vmem:[%s5190_s1 + $0x4e8] sm:$0xff]  }
  0x58   :  { %3619 = vmatpush3.bf16.msra.mxu0 %v4010_v34  ;;  %v4070_v34 = vld [vmem:[%s5190_s1 + $0x428] sm:$0xff]  }
  0x59   :  { %3641 = vmatpush3.bf16.msra.mxu1 %v4011_v35  ;;  %3620 = vmatprep.subr.bf16.mxu0 %v4012_v36  ;;  %v4071_v35 = vld [vmem:[%s5190_s1 + $0x4a8] sm:$0xff]   ;;  %v4072_v36 = vld [vmem:[%s5190_s1 + $0x460] sm:$0xff]  }
  0x5a   :  { %3642 = vmatprep.subr.bf16.mxu1 %v4013_v37  ;;  %v4073_v37 = vld [vmem:[%s5190_s1 + $0x4e0] sm:$0xff]  }
  0x5c   :  { %3621 = vmatpush3.bf16.msra.mxu0 %v4014_v38  ;;  %v4074_v38 = vld [vmem:[%s5190_s1 + $0x420] sm:$0xff]  }
  0x5d   :  { %3643 = vmatpush3.bf16.msra.mxu1 %v4015_v39  ;;  %3622 = vmatprep.subr.bf16.mxu0 %v4016_v40  ;;  %v4075_v39 = vld [vmem:[%s5190_s1 + $0x4a0] sm:$0xff]   ;;  %v4076_v40 = vld [vmem:[%s5190_s1 + $0x458] sm:$0xff]  }
  0x5e   :  { %3644 = vmatprep.subr.bf16.mxu1 %v4017_v41  ;;  %v4077_v41 = vld [vmem:[%s5190_s1 + $0x4d8] sm:$0xff]  }
  0x60   :  { %3623 = vmatpush3.bf16.msra.mxu0 %v4018_v42  ;;  %v4078_v42 = vld [vmem:[%s5190_s1 + $0x418] sm:$0xff]  }
  0x61   :  { %3645 = vmatpush3.bf16.msra.mxu1 %v4019_v43  ;;  %3652 = vmatprep.subr.bf16.mxu0 %v4024_v50  ;;  %v4079_v43 = vld [vmem:[%s5190_s1 + $0x498] sm:$0xff]   ;;  %v4086_v50 = vld [vmem:[%s5190_s1 + $0x408] sm:$0xff]  }
  0x62   :  { %3674 = vmatprep.subr.bf16.mxu1 %v4025_v51  ;;  %v4087_v51 = vld [vmem:[%s5190_s1 + $0x488] sm:$0xff]  }
  0x63   :  { %2663 = vmatmul.mubr.bf16.vlgmr.msra.gmra.mxu0 %v3204_v46  ;;  %v4082_v46 = vld [vmem:[%s5190_s1 + $0x410] sm:$0xff]  }
  0x64   :  { %2703 = vmatmul.mubr.bf16.vlgmr.msra.gmra.mxu1 %v3206_v48  ;;  %3653 = vmatpush3.bf16.msra.mxu0 %v4026_v52  ;;  %v4084_v48 = vld [vmem:[%s5190_s1 + $0x448] sm:$0xff]   ;;  %v4088_v52 = vld [vmem:[%s5190_s1 + $0x440] sm:$0xff]  }
  0x65   :  { %3675 = vmatpush3.bf16.msra.mxu1 %v4027_v53  ;;  %3654 = vmatprep.subr.bf16.mxu0 %v4028_v54  ;;  %v4089_v53 = vld [vmem:[%s5190_s1 + $0x4c0] sm:$0xff]  }
  0x66   :  { %3676 = vmatprep.subr.bf16.mxu1 %v4029_v55  ;;  %2742 = vmatprep.mubr.bf16.mxu0 %v3209_v21  ;;  %v4090_v54 = vld [vmem:[%s5190_s1 + $0x400] sm:$0xff]   ;;  %v4119_v21 = vld [vmem:[%s5190_s1 + $0x590] sm:$0xff]  }
  0x67   :  { %2782 = vmatprep.mubr.bf16.mxu1 %v3211_v24  ;;  %v4091_v55 = vld [vmem:[%s5190_s1 + $0x480] sm:$0xff]   ;;  %v4122_v24 = vld [vmem:[%s5190_s1 + $0x508] sm:$0xff]  }
  0x68   :  { %3655 = vmatpush3.bf16.msra.mxu0 %v4030_v56  ;;  %v23_v56 = vld [vmem:[%s5191_s0 + $0x40] sm:$0xff] }
  0x69   :  { %3677 = vmatpush3.bf16.msra.mxu1 %v4031_v57  ;;  %3656 = vmatprep.subr.bf16.mxu0 %v4032_v58  ;;  %v3212_v57 = vcombine.low %v23_v56, %v23_v56  ;;  %v3213_v58 = vcombine.high %v23_v56, %v23_v56  ;;  %v4152_v56 = vld [vmem:[%s5190_s1 + $0x650] sm:$0xff]  }
  0x6a   :  { %3678 = vmatprep.subr.bf16.mxu1 %v4033_v59  ;;  %v24_v59 = vld [vmem:[%s5191_s0 + $0x48] sm:$0xff] }
  0x6c   :  { %3657 = vmatpush3.bf16.msra.mxu0 %v4034_v60  ;;  %v3214_v60 = vcombine.low %v24_v59, %v24_v59 }
  0x6d   :  { %3679 = vmatpush3.bf16.msra.mxu1 %v4035_v61  ;;  %3658 = vmatprep.subr.bf16.mxu0 %v4036_v62  ;;  %v3215_v61 = vcombine.high %v24_v59, %v24_v59  ;;  %v4096_v62 = vld [vmem:[%s5190_s1 + $0x578] sm:$0xff]   ;;  %v4155_v59 = vld [vmem:[%s5190_s1 + $0x690] sm:$0xff]  }
  0x6e   :  { %3680 = vmatprep.subr.bf16.mxu1 %v4037_v63  ;;  %v4097_v63 = vld [vmem:[%s5190_s1 + $0x5f8] sm:$0xff]  }
  0x70   :  { %3659 = vmatpush3.bf16.msra.mxu0 %v4038_v0  ;;  %v4098_v0 = vld [vmem:[%s5190_s1 + $0x538] sm:$0xff]  }
  0x71   :  { %3681 = vmatpush3.bf16.msra.mxu1 %v4039_v1  ;;  %3660 = vmatprep.subr.bf16.mxu0 %v4040_v2  ;;  %v4099_v1 = vld [vmem:[%s5190_s1 + $0x5b8] sm:$0xff]   ;;  %v4100_v2 = vld [vmem:[%s5190_s1 + $0x570] sm:$0xff]  }
  0x72   :  { %3682 = vmatprep.subr.bf16.mxu1 %v4041_v3  ;;  %v4101_v3 = vld [vmem:[%s5190_s1 + $0x5f0] sm:$0xff]  }
  0x74   :  { %3661 = vmatpush3.bf16.msra.mxu0 %v4042_v4  ;;  %v4102_v4 = vld [vmem:[%s5190_s1 + $0x530] sm:$0xff]  }
  0x75   :  { %3683 = vmatpush3.bf16.msra.mxu1 %v4043_v5  ;;  %3662 = vmatprep.subr.bf16.mxu0 %v4044_v6  ;;  %v4103_v5 = vld [vmem:[%s5190_s1 + $0x5b0] sm:$0xff]   ;;  %v4104_v6 = vld [vmem:[%s5190_s1 + $0x568] sm:$0xff]  }
  0x76   :  { %3684 = vmatprep.subr.bf16.mxu1 %v4045_v7  ;;  %v4105_v7 = vld [vmem:[%s5190_s1 + $0x5e8] sm:$0xff]  }
  0x78   :  { %3663 = vmatpush3.bf16.msra.mxu0 %v4046_v8  ;;  %v4106_v8 = vld [vmem:[%s5190_s1 + $0x528] sm:$0xff]  }
  0x79   :  { %3685 = vmatpush3.bf16.msra.mxu1 %v4047_v9  ;;  %3664 = vmatprep.subr.bf16.mxu0 %v4048_v10  ;;  %v4107_v9 = vld [vmem:[%s5190_s1 + $0x5a8] sm:$0xff]   ;;  %v4108_v10 = vld [vmem:[%s5190_s1 + $0x560] sm:$0xff]  }
  0x7a   :  { %3686 = vmatprep.subr.bf16.mxu1 %v4049_v11  ;;  %v4109_v11 = vld [vmem:[%s5190_s1 + $0x5e0] sm:$0xff]  }
  0x7c   :  { %3665 = vmatpush3.bf16.msra.mxu0 %v4050_v12  ;;  %v4110_v12 = vld [vmem:[%s5190_s1 + $0x520] sm:$0xff]  }
  0x7d   :  { %3687 = vmatpush3.bf16.msra.mxu1 %v4051_v13  ;;  %3666 = vmatprep.subr.bf16.mxu0 %v4052_v14  ;;  %v4111_v13 = vld [vmem:[%s5190_s1 + $0x5a0] sm:$0xff]   ;;  %v4112_v14 = vld [vmem:[%s5190_s1 + $0x558] sm:$0xff]  }
  0x7e   :  { %3688 = vmatprep.subr.bf16.mxu1 %v4053_v15  ;;  %v4113_v15 = vld [vmem:[%s5190_s1 + $0x5d8] sm:$0xff]  }
  0x80   :  { %3667 = vmatpush3.bf16.msra.mxu0 %v4054_v16  ;;  %v4114_v16 = vld [vmem:[%s5190_s1 + $0x518] sm:$0xff]  }
  0x81   :  { %3689 = vmatpush3.bf16.msra.mxu1 %v4055_v17  ;;  %3696 = vmatprep.subr.bf16.mxu0 %v4060_v23  ;;  %v4115_v17 = vld [vmem:[%s5190_s1 + $0x598] sm:$0xff]   ;;  %v4121_v23 = vld [vmem:[%s5190_s1 + $0x5c8] sm:$0xff]  }
  0x82   :  { %3718 = vmatprep.subr.bf16.mxu1 %v4061_v25  ;;  %v4123_v25 = vld [vmem:[%s5190_s1 + $0x588] sm:$0xff]  }
  0x83   :  { %2743 = vmatmul.mubr.bf16.vlgmr.msra.gmra.mxu0 %v3208_v20  ;;  %v4118_v20 = vld [vmem:[%s5190_s1 + $0x510] sm:$0xff]  }
  0x84   :  { %2783 = vmatmul.mubr.bf16.vlgmr.msra.gmra.mxu1 %v3210_v22  ;;  %3697 = vmatpush3.bf16.msra.mxu0 %v4062_v26  ;;  %v4120_v22 = vld [vmem:[%s5190_s1 + $0x548] sm:$0xff]   ;;  %v4124_v26 = vld [vmem:[%s5190_s1 + $0x540] sm:$0xff]  }
  0x85   :  { %3719 = vmatpush3.bf16.msra.mxu1 %v4063_v27  ;;  %3698 = vmatprep.subr.bf16.mxu0 %v4064_v28  ;;  %v4125_v27 = vld [vmem:[%s5190_s1 + $0x5c0] sm:$0xff]  }
  0x86   :  { %3720 = vmatprep.subr.bf16.mxu1 %v4065_v29  ;;  %2822 = vmatprep.mubr.bf16.mxu0 %v3213_v58  ;;  %v4126_v28 = vld [vmem:[%s5190_s1 + $0x500] sm:$0xff]   ;;  %v4154_v58 = vld [vmem:[%s5190_s1 + $0x610] sm:$0xff]  }
  0x87   :  { %2862 = vmatprep.mubr.bf16.mxu1 %v3215_v61  ;;  %v4127_v29 = vld [vmem:[%s5190_s1 + $0x580] sm:$0xff]   ;;  %v4157_v61 = vld [vmem:[%s5190_s1 + $0x6c8] sm:$0xff]  }
  0x88   :  { %3699 = vmatpush3.bf16.msra.mxu0 %v4066_v30  ;;  %v25_v30 = vld [vmem:[%s5191_s0 + $0x50] sm:$0xff] }
  0x89   :  { %3721 = vmatpush3.bf16.msra.mxu1 %v4067_v31  ;;  %3700 = vmatprep.subr.bf16.mxu0 %v4068_v32  ;;  %v26_v31 = vld [vmem:[%s5191_s0 + $0x58] sm:$0xff]  ;;  %v3216_v32 = vcombine.low %v25_v30, %v25_v30 }
  0x8a   :  { %3722 = vmatprep.subr.bf16.mxu1 %v4069_v33  ;;  %v3217_v33 = vcombine.high %v25_v30, %v25_v30  ;;  %v4175_v30 = vld [vmem:[%s5190_s1 + $0x7b0] sm:$0xff]  }
  0x8c   :  { %3701 = vmatpush3.bf16.msra.mxu0 %v4070_v34  ;;  %v3218_v34 = vcombine.low %v26_v31, %v26_v31 }
  0x8d   :  { %3723 = vmatpush3.bf16.msra.mxu1 %v4071_v35  ;;  %3702 = vmatprep.subr.bf16.mxu0 %v4072_v36  ;;  %v3219_v35 = vcombine.high %v26_v31, %v26_v31  ;;  %v4132_v36 = vld [vmem:[%s5190_s1 + $0x678] sm:$0xff]   ;;  %v4176_v31 = vld [vmem:[%s5190_s1 + $0x768] sm:$0xff]  }
  0x8e   :  { %3724 = vmatprep.subr.bf16.mxu1 %v4073_v37  ;;  %v4133_v37 = vld [vmem:[%s5190_s1 + $0x6f8] sm:$0xff]  }
  0x90   :  { %3703 = vmatpush3.bf16.msra.mxu0 %v4074_v38  ;;  %v4134_v38 = vld [vmem:[%s5190_s1 + $0x638] sm:$0xff]  }
  0x91   :  { %3725 = vmatpush3.bf16.msra.mxu1 %v4075_v39  ;;  %3704 = vmatprep.subr.bf16.mxu0 %v4076_v40  ;;  %v4135_v39 = vld [vmem:[%s5190_s1 + $0x6b8] sm:$0xff]   ;;  %v4136_v40 = vld [vmem:[%s5190_s1 + $0x670] sm:$0xff]  }
  0x92   :  { %3726 = vmatprep.subr.bf16.mxu1 %v4077_v41  ;;  %v4137_v41 = vld [vmem:[%s5190_s1 + $0x6f0] sm:$0xff]  }
  0x94   :  { %3705 = vmatpush3.bf16.msra.mxu0 %v4078_v42  ;;  %v4138_v42 = vld [vmem:[%s5190_s1 + $0x630] sm:$0xff]  }
  0x95   :  { %3727 = vmatpush3.bf16.msra.mxu1 %v4079_v43  ;;  %3706 = vmatprep.subr.bf16.mxu0 %v4080_v44  ;;  %v4139_v43 = vld [vmem:[%s5190_s1 + $0x6b0] sm:$0xff]   ;;  %v4140_v44 = vld [vmem:[%s5190_s1 + $0x668] sm:$0xff]  }
  0x96   :  { %3728 = vmatprep.subr.bf16.mxu1 %v4081_v45  ;;  %v4141_v45 = vld [vmem:[%s5190_s1 + $0x6e8] sm:$0xff]  }
  0x98   :  { %3707 = vmatpush3.bf16.msra.mxu0 %v4082_v46  ;;  %v4142_v46 = vld [vmem:[%s5190_s1 + $0x628] sm:$0xff]  }
  0x99   :  { %3729 = vmatpush3.bf16.msra.mxu1 %v4083_v47  ;;  %3708 = vmatprep.subr.bf16.mxu0 %v4084_v48  ;;  %v4143_v47 = vld [vmem:[%s5190_s1 + $0x6a8] sm:$0xff]   ;;  %v4144_v48 = vld [vmem:[%s5190_s1 + $0x660] sm:$0xff]  }
  0x9a   :  { %3730 = vmatprep.subr.bf16.mxu1 %v4085_v49  ;;  %v4145_v49 = vld [vmem:[%s5190_s1 + $0x6e0] sm:$0xff]  }
  0x9c   :  { %3709 = vmatpush3.bf16.msra.mxu0 %v4086_v50  ;;  %v4146_v50 = vld [vmem:[%s5190_s1 + $0x620] sm:$0xff]  }
  0x9d   :  { %3731 = vmatpush3.bf16.msra.mxu1 %v4087_v51  ;;  %3710 = vmatprep.subr.bf16.mxu0 %v4088_v52  ;;  %v4147_v51 = vld [vmem:[%s5190_s1 + $0x6a0] sm:$0xff]   ;;  %v4148_v52 = vld [vmem:[%s5190_s1 + $0x658] sm:$0xff]  }
  0x9e   :  { %3732 = vmatprep.subr.bf16.mxu1 %v4089_v53  ;;  %v4149_v53 = vld [vmem:[%s5190_s1 + $0x6d8] sm:$0xff]  }
  0xa0   :  { %3711 = vmatpush3.bf16.msra.mxu0 %v4090_v54  ;;  %v4150_v54 = vld [vmem:[%s5190_s1 + $0x618] sm:$0xff]  }
  0xa1   :  { %3733 = vmatpush3.bf16.msra.mxu1 %v4091_v55  ;;  %3740 = vmatprep.subr.bf16.mxu0 %v4096_v62  ;;  %v4151_v55 = vld [vmem:[%s5190_s1 + $0x698] sm:$0xff]   ;;  %v4158_v62 = vld [vmem:[%s5190_s1 + $0x608] sm:$0xff]  }
  0xa2   :  { %3762 = vmatprep.subr.bf16.mxu1 %v4097_v63  ;;  %v4159_v63 = vld [vmem:[%s5190_s1 + $0x688] sm:$0xff]  }
  0xa3   :  { %2823 = vmatmul.mubr.bf16.vlgmr.msra.gmra.mxu0 %v3212_v57  ;;  %v4153_v57 = vld [vmem:[%s5190_s1 + $0x6d0] sm:$0xff]  }
  0xa4   :  { %2863 = vmatmul.mubr.bf16.vlgmr.msra.gmra.mxu1 %v3214_v60  ;;  %3741 = vmatpush3.bf16.msra.mxu0 %v4098_v0  ;;  %v4156_v60 = vld [vmem:[%s5190_s1 + $0x648] sm:$0xff]   ;;  %v4160_v0 = vld [vmem:[%s5190_s1 + $0x640] sm:$0xff]  }
  0xa5   :  { %3763 = vmatpush3.bf16.msra.mxu1 %v4099_v1  ;;  %3742 = vmatprep.subr.bf16.mxu0 %v4100_v2  ;;  %v4161_v1 = vld [vmem:[%s5190_s1 + $0x6c0] sm:$0xff]  }
  0xa6   :  { %3764 = vmatprep.subr.bf16.mxu1 %v4101_v3  ;;  %2902 = vmatprep.mubr.bf16.mxu0 %v3217_v33  ;;  %v4162_v2 = vld [vmem:[%s5190_s1 + $0x600] sm:$0xff]   ;;  %v4178_v33 = vld [vmem:[%s5190_s1 + $0x728] sm:$0xff]  }
  0xa7   :  { %2942 = vmatprep.mubr.bf16.mxu1 %v3219_v35  ;;  %v4163_v3 = vld [vmem:[%s5190_s1 + $0x680] sm:$0xff]  }
  0xa8   :  { %3743 = vmatpush3.bf16.msra.mxu0 %v4102_v4  ;;  %v27_v4 = vld [vmem:[%s5191_s0 + $0x60] sm:$0xff] }
  0xa9   :  { %3765 = vmatpush3.bf16.msra.mxu1 %v4103_v5  ;;  %3744 = vmatprep.subr.bf16.mxu0 %v4104_v6  ;;  %v28_v5 = vld [vmem:[%s5191_s0 + $0x68] sm:$0xff]  ;;  %v4180_v35 = vld [vmem:[%s5190_s1 + $0x760] sm:$0xff]  }
  0xaa   :  { %3766 = vmatprep.subr.bf16.mxu1 %v4105_v7 }
  0xac   :  { %3745 = vmatpush3.bf16.msra.mxu0 %v4106_v8  ;;  %v3220_v8 = vcombine.low %v27_v4, %v27_v4 }
  0xad   :  { %3767 = vmatpush3.bf16.msra.mxu1 %v4107_v9  ;;  %3746 = vmatprep.subr.bf16.mxu0 %v4108_v10  ;;  %v3221_v9 = vcombine.high %v27_v4, %v27_v4  ;;  %v3222_v10 = vcombine.low %v28_v5, %v28_v5 }
  0xae   :  { %3768 = vmatprep.subr.bf16.mxu1 %v4109_v11  ;;  %v4168_v11 = vld [vmem:[%s5190_s1 + $0x778] sm:$0xff]  }
  0xb0   :  { %3747 = vmatpush3.bf16.msra.mxu0 %v4110_v12  ;;  %v3223_v12 = vcombine.high %v28_v5, %v28_v5 }
  0xb1   :  { %3769 = vmatpush3.bf16.msra.mxu1 %v4111_v13  ;;  %3748 = vmatprep.subr.bf16.mxu0 %v4112_v14  ;;  %v4169_v13 = vld [vmem:[%s5190_s1 + $0x7f8] sm:$0xff]  }
  0xb2   :  { %3770 = vmatprep.subr.bf16.mxu1 %v4113_v15 }
  0xb4   :  { %3749 = vmatpush3.bf16.msra.mxu0 %v4114_v16  ;;  %v4170_v16 = vld [vmem:[%s5190_s1 + $0x738] sm:$0xff]  }
  0xb5   :  { %3771 = vmatpush3.bf16.msra.mxu1 %v4115_v17  ;;  %3750 = vmatprep.subr.bf16.mxu0 %v4116_v18 }
  0xb6   :  { %3772 = vmatprep.subr.bf16.mxu1 %v4117_v19  ;;  %v4171_v19 = vld [vmem:[%s5190_s1 + $0x7b8] sm:$0xff]  }
  0xb8   :  { %3751 = vmatpush3.bf16.msra.mxu0 %v4118_v20  ;;  %v3195_v20 = vld [vmem:[%s5192_s2] ss:$0 sm:$0xff] }
  0xb9   :  { %3773 = vmatpush3.bf16.msra.mxu1 %v4119_v21  ;;  %3752 = vmatprep.subr.bf16.mxu0 %v4120_v22 }
  0xba   :  { %3774 = vmatprep.subr.bf16.mxu1 %v4121_v23 }
  0xbc   :  { %3753 = vmatpush3.bf16.msra.mxu0 %v4122_v24  ;;  %v4172_v24 = vld [vmem:[%s5190_s1 + $0x770] sm:$0xff]  }
  0xbd   :  { %3775 = vmatpush3.bf16.msra.mxu1 %v4123_v25  ;;  %3754 = vmatprep.subr.bf16.mxu0 %v4124_v26  ;;  %v4173_v25 = vld [vmem:[%s5190_s1 + $0x7f0] sm:$0xff]  }
  0xbe   :  { %3776 = vmatprep.subr.bf16.mxu1 %v4125_v27 }
  0xc0   :  { %3755 = vmatpush3.bf16.msra.mxu0 %v4126_v28 }
  0xc1   :  { %3777 = vmatpush3.bf16.msra.mxu1 %v4127_v29  ;;  %3784 = vmatprep.subr.bf16.mxu0 %v4132_v36  ;;  %v4174_v29 = vld [vmem:[%s5190_s1 + $0x730] sm:$0xff]   ;;  %v4181_v36 = vld [vmem:[%s5190_s1 + $0x7e0] sm:$0xff]  }
  0xc2   :  { %3806 = vmatprep.subr.bf16.mxu1 %v4133_v37  ;;  %v4182_v37 = vld [vmem:[%s5190_s1 + $0x720] sm:$0xff]  }
  0xc3   :  { %2903 = vmatmul.mubr.bf16.vlgmr.msra.gmra.mxu0 %v3216_v32  ;;  %v4177_v32 = vld [vmem:[%s5190_s1 + $0x7e8] sm:$0xff]  }
  0xc4   :  { %2943 = vmatmul.mubr.bf16.vlgmr.msra.gmra.mxu1 %v3218_v34  ;;  %3785 = vmatpush3.bf16.msra.mxu0 %v4134_v38  ;;  %v4179_v34 = vld [vmem:[%s5190_s1 + $0x7a8] sm:$0xff]   ;;  %v4183_v38 = vld [vmem:[%s5190_s1 + $0x7a0] sm:$0xff]  }
  0xc5   :  { %3807 = vmatpush3.bf16.msra.mxu1 %v4135_v39  ;;  %3786 = vmatprep.subr.bf16.mxu0 %v4136_v40  ;;  %v4184_v39 = vld [vmem:[%s5190_s1 + $0x758] sm:$0xff]  }
  0xc6   :  { %3808 = vmatprep.subr.bf16.mxu1 %v4137_v41  ;;  %2982 = vmatprep.mubr.bf16.mxu0 %v3221_v9  ;;  %v4185_v40 = vld [vmem:[%s5190_s1 + $0x7d8] sm:$0xff]  }
  0xc7   :  { %3022 = vmatprep.mubr.bf16.mxu1 %v3223_v12  ;;  %v4186_v41 = vld [vmem:[%s5190_s1 + $0x718] sm:$0xff]  }
  0xc8   :  { %3787 = vmatpush3.bf16.msra.mxu0 %v4138_v42  ;;  %v4187_v42 = vld [vmem:[%s5190_s1 + $0x798] sm:$0xff]  }
  0xc9   :  { %3809 = vmatpush3.bf16.msra.mxu1 %v4139_v43  ;;  %3788 = vmatprep.subr.bf16.mxu0 %v4140_v44  ;;  %v4188_v43 = vld [vmem:[%s5190_s1 + $0x750] sm:$0xff]  }
  0xca   :  { %3810 = vmatprep.subr.bf16.mxu1 %v4141_v45  ;;  %v4189_v44 = vld [vmem:[%s5190_s1 + $0x7d0] sm:$0xff]  }
  0xcb   :  { %v4190_v45 = vld [vmem:[%s5190_s1 + $0x710] sm:$0xff]  }
  0xcc   :  { %3789 = vmatpush3.bf16.msra.mxu0 %v4142_v46  ;;  %v4191_v46 = vld [vmem:[%s5190_s1 + $0x790] sm:$0xff]  }
  0xcd   :  { %3811 = vmatpush3.bf16.msra.mxu1 %v4143_v47  ;;  %3790 = vmatprep.subr.bf16.mxu0 %v4144_v48  ;;  %v4192_v47 = vld [vmem:[%s5190_s1 + $0x748] sm:$0xff]  }
  0xce   :  { %3812 = vmatprep.subr.bf16.mxu1 %v4145_v49  ;;  %v4193_v48 = vld [vmem:[%s5190_s1 + $0x7c8] sm:$0xff]  }
  0xcf   :  { %v4194_v49 = vld [vmem:[%s5190_s1 + $0x708] sm:$0xff]  }
  0xd0   :  { %3791 = vmatpush3.bf16.msra.mxu0 %v4146_v50  ;;  %v4195_v50 = vld [vmem:[%s5190_s1 + $0x788] sm:$0xff]  }
  0xd1   :  { %3813 = vmatpush3.bf16.msra.mxu1 %v4147_v51  ;;  %3792 = vmatprep.subr.bf16.mxu0 %v4148_v52  ;;  %v4196_v51 = vld [vmem:[%s5190_s1 + $0x740] sm:$0xff]  }
  0xd2   :  { %3814 = vmatprep.subr.bf16.mxu1 %v4149_v53  ;;  %v4197_v52 = vld [vmem:[%s5190_s1 + $0x7c0] sm:$0xff]  }
  0xd3   :  { %v4198_v53 = vld [vmem:[%s5190_s1 + $0x700] sm:$0xff]  }
  0xd4   :  { %3793 = vmatpush3.bf16.msra.mxu0 %v4150_v54  ;;  %v4199_v54 = vld [vmem:[%s5190_s1 + $0x780] sm:$0xff]  }
  0xd5   :  { %3815 = vmatpush3.bf16.msra.mxu1 %v4151_v55  ;;  %3794 = vmatprep.subr.bf16.mxu0 %v4152_v56  ;;  %v29_v55 = vld [vmem:[%s5191_s0 + $0x70] sm:$0xff]  ;;  %v30_v56 = vld [vmem:[%s5191_s0 + $0x78] sm:$0xff] }
  0xd6   :  { %3816 = vmatprep.subr.bf16.mxu1 %v4153_v57 }
  0xd8   :  { %3795 = vmatpush3.bf16.msra.mxu0 %v4154_v58 }
  0xd9   :  { %3817 = vmatpush3.bf16.msra.mxu1 %v4155_v59  ;;  %3796 = vmatprep.subr.bf16.mxu0 %v4156_v60  ;;  %v3224_v59 = vcombine.low %v29_v55, %v29_v55  ;;  %v3225_v60 = vcombine.high %v29_v55, %v29_v55 }
  0xda   :  { %3818 = vmatprep.subr.bf16.mxu1 %v4157_v61  ;;  %v3226_v61 = vcombine.low %v30_v56, %v30_v56 }
  0xdc   :  { %3797 = vmatpush3.bf16.msra.mxu0 %v4158_v62  ;;  %v4204_v62 = vld [vmem:[%s5190_s1 + $0x878] sm:$0xff]  }
  0xdd   :  { %3819 = vmatpush3.bf16.msra.mxu1 %v4159_v63  ;;  %3798 = vmatprep.subr.bf16.mxu0 %v4160_v0  ;;  %v3227_v63 = vcombine.high %v30_v56, %v30_v56  ;;  %v4205_v0 = vld [vmem:[%s5190_s1 + $0x8f8] sm:$0xff]  }
  0xde   :  { %3820 = vmatprep.subr.bf16.mxu1 %v4161_v1 }
  0xe0   :  { %3799 = vmatpush3.bf16.msra.mxu0 %v4162_v2 }
  0xe1   :  { %3821 = vmatpush3.bf16.msra.mxu1 %v4163_v3  ;;  %3828 = vmatprep.subr.bf16.mxu0 %v4168_v11  ;;  %v4206_v3 = vld [vmem:[%s5190_s1 + $0x838] sm:$0xff]   ;;  %v4209_v11 = vld [vmem:[%s5190_s1 + $0x8f0] sm:$0xff]  }
  0xe2   :  { %3850 = vmatprep.subr.bf16.mxu1 %v4169_v13 }
  0xe3   :  { %v3536_v6 = vpop.f32.mrf.mxu0  ;;  %2983 = vmatmul.mubr.bf16.vlgmr.msra.gmra.mxu0 %v3220_v8 }
  0xe4   :  { %v3558_v7 = vpop.f32.mrf.mxu1  ;;  %3023 = vmatmul.mubr.bf16.vlgmr.msra.gmra.mxu1 %v3222_v10  ;;  %3829 = vmatpush3.bf16.msra.mxu0 %v4170_v16  ;;  %v4208_v10 = vld [vmem:[%s5190_s1 + $0x870] sm:$0xff]  }
  0xe5   :  { %v3537_v14 = vpop.f32.mrf.mxu0  ;;  %3851 = vmatpush3.bf16.msra.mxu1 %v4171_v19  ;;  %3830 = vmatprep.subr.bf16.mxu0 %v4172_v24  ;;  %v4211_v16 = vld [vmem:[%s5190_s1 + $0x8b0] sm:$0xff]   ;;  %v4214_v19 = vld [vmem:[%s5190_s1 + $0x828] sm:$0xff]   ;;  %v4219_v24 = vld [vmem:[%s5190_s1 + $0x8a0] sm:$0xff]  }
  0xe6   :  { %v3559_v15 = vpop.f32.mrf.mxu1  ;;  %v3538_v17 = vadd.f32 %v3537_v14, %v3536_v6  ;;  %3852 = vmatprep.subr.bf16.mxu1 %v4173_v25  ;;  %3062 = vmatprep.mubr.bf16.mxu0 %v3225_v60  ;;  %v4207_v6 = vld [vmem:[%s5190_s1 + $0x8b8] sm:$0xff]  }
  0xe7   :  { %v3560_v18 = vadd.f32 %v3559_v15, %v3558_v7  ;;  %v3539_v21 = vpop.f32.mrf.mxu0  ;;  %3102 = vmatprep.mubr.bf16.mxu1 %v3227_v63  ;;  %v4210_v15 = vld [vmem:[%s5190_s1 + $0x830] sm:$0xff]   ;;  %v4220_v25 = vld [vmem:[%s5190_s1 + $0x858] sm:$0xff]  }
  0xe8   :  { %v3561_v22 = vpop.f32.mrf.mxu1  ;;  %v2505_v23 = vadd.f32 %v3538_v17, %v3195_v20  ;;  %3831 = vmatpush3.bf16.msra.mxu0 %v4174_v29  ;;  %v4212_v17 = vld [vmem:[%s5190_s1 + $0x868] sm:$0xff]   ;;  %v4216_v21 = vld [vmem:[%s5190_s1 + $0x860] sm:$0xff]   ;;  %v4224_v29 = vld [vmem:[%s5190_s1 + $0x850] sm:$0xff]  }
  0xe9   :  { %v3540_v26 = vpop.f32.mrf.mxu0  ;;  %3853 = vmatpush3.bf16.msra.mxu1 %v4175_v30  ;;  %3832 = vmatprep.subr.bf16.mxu0 %v4176_v31  ;;  %v4215_v20 = vld [vmem:[%s5190_s1 + $0x8a8] sm:$0xff]   ;;  %v4217_v22 = vld [vmem:[%s5190_s1 + $0x8e0] sm:$0xff]   ;;  %v4225_v30 = vld [vmem:[%s5190_s1 + $0x8d0] sm:$0xff]  }
  0xea   :  { %v3562_v27 = vpop.f32.mrf.mxu1  ;;  %v4995_v28 = vadd.f32 %v3560_v18, %v2505_v23  ;;  %3854 = vmatprep.subr.bf16.mxu1 %v4177_v32  ;;  %v4213_v18 = vld [vmem:[%s5190_s1 + $0x8e8] sm:$0xff]   ;;  %v4218_v23 = vld [vmem:[%s5190_s1 + $0x820] sm:$0xff]   ;;  %v4221_v26 = vld [vmem:[%s5190_s1 + $0x8d8] sm:$0xff]  }
  0xeb   :  { %v4222_v27 = vld [vmem:[%s5190_s1 + $0x818] sm:$0xff]   ;;  %v4226_v31 = vld [vmem:[%s5190_s1 + $0x810] sm:$0xff]  }
  0xec   :  { %3833 = vmatpush3.bf16.msra.mxu0 %v4178_v33  ;;  %v4227_v32 = vld [vmem:[%s5190_s1 + $0x890] sm:$0xff]   ;;  %v4228_v33 = vld [vmem:[%s5190_s1 + $0x848] sm:$0xff]  }
  0xed   :  { %3855 = vmatpush3.bf16.msra.mxu1 %v4179_v34  ;;  %3834 = vmatprep.subr.bf16.mxu0 %v4180_v35  ;;  %v4229_v34 = vld [vmem:[%s5190_s1 + $0x8c8] sm:$0xff]  }
  0xee   :  { %3856 = vmatprep.subr.bf16.mxu1 %v4181_v36  ;;  %v4230_v35 = vld [vmem:[%s5190_s1 + $0x808] sm:$0xff]  }
  0xef   :  { %v4231_v36 = vld [vmem:[%s5190_s1 + $0x888] sm:$0xff]  }
  0xf0   :  { %3835 = vmatpush3.bf16.msra.mxu0 %v4182_v37  ;;  %v4232_v37 = vld [vmem:[%s5190_s1 + $0x840] sm:$0xff]  }
  0xf1   :  { %3857 = vmatpush3.bf16.msra.mxu1 %v4183_v38  ;;  %3836 = vmatprep.subr.bf16.mxu0 %v4184_v39  ;;  %v4233_v38 = vld [vmem:[%s5190_s1 + $0x8c0] sm:$0xff]  }
  0xf2   :  { %3858 = vmatprep.subr.bf16.mxu1 %v4185_v40  ;;  %v4234_v39 = vld [vmem:[%s5190_s1 + $0x800] sm:$0xff]  }
  0xf3   :  { %v4235_v40 = vld [vmem:[%s5190_s1 + $0x880] sm:$0xff]  }
  0xf4   :  { %3837 = vmatpush3.bf16.msra.mxu0 %v4186_v41  ;;  %v31_v41 = vld [vmem:[%s5191_s0 + $0x80] sm:$0xff] }
  0xf5   :  { %3859 = vmatpush3.bf16.msra.mxu1 %v4187_v42  ;;  %3838 = vmatprep.subr.bf16.mxu0 %v4188_v43  ;;  %v3228_v43 = vcombine.low %v31_v41, %v31_v41 }
  0xf6   :  { %3860 = vmatprep.subr.bf16.mxu1 %v4189_v44  ;;  %v3229_v44 = vcombine.high %v31_v41, %v31_v41 }
  0xf8   :  { %3839 = vmatpush3.bf16.msra.mxu0 %v4190_v45  ;;  %v32_v45 = vld [vmem:[%s5191_s0 + $0x88] sm:$0xff] }
  0xf9   :  { %3861 = vmatpush3.bf16.msra.mxu1 %v4191_v46  ;;  %3840 = vmatprep.subr.bf16.mxu0 %v4192_v47  ;;  %v3230_v47 = vcombine.low %v32_v45, %v32_v45 }
  0xfa   :  { %3862 = vmatprep.subr.bf16.mxu1 %v4193_v48  ;;  %v3231_v48 = vcombine.high %v32_v45, %v32_v45 }
  0xfc   :  { %3841 = vmatpush3.bf16.msra.mxu0 %v4194_v49 }
  0xfd   :  { %3863 = vmatpush3.bf16.msra.mxu1 %v4195_v50  ;;  %3842 = vmatprep.subr.bf16.mxu0 %v4196_v51 }
  0xfe   :  { %3864 = vmatprep.subr.bf16.mxu1 %v4197_v52 }
 0x100   :  { %3843 = vmatpush3.bf16.msra.mxu0 %v4198_v53 }
 0x101   :  { %3865 = vmatpush3.bf16.msra.mxu1 %v4199_v54  ;;  %3872 = vmatprep.subr.bf16.mxu0 %v4204_v62 }
 0x102   :  { %3894 = vmatprep.subr.bf16.mxu1 %v4205_v0 }
 0x103   :  { %v3580_v57 = vpop.f32.mrf.mxu0  ;;  %3063 = vmatmul.mubr.bf16.vlgmr.msra.gmra.mxu0 %v3224_v59 }
 0x104   :  { %v3602_v58 = vpop.f32.mrf.mxu1  ;;  %3103 = vmatmul.mubr.bf16.vlgmr.msra.gmra.mxu1 %v3226_v61  ;;  %3873 = vmatpush3.bf16.msra.mxu0 %v4206_v3 }
 0x105   :  { %v3581_v1 = vpop.f32.mrf.mxu0  ;;  %3895 = vmatpush3.bf16.msra.mxu1 %v4207_v6  ;;  %3874 = vmatprep.subr.bf16.mxu0 %v4208_v10 }
 0x106   :  { %v3603_v2 = vpop.f32.mrf.mxu1  ;;  %v3582_v4 = vadd.f32 %v3581_v1, %v3580_v57  ;;  %3896 = vmatprep.subr.bf16.mxu1 %v4209_v11  ;;  %3142 = vmatprep.mubr.bf16.mxu0 %v3229_v44 }
 0x107   :  { %v3604_v5 = vadd.f32 %v3603_v2, %v3602_v58  ;;  %v3583_v7 = vpop.f32.mrf.mxu0  ;;  %3182 = vmatprep.mubr.bf16.mxu1 %v3231_v48 }
 0x108   :  { %v3605_v8 = vpop.f32.mrf.mxu1  ;;  %v2585_v9 = vadd.f32 %v3582_v4, %v4995_v28  ;;  %3875 = vmatpush3.bf16.msra.mxu0 %v4210_v15  ;;  %v4223_v28 = vld [vmem:[%s5190_s1 + $0x898] sm:$0xff]  }
 0x109   :  { %v3584_v12 = vpop.f32.mrf.mxu0  ;;  %3897 = vmatpush3.bf16.msra.mxu1 %v4211_v16  ;;  %3876 = vmatprep.subr.bf16.mxu0 %v4212_v17 }
 0x10a   :  { %v3606_v13 = vpop.f32.mrf.mxu1  ;;  %v5100_v14 = vadd.f32 %v3604_v5, %v2585_v9  ;;  %3898 = vmatprep.subr.bf16.mxu1 %v4213_v18 }
 0x10c   :  { %3877 = vmatpush3.bf16.msra.mxu0 %v4214_v19 }
 0x10d   :  { %3899 = vmatpush3.bf16.msra.mxu1 %v4215_v20  ;;  %3878 = vmatprep.subr.bf16.mxu0 %v4216_v21 }
 0x10e   :  { %3900 = vmatprep.subr.bf16.mxu1 %v4217_v22 }
 0x110   :  { %3879 = vmatpush3.bf16.msra.mxu0 %v4218_v23 }
 0x111   :  { %3901 = vmatpush3.bf16.msra.mxu1 %v4219_v24  ;;  %3880 = vmatprep.subr.bf16.mxu0 %v4220_v25 }
 0x112   :  { %3902 = vmatprep.subr.bf16.mxu1 %v4221_v26 }
 0x114   :  { %3881 = vmatpush3.bf16.msra.mxu0 %v4222_v27 }
 0x115   :  { %3903 = vmatpush3.bf16.msra.mxu1 %v4223_v28  ;;  %3882 = vmatprep.subr.bf16.mxu0 %v4224_v29 }
 0x116   :  { %3904 = vmatprep.subr.bf16.mxu1 %v4225_v30 }
 0x118   :  { %3883 = vmatpush3.bf16.msra.mxu0 %v4226_v31 }
 0x119   :  { %3905 = vmatpush3.bf16.msra.mxu1 %v4227_v32  ;;  %3884 = vmatprep.subr.bf16.mxu0 %v4228_v33 }
 0x11a   :  { %3906 = vmatprep.subr.bf16.mxu1 %v4229_v34 }
 0x11c   :  { %3885 = vmatpush3.bf16.msra.mxu0 %v4230_v35 }
 0x11d   :  { %3907 = vmatpush3.bf16.msra.mxu1 %v4231_v36  ;;  %3886 = vmatprep.subr.bf16.mxu0 %v4232_v37 }
 0x11e   :  { %3908 = vmatprep.subr.bf16.mxu1 %v4233_v38 }
 0x120   :  { %3887 = vmatpush3.bf16.msra.mxu0 %v4234_v39 }
 0x121   :  { %3909 = vmatpush3.bf16.msra.mxu1 %v4235_v40 }
 0x123   :  { %v3624_v42 = vpop.f32.mrf.mxu0  ;;  %3143 = vmatmul.mubr.bf16.vlgmr.msra.gmra.mxu0 %v3228_v43 }
 0x124   :  { %v3646_v46 = vpop.f32.mrf.mxu1  ;;  %3183 = vmatmul.mubr.bf16.vlgmr.msra.gmra.mxu1 %v3230_v47 }
 0x125   :  { %v3625_v49 = vpop.f32.mrf.mxu0 }
 0x126   :  { %v3626_v50 = vadd.f32 %v3625_v49, %v3624_v42  ;;  %v3647_v51 = vpop.f32.mrf.mxu1 }
 0x127   :  { %v3648_v52 = vadd.f32 %v3647_v51, %v3646_v46  ;;  %v3627_v53 = vpop.f32.mrf.mxu0 }
 0x128   :  { %v2665_v54 = vadd.f32 %v3626_v50, %v5100_v14  ;;  %v3649_v55 = vpop.f32.mrf.mxu1 }
 0x129   :  { %v3628_v56 = vpop.f32.mrf.mxu0 }
 0x12a   :  { %v2705_v57 = vadd.f32 %v3648_v52, %v2665_v54  ;;  %v3650_v58 = vpop.f32.mrf.mxu1 }
 0x143   :  { %v3668_v59 = vpop.f32.mrf.mxu0 }
 0x144   :  { %v3690_v60 = vpop.f32.mrf.mxu1 }
 0x145   :  { %v3669_v61 = vpop.f32.mrf.mxu0 }
 0x146   :  { %v3670_v62 = vadd.f32 %v3669_v61, %v3668_v59  ;;  %v3691_v63 = vpop.f32.mrf.mxu1 }
 0x147   :  { %v3692_v0 = vadd.f32 %v3691_v63, %v3690_v60  ;;  %v3671_v1 = vpop.f32.mrf.mxu0 }
 0x148   :  { %v2745_v2 = vadd.f32 %v3670_v62, %v2705_v57  ;;  %v3693_v3 = vpop.f32.mrf.mxu1 }
 0x149   :  { %v3672_v4 = vpop.f32.mrf.mxu0 }
 0x14a   :  { %v2785_v5 = vadd.f32 %v3692_v0, %v2745_v2  ;;  %v3694_v6 = vpop.f32.mrf.mxu1 }
 0x163   :  { %v3712_v7 = vpop.f32.mrf.mxu0 }
 0x164   :  { %v3734_v8 = vpop.f32.mrf.mxu1 }
 0x165   :  { %v3713_v9 = vpop.f32.mrf.mxu0 }
 0x166   :  { %v3735_v10 = vpop.f32.mrf.mxu1  ;;  %v3714_v11 = vadd.f32 %v3713_v9, %v3712_v7 }
 0x167   :  { %v3736_v12 = vadd.f32 %v3735_v10, %v3734_v8  ;;  %v3715_v13 = vpop.f32.mrf.mxu0 }
 0x168   :  { %v3737_v14 = vpop.f32.mrf.mxu1  ;;  %v2825_v15 = vadd.f32 %v3714_v11, %v2785_v5 }
 0x169   :  { %v3716_v16 = vpop.f32.mrf.mxu0 }
 0x16a   :  { %v3738_v17 = vpop.f32.mrf.mxu1  ;;  %v2865_v18 = vadd.f32 %v3736_v12, %v2825_v15 }
 0x183   :  { %v3756_v19 = vpop.f32.mrf.mxu0 }
 0x184   :  { %v3778_v20 = vpop.f32.mrf.mxu1 }
 0x185   :  { %v3757_v21 = vpop.f32.mrf.mxu0 }
 0x186   :  { %v3758_v22 = vadd.f32 %v3757_v21, %v3756_v19  ;;  %v3779_v23 = vpop.f32.mrf.mxu1 }
 0x187   :  { %v3780_v24 = vadd.f32 %v3779_v23, %v3778_v20  ;;  %v3759_v25 = vpop.f32.mrf.mxu0 }
 0x188   :  { %v2905_v26 = vadd.f32 %v3758_v22, %v2865_v18  ;;  %v3781_v27 = vpop.f32.mrf.mxu1 }
 0x189   :  { %v3760_v28 = vpop.f32.mrf.mxu0 }
 0x18a   :  { %v2945_v29 = vadd.f32 %v3780_v24, %v2905_v26  ;;  %v3782_v30 = vpop.f32.mrf.mxu1 }
 0x1a3   :  { %v3800_v31 = vpop.f32.mrf.mxu0 }
 0x1a4   :  { %v3822_v32 = vpop.f32.mrf.mxu1 }
 0x1a5   :  { %v3801_v33 = vpop.f32.mrf.mxu0 }
 0x1a6   :  { %v3823_v34 = vpop.f32.mrf.mxu1  ;;  %v3802_v47 = vadd.f32 %v3801_v33, %v3800_v31 }
 0x1a7   :  { %v3803_v35 = vpop.f32.mrf.mxu0  ;;  %v3824_v49 = vadd.f32 %v3823_v34, %v3822_v32 }
 0x1a8   :  { %v3825_v36 = vpop.f32.mrf.mxu1  ;;  %v2985_v48 = vadd.f32 %v3802_v47, %v2945_v29 }
 0x1a9   :  { %v3804_v37 = vpop.f32.mrf.mxu0 }
 0x1aa   :  { %v3826_v38 = vpop.f32.mrf.mxu1  ;;  %v3025_v51 = vadd.f32 %v3824_v49, %v2985_v48 }
 0x1c3   :  { %v3844_v39 = vpop.f32.mrf.mxu0 }
 0x1c4   :  { %v3866_v40 = vpop.f32.mrf.mxu1 }
 0x1c5   :  { %v3845_v41 = vpop.f32.mrf.mxu0 }
 0x1c6   :  { %v3867_v42 = vpop.f32.mrf.mxu1  ;;  %v3846_v50 = vadd.f32 %v3845_v41, %v3844_v39 }
 0x1c7   :  { %v3847_v43 = vpop.f32.mrf.mxu0  ;;  %v3868_v53 = vadd.f32 %v3867_v42, %v3866_v40 }
 0x1c8   :  { %v3869_v44 = vpop.f32.mrf.mxu1  ;;  %v3065_v52 = vadd.f32 %v3846_v50, %v3025_v51 }
 0x1c9   :  { %v3848_v45 = vpop.f32.mrf.mxu0 }
 0x1ca   :  { %v3870_v46 = vpop.f32.mrf.mxu1  ;;  %v3105_v58 = vadd.f32 %v3868_v53, %v3065_v52 }
 0x1e3   :  { %v3888_v54 = vpop.f32.mrf.mxu0 }
 0x1e4   :  { %v3910_v55 = vpop.f32.mrf.mxu1 }
 0x1e5   :  { %v3889_v56 = vpop.f32.mrf.mxu0 }
 0x1e6   :  { %v3911_v57 = vpop.f32.mrf.mxu1  ;;  %v3890_v59 = vadd.f32 %v3889_v56, %v3888_v54 }
 0x1e7   :  { %v3891_v60 = vpop.f32.mrf.mxu0  ;;  %v3912_v63 = vadd.f32 %v3911_v57, %v3910_v55 }
 0x1e8   :  { %v3913_v61 = vpop.f32.mrf.mxu1  ;;  %v3145_v62 = vadd.f32 %v3890_v59, %v3105_v58 }
 0x1e9   :  { %v3892_v0 = vpop.f32.mrf.mxu0 }
 0x1ea   :  { %v3914_v1 = vpop.f32.mrf.mxu1  ;;  %v3185_v2 = vadd.f32 %v3912_v63, %v3145_v62 }
 0x1ec   :  { %3190 = vst [vmem:[%s5193_s3] sm:$0xff] %v3185_v2 }

</bundles_post_ra>
